<compile_context>
chip_gen: v5e
topology: v5e:2x2
jax: 0.10.0
libtpu: 0.0.40
codegen_flags: <defaults>
</compile_context>

<pallas_src>
import numpy as np
import jax
import jax.numpy as jnp
from jax.experimental import pallas as pl
from jax.experimental.pallas import tpu as pltpu


def _make_fused_kernel(H, W, C0, C1, C2, C3):
    """Fused enc1 -> enc2 -> bottleneck for one batch element."""
    H2, W2 = H // 2, W // 2        # after pool 1
    H3, W3 = H2 // 2, W2 // 2      # after pool 2
    S2 = H2 * W2
    S3 = H3 * W3
    f32 = jnp.float32

    def zero_halo(p, hh, ww, cc):
        # Zero only the 1-pixel halo of a (hh+2, ww+2, cc) padded buffer.  The interior is
        # fully overwritten every grid step, and nothing else ever writes the halo.  Done
        # every iteration (cheap thin strips) to stay megacore-safe with a "parallel" grid.
        p[0:1, :, :] = jnp.zeros((1, ww + 2, cc), f32)
        p[hh + 1:hh + 2, :, :] = jnp.zeros((1, ww + 2, cc), f32)
        p[1:hh + 1, 0:1, :] = jnp.zeros((hh, 1, cc), f32)
        p[1:hh + 1, ww + 1:ww + 2, :] = jnp.zeros((hh, 1, cc), f32)

    def pool2x2(src_ref, hh, ww):
        # 2x2/stride-2 max-pool of a (2*hh, 2*ww, C) ref -> (hh, ww, C) value,
        # as four strided reads and a 3-op max tree (no intermediate buffer).
        return jnp.maximum(
            jnp.maximum(src_ref[pl.ds(0, hh, stride=2), pl.ds(0, ww, stride=2), :],
                        src_ref[pl.ds(0, hh, stride=2), pl.ds(1, ww, stride=2), :]),
            jnp.maximum(src_ref[pl.ds(1, hh, stride=2), pl.ds(0, ww, stride=2), :],
                        src_ref[pl.ds(1, hh, stride=2), pl.ds(1, ww, stride=2), :]))

    def kernel(x_ref, w1_ref, b1_ref, w2_ref, b2_ref, w3_ref, b3_ref, o_ref,
               p1, y1b, p2, slab2, y2b, p3, slab3):

        # ---------------- layer 1: conv3x3 (C0 -> C1) + bias + ReLU ----------------
        zero_halo(p1, H, W, C0)
        p1[1:H + 1, 1:W + 1, :] = x_ref[0]

        # Cin == 1: per-tap VPU broadcast-multiply (K=1 matmul would waste the MXU).
        acc1 = jnp.zeros((H * W, C1), f32)
        for ky in range(3):
            for kx in range(3):
                patch = p1[ky:ky + H, kx:kx + W, :].reshape(H * W, C0)   # (H*W, 1)
                acc1 = acc1 + patch * w1_ref[ky, kx]                     # (1, C1) bcast
        y1 = jnp.maximum(acc1 + b1_ref[...], 0.0)                        # (H*W, C1)
        y1b[...] = y1.reshape(H, W, C1)

        # pool 1 -> interior of padded layer-2 input
        zero_halo(p2, H2, W2, C1)
        p2[1:H2 + 1, 1:W2 + 1, :] = pool2x2(y1b, H2, W2)

        # ---------------- layer 2: conv3x3 (C1 -> C2) + bias + ReLU ----------------
        # im2col slab (S2, 9*C1), then ONE K=9*C1 matmul on the MXU.
        for ky in range(3):
            for kx in range(3):
                j = ky * 3 + kx
                slab2[:, j * C1:(j + 1) * C1] = (
                    p2[ky:ky + H2, kx:kx + W2, :].reshape(S2, C1))
        y2 = jnp.maximum(
            jnp.dot(slab2[...], w2_ref[...], preferred_element_type=f32)
            + b2_ref[...], 0.0)                                          # (S2, C2)
        y2b[...] = y2.reshape(H2, W2, C2)

        # pool 2 -> interior of padded layer-3 input
        zero_halo(p3, H3, W3, C2)
        p3[1:H3 + 1, 1:W3 + 1, :] = pool2x2(y2b, H3, W3)

        # ------------- layer 3 (bottleneck): conv3x3 (C2 -> C3) + bias + ReLU -------------
        # im2col slab (S3, 9*C2) assembled row-by-row (avoids a (H3, W3, C2)->(S3, C2)
        # relayout at W3 < 8), ONE K=9*C2 matmul, bias added once, and a single block store.
        for h in range(H3):
            for ky in range(3):
                for kx in range(3):
                    j = ky * 3 + kx
                    slab3[h * W3:(h + 1) * W3, j * C2:(j + 1) * C2] = (
                        p3[ky + h, kx:kx + W3, :])                       # (W3, C2)
        y3 = jnp.maximum(
            jnp.dot(slab3[...], w3_ref[...], preferred_element_type=f32)
            + b3_ref[...], 0.0)                                          # (S3, C3)
        o_ref[0] = y3.astype(o_ref.dtype)

    return kernel


def simple_unet_forward(x_nchw, params):
    """Pallas implementation of SimpleUNet.forward. Input/output are NCHW (PyTorch)."""
    w1, b1, w2, b2, w3, b3 = params                                      # weights HWIO
    N, C0, H, W = x_nchw.shape
    assert H % 4 == 0 and W % 4 == 0, "H and W must be divisible by 4"
    C1, C2, C3 = w1.shape[3], w2.shape[3], w3.shape[3]
    H2, W2, H3, W3 = H // 2, W // 2, H // 4, W // 4
    S3 = H3 * W3

    x = jnp.transpose(x_nchw, (0, 2, 3, 1))                              # NCHW -> NHWC

    # im2col weight layout: (3,3,Cin,Cout) -> (9*Cin, Cout); row = (ky*3+kx)*Cin + cin,
    # which matches the slab column order built inside the kernel.
    w2f = w2.reshape(9 * C1, C2)
    w3f = w3.reshape(9 * C2, C3)

    kernel = _make_fused_kernel(H, W, C0, C1, C2, C3)

    # TODO(synk): for large H,W (esp. v7x's 64 MiB VMEM) add a spatial row-tile grid axis
    # with a 1-row halo instead of holding whole-image intermediates in VMEM.
    out_flat = pl.pallas_call(
        kernel,
        out_shape=jax.ShapeDtypeStruct((N, S3, C3), jnp.float32),
        grid=(N,),                                                       # one image per step
        in_specs=[
            pl.BlockSpec((1, H, W, C0), lambda n: (n, 0, 0, 0)),
            pl.BlockSpec((3, 3, C0, C1), lambda n: (0, 0, 0, 0)),
            pl.BlockSpec((1, C1), lambda n: (0, 0)),
            pl.BlockSpec((9 * C1, C2), lambda n: (0, 0)),
            pl.BlockSpec((1, C2), lambda n: (0, 0)),
            pl.BlockSpec((9 * C2, C3), lambda n: (0, 0)),
            pl.BlockSpec((1, C3), lambda n: (0, 0)),
        ],
        out_specs=pl.BlockSpec((1, S3, C3), lambda n: (n, 0, 0)),
        scratch_shapes=[
            pltpu.VMEM((H + 2, W + 2, C0), jnp.float32),                 # p1   (padded input)
            pltpu.VMEM((H, W, C1), jnp.float32),                         # y1b  (conv1+relu)
            pltpu.VMEM((H2 + 2, W2 + 2, C1), jnp.float32),               # p2   (padded pool1)
            pltpu.VMEM((H2 * W2, 9 * C1), jnp.float32),                  # slab2 (im2col L2)
            pltpu.VMEM((H2, W2, C2), jnp.float32),                       # y2b  (conv2+relu)
            pltpu.VMEM((H3 + 2, W3 + 2, C2), jnp.float32),               # p3   (padded pool2)
            pltpu.VMEM((H3 * W3, 9 * C2), jnp.float32),                  # slab3 (im2col L3)
        ],
        compiler_params=pltpu.CompilerParams(
            dimension_semantics=("parallel",),
            vmem_limit_bytes=32 * 1024 * 1024),
    )(x, w1, b1.reshape(1, C1), w2f, b2.reshape(1, C2), w3f, b3.reshape(1, C3))

    out_nhwc = out_flat.reshape(N, H3, W3, C3)
    return jnp.transpose(out_nhwc, (0, 3, 1, 2))                         # NHWC -> NCHW


def init_params(key, in_channels=1, base_channels=16, out_channels=64):
    """Deterministic init matching the PyTorch module's parameter shapes
    (Conv2d default-style uniform(-1/sqrt(fan_in), 1/sqrt(fan_in))). Weights are HWIO."""
    ks = jax.random.split(key, 6)

    def conv_init(kw, kb, cin, cout):
        bound = 1.0 / np.sqrt(cin * 9)
        w = jax.random.uniform(kw, (3, 3, cin, cout), jnp.float32, -bound, bound)
        b = jax.random.uniform(kb, (cout,), jnp.float32, -bound, bound)
        return w, b

    w1, b1 = conv_init(ks[0], ks[1], in_channels, base_channels)
    w2, b2 = conv_init(ks[2], ks[3], base_channels, base_channels * 2)
    w3, b3 = conv_init(ks[4], ks[5], base_channels * 2, out_channels)
    return (w1, b1, w2, b2, w3, b3)


def simple_unet_reference(x_nchw, params):
    """Pure-JAX reference (for correctness checking only)."""
    w1, b1, w2, b2, w3, b3 = params

    def block(x, w, b, pool):
        y = jax.lax.conv_general_dilated(
            x, w, (1, 1), "SAME",
            dimension_numbers=("NHWC", "HWIO", "NHWC"),
            precision=jax.lax.Precision.HIGHEST)
        y = jnp.maximum(y + b, 0.0)
        if pool:
            y = jax.lax.reduce_window(y, -jnp.inf, jax.lax.max,
                                      (1, 2, 2, 1), (1, 2, 2, 1), "VALID")
        return y

    x = jnp.transpose(x_nchw, (0, 2, 3, 1))
    x = block(x, w1, b1, True)
    x = block(x, w2, b2, True)
    x = block(x, w3, b3, False)
    return jnp.transpose(x, (0, 3, 1, 2))


if __name__ == "__main__":
    key = jax.random.PRNGKey(0)
    k_x, k_p = jax.random.split(key)

    # Small shapes consistent with SimpleUNet(in_channels=1, base_channels=16, out_channels=64)
    x = jax.random.normal(k_x, (2, 1, 16, 16), jnp.float32)              # NCHW, like PyTorch
    params = init_params(k_p)

    fwd = jax.jit(simple_unet_forward)
    out = fwd(x, params)
    out = jax.block_until_ready(out)

    assert out.shape == (2, 64, 4, 4), f"unexpected output shape {out.shape}"
    ref = simple_unet_reference(x, params)
    np.testing.assert_allclose(np.asarray(out), np.asarray(ref), rtol=2e-2, atol=2e-2)

    print("KERNEL_OK")
</pallas_src>

<mosaic_0001>
module attributes {stable_mosaic.version = 11 : i64} {
  func.func @kernel(%arg0: i32, %arg1: memref<1x16x16x1xf32, #tpu.memory_space<vmem>>, %arg2: memref<3x3x1x16xf32, #tpu.memory_space<vmem>>, %arg3: memref<1x16xf32, #tpu.memory_space<vmem>>, %arg4: memref<144x32xf32, #tpu.memory_space<vmem>>, %arg5: memref<1x32xf32, #tpu.memory_space<vmem>>, %arg6: memref<288x64xf32, #tpu.memory_space<vmem>>, %arg7: memref<1x64xf32, #tpu.memory_space<vmem>>, %arg8: memref<1x16x64xf32, #tpu.memory_space<vmem>>, %arg9: memref<18x18x1xf32, #tpu.memory_space<vmem>>, %arg10: memref<16x16x16xf32, #tpu.memory_space<vmem>>, %arg11: memref<10x10x16xf32, #tpu.memory_space<vmem>>, %arg12: memref<64x144xf32, #tpu.memory_space<vmem>>, %arg13: memref<8x8x32xf32, #tpu.memory_space<vmem>>, %arg14: memref<6x6x32xf32, #tpu.memory_space<vmem>>, %arg15: memref<16x288xf32, #tpu.memory_space<vmem>>) attributes {dimension_semantics = [#tpu.dimension_semantics<parallel>], iteration_bounds = array<i64: 2>, scalar_prefetch = 0 : i64, scratch_operands = 7 : i64, tpu.core_type = #tpu.core_type<tc>, window_params = [{transform_indices = @transform_0, window_bounds = array<i64: 1, 16, 16, 1>}, {pipeline_mode = #tpu.pipeline_mode<synchronous>, transform_indices = @transform_1, window_bounds = array<i64: 3, 3, 1, 16>}, {pipeline_mode = #tpu.pipeline_mode<synchronous>, transform_indices = @transform_2, window_bounds = array<i64: 1, 16>}, {pipeline_mode = #tpu.pipeline_mode<synchronous>, transform_indices = @transform_3, window_bounds = array<i64: 144, 32>}, {pipeline_mode = #tpu.pipeline_mode<synchronous>, transform_indices = @transform_4, window_bounds = array<i64: 1, 32>}, {pipeline_mode = #tpu.pipeline_mode<synchronous>, transform_indices = @transform_5, window_bounds = array<i64: 288, 64>}, {pipeline_mode = #tpu.pipeline_mode<synchronous>, transform_indices = @transform_6, window_bounds = array<i64: 1, 64>}, {transform_indices = @transform_7, window_bounds = array<i64: 1, 16, 64>}]} {
    %cst = arith.constant 0.000000e+00 : f32
    %0 = vector.broadcast %cst : f32 to vector<1x18x1xf32>
    %c0 = arith.constant 0 : index
    %c0_0 = arith.constant 0 : index
    %c0_1 = arith.constant 0 : index
    %1 = vector.load %arg9[%c0, %c0_0, %c0_1] : memref<18x18x1xf32, #tpu.memory_space<vmem>>, vector<1x18x1xf32>
    tpu.vector_store %arg9[%c0, %c0_0, %c0_1], %0 {strides = array<i32>} : memref<18x18x1xf32, #tpu.memory_space<vmem>>, vector<1x18x1xf32>,
    %cst_2 = arith.constant 0.000000e+00 : f32
    %2 = vector.broadcast %cst_2 : f32 to vector<1x18x1xf32>
    %c17 = arith.constant 17 : index
    %c0_3 = arith.constant 0 : index
    %c0_4 = arith.constant 0 : index
    %3 = vector.load %arg9[%c17, %c0_3, %c0_4] : memref<18x18x1xf32, #tpu.memory_space<vmem>>, vector<1x18x1xf32>
    tpu.vector_store %arg9[%c17, %c0_3, %c0_4], %2 {strides = array<i32>} : memref<18x18x1xf32, #tpu.memory_space<vmem>>, vector<1x18x1xf32>,
    %cst_5 = arith.constant 0.000000e+00 : f32
    %4 = vector.broadcast %cst_5 : f32 to vector<16x1x1xf32>
    %c1 = arith.constant 1 : index
    %c0_6 = arith.constant 0 : index
    %c0_7 = arith.constant 0 : index
    %5 = vector.load %arg9[%c1, %c0_6, %c0_7] : memref<18x18x1xf32, #tpu.memory_space<vmem>>, vector<16x1x1xf32>
    tpu.vector_store %arg9[%c1, %c0_6, %c0_7], %4 {strides = array<i32>} : memref<18x18x1xf32, #tpu.memory_space<vmem>>, vector<16x1x1xf32>,
    %cst_8 = arith.constant 0.000000e+00 : f32
    %6 = vector.broadcast %cst_8 : f32 to vector<16x1x1xf32>
    %c1_9 = arith.constant 1 : index
    %c17_10 = arith.constant 17 : index
    %c0_11 = arith.constant 0 : index
    %7 = vector.load %arg9[%c1_9, %c17_10, %c0_11] : memref<18x18x1xf32, #tpu.memory_space<vmem>>, vector<16x1x1xf32>
    tpu.vector_store %arg9[%c1_9, %c17_10, %c0_11], %6 {strides = array<i32>} : memref<18x18x1xf32, #tpu.memory_space<vmem>>, vector<16x1x1xf32>,
    %c0_12 = arith.constant 0 : index
    %c0_13 = arith.constant 0 : index
    %c0_14 = arith.constant 0 : index
    %c0_15 = arith.constant 0 : index
    %8 = vector.load %arg1[%c0_12, %c0_13, %c0_14, %c0_15] : memref<1x16x16x1xf32, #tpu.memory_space<vmem>>, vector<1x16x16x1xf32>
    %9 = vector.shape_cast %8 : vector<1x16x16x1xf32> to vector<16x16x1xf32>
    %c1_16 = arith.constant 1 : index
    %c1_17 = arith.constant 1 : index
    %c0_18 = arith.constant 0 : index
    %10 = vector.load %arg9[%c1_16, %c1_17, %c0_18] : memref<18x18x1xf32, #tpu.memory_space<vmem>>, vector<16x16x1xf32>
    tpu.vector_store %arg9[%c1_16, %c1_17, %c0_18], %9 {strides = array<i32>} : memref<18x18x1xf32, #tpu.memory_space<vmem>>, vector<16x16x1xf32>,
    %cst_19 = arith.constant 0.000000e+00 : f32
    %11 = vector.broadcast %cst_19 : f32 to vector<256x16xf32>
    %c0_20 = arith.constant 0 : index
    %c0_21 = arith.constant 0 : index
    %c0_22 = arith.constant 0 : index
    %12 = vector.load %arg9[%c0_20, %c0_21, %c0_22] : memref<18x18x1xf32, #tpu.memory_space<vmem>>, vector<16x16x1xf32>
    %13 = vector.shape_cast %12 : vector<16x16x1xf32> to vector<256x1xf32>
    %c0_23 = arith.constant 0 : index
    %c0_24 = arith.constant 0 : index
    %c0_25 = arith.constant 0 : index
    %c0_26 = arith.constant 0 : index
    %14 = vector.load %arg2[%c0_23, %c0_24, %c0_25, %c0_26] : memref<3x3x1x16xf32, #tpu.memory_space<vmem>>, vector<1x1x1x16xf32>
    %15 = vector.shape_cast %14 : vector<1x1x1x16xf32> to vector<1x16xf32>
    %16 = vector.broadcast %13 : vector<256x1xf32> to vector<256x16xf32>
    %17 = vector.broadcast %15 : vector<1x16xf32> to vector<256x16xf32>
    %18 = arith.mulf %16, %17 : vector<256x16xf32>
    %19 = arith.addf %11, %18 : vector<256x16xf32>
    %c0_27 = arith.constant 0 : index
    %c1_28 = arith.constant 1 : index
    %c0_29 = arith.constant 0 : index
    %20 = vector.load %arg9[%c0_27, %c1_28, %c0_29] : memref<18x18x1xf32, #tpu.memory_space<vmem>>, vector<16x16x1xf32>
    %21 = vector.shape_cast %20 : vector<16x16x1xf32> to vector<256x1xf32>
    %c0_30 = arith.constant 0 : index
    %c1_31 = arith.constant 1 : index
    %c0_32 = arith.constant 0 : index
    %c0_33 = arith.constant 0 : index
    %22 = vector.load %arg2[%c0_30, %c1_31, %c0_32, %c0_33] : memref<3x3x1x16xf32, #tpu.memory_space<vmem>>, vector<1x1x1x16xf32>
    %23 = vector.shape_cast %22 : vector<1x1x1x16xf32> to vector<1x16xf32>
    %24 = vector.broadcast %21 : vector<256x1xf32> to vector<256x16xf32>
    %25 = vector.broadcast %23 : vector<1x16xf32> to vector<256x16xf32>
    %26 = arith.mulf %24, %25 : vector<256x16xf32>
    %27 = arith.addf %19, %26 : vector<256x16xf32>
    %c0_34 = arith.constant 0 : index
    %c2 = arith.constant 2 : index
    %c0_35 = arith.constant 0 : index
    %28 = vector.load %arg9[%c0_34, %c2, %c0_35] : memref<18x18x1xf32, #tpu.memory_space<vmem>>, vector<16x16x1xf32>
    %29 = vector.shape_cast %28 : vector<16x16x1xf32> to vector<256x1xf32>
    %c0_36 = arith.constant 0 : index
    %c2_37 = arith.constant 2 : index
    %c0_38 = arith.constant 0 : index
    %c0_39 = arith.constant 0 : index
    %30 = vector.load %arg2[%c0_36, %c2_37, %c0_38, %c0_39] : memref<3x3x1x16xf32, #tpu.memory_space<vmem>>, vector<1x1x1x16xf32>
    %31 = vector.shape_cast %30 : vector<1x1x1x16xf32> to vector<1x16xf32>
    %32 = vector.broadcast %29 : vector<256x1xf32> to vector<256x16xf32>
    %33 = vector.broadcast %31 : vector<1x16xf32> to vector<256x16xf32>
    %34 = arith.mulf %32, %33 : vector<256x16xf32>
    %35 = arith.addf %27, %34 : vector<256x16xf32>
    %c1_40 = arith.constant 1 : index
    %c0_41 = arith.constant 0 : index
    %c0_42 = arith.constant 0 : index
    %36 = vector.load %arg9[%c1_40, %c0_41, %c0_42] : memref<18x18x1xf32, #tpu.memory_space<vmem>>, vector<16x16x1xf32>
    %37 = vector.shape_cast %36 : vector<16x16x1xf32> to vector<256x1xf32>
    %c1_43 = arith.constant 1 : index
    %c0_44 = arith.constant 0 : index
    %c0_45 = arith.constant 0 : index
    %c0_46 = arith.constant 0 : index
    %38 = vector.load %arg2[%c1_43, %c0_44, %c0_45, %c0_46] : memref<3x3x1x16xf32, #tpu.memory_space<vmem>>, vector<1x1x1x16xf32>
    %39 = vector.shape_cast %38 : vector<1x1x1x16xf32> to vector<1x16xf32>
    %40 = vector.broadcast %37 : vector<256x1xf32> to vector<256x16xf32>
    %41 = vector.broadcast %39 : vector<1x16xf32> to vector<256x16xf32>
    %42 = arith.mulf %40, %41 : vector<256x16xf32>
    %43 = arith.addf %35, %42 : vector<256x16xf32>
    %c1_47 = arith.constant 1 : index
    %c1_48 = arith.constant 1 : index
    %c0_49 = arith.constant 0 : index
    %44 = vector.load %arg9[%c1_47, %c1_48, %c0_49] : memref<18x18x1xf32, #tpu.memory_space<vmem>>, vector<16x16x1xf32>
    %45 = vector.shape_cast %44 : vector<16x16x1xf32> to vector<256x1xf32>
    %c1_50 = arith.constant 1 : index
    %c1_51 = arith.constant 1 : index
    %c0_52 = arith.constant 0 : index
    %c0_53 = arith.constant 0 : index
    %46 = vector.load %arg2[%c1_50, %c1_51, %c0_52, %c0_53] : memref<3x3x1x16xf32, #tpu.memory_space<vmem>>, vector<1x1x1x16xf32>
    %47 = vector.shape_cast %46 : vector<1x1x1x16xf32> to vector<1x16xf32>
    %48 = vector.broadcast %45 : vector<256x1xf32> to vector<256x16xf32>
    %49 = vector.broadcast %47 : vector<1x16xf32> to vector<256x16xf32>
    %50 = arith.mulf %48, %49 : vector<256x16xf32>
    %51 = arith.addf %43, %50 : vector<256x16xf32>
    %c1_54 = arith.constant 1 : index
    %c2_55 = arith.constant 2 : index
    %c0_56 = arith.constant 0 : index
    %52 = vector.load %arg9[%c1_54, %c2_55, %c0_56] : memref<18x18x1xf32, #tpu.memory_space<vmem>>, vector<16x16x1xf32>
    %53 = vector.shape_cast %52 : vector<16x16x1xf32> to vector<256x1xf32>
    %c1_57 = arith.constant 1 : index
    %c2_58 = arith.constant 2 : index
    %c0_59 = arith.constant 0 : index
    %c0_60 = arith.constant 0 : index
    %54 = vector.load %arg2[%c1_57, %c2_58, %c0_59, %c0_60] : memref<3x3x1x16xf32, #tpu.memory_space<vmem>>, vector<1x1x1x16xf32>
    %55 = vector.shape_cast %54 : vector<1x1x1x16xf32> to vector<1x16xf32>
    %56 = vector.broadcast %53 : vector<256x1xf32> to vector<256x16xf32>
    %57 = vector.broadcast %55 : vector<1x16xf32> to vector<256x16xf32>
    %58 = arith.mulf %56, %57 : vector<256x16xf32>
    %59 = arith.addf %51, %58 : vector<256x16xf32>
    %c2_61 = arith.constant 2 : index
    %c0_62 = arith.constant 0 : index
    %c0_63 = arith.constant 0 : index
    %60 = vector.load %arg9[%c2_61, %c0_62, %c0_63] : memref<18x18x1xf32, #tpu.memory_space<vmem>>, vector<16x16x1xf32>
    %61 = vector.shape_cast %60 : vector<16x16x1xf32> to vector<256x1xf32>
    %c2_64 = arith.constant 2 : index
    %c0_65 = arith.constant 0 : index
    %c0_66 = arith.constant 0 : index
    %c0_67 = arith.constant 0 : index
    %62 = vector.load %arg2[%c2_64, %c0_65, %c0_66, %c0_67] : memref<3x3x1x16xf32, #tpu.memory_space<vmem>>, vector<1x1x1x16xf32>
    %63 = vector.shape_cast %62 : vector<1x1x1x16xf32> to vector<1x16xf32>
    %64 = vector.broadcast %61 : vector<256x1xf32> to vector<256x16xf32>
    %65 = vector.broadcast %63 : vector<1x16xf32> to vector<256x16xf32>
    %66 = arith.mulf %64, %65 : vector<256x16xf32>
    %67 = arith.addf %59, %66 : vector<256x16xf32>
    %c2_68 = arith.constant 2 : index
    %c1_69 = arith.constant 1 : index
    %c0_70 = arith.constant 0 : index
    %68 = vector.load %arg9[%c2_68, %c1_69, %c0_70] : memref<18x18x1xf32, #tpu.memory_space<vmem>>, vector<16x16x1xf32>
    %69 = vector.shape_cast %68 : vector<16x16x1xf32> to vector<256x1xf32>
    %c2_71 = arith.constant 2 : index
    %c1_72 = arith.constant 1 : index
    %c0_73 = arith.constant 0 : index
    %c0_74 = arith.constant 0 : index
    %70 = vector.load %arg2[%c2_71, %c1_72, %c0_73, %c0_74] : memref<3x3x1x16xf32, #tpu.memory_space<vmem>>, vector<1x1x1x16xf32>
    %71 = vector.shape_cast %70 : vector<1x1x1x16xf32> to vector<1x16xf32>
    %72 = vector.broadcast %69 : vector<256x1xf32> to vector<256x16xf32>
    %73 = vector.broadcast %71 : vector<1x16xf32> to vector<256x16xf32>
    %74 = arith.mulf %72, %73 : vector<256x16xf32>
    %75 = arith.addf %67, %74 : vector<256x16xf32>
    %c2_75 = arith.constant 2 : index
    %c2_76 = arith.constant 2 : index
    %c0_77 = arith.constant 0 : index
    %76 = vector.load %arg9[%c2_75, %c2_76, %c0_77] : memref<18x18x1xf32, #tpu.memory_space<vmem>>, vector<16x16x1xf32>
    %77 = vector.shape_cast %76 : vector<16x16x1xf32> to vector<256x1xf32>
    %c2_78 = arith.constant 2 : index
    %c2_79 = arith.constant 2 : index
    %c0_80 = arith.constant 0 : index
    %c0_81 = arith.constant 0 : index
    %78 = vector.load %arg2[%c2_78, %c2_79, %c0_80, %c0_81] : memref<3x3x1x16xf32, #tpu.memory_space<vmem>>, vector<1x1x1x16xf32>
    %79 = vector.shape_cast %78 : vector<1x1x1x16xf32> to vector<1x16xf32>
    %80 = vector.broadcast %77 : vector<256x1xf32> to vector<256x16xf32>
    %81 = vector.broadcast %79 : vector<1x16xf32> to vector<256x16xf32>
    %82 = arith.mulf %80, %81 : vector<256x16xf32>
    %83 = arith.addf %75, %82 : vector<256x16xf32>
    %c0_82 = arith.constant 0 : index
    %c0_83 = arith.constant 0 : index
    %84 = vector.load %arg3[%c0_82, %c0_83] : memref<1x16xf32, #tpu.memory_space<vmem>>, vector<1x16xf32>
    %85 = vector.broadcast %84 : vector<1x16xf32> to vector<256x16xf32>
    %86 = arith.addf %83, %85 : vector<256x16xf32>
    %cst_84 = arith.constant 0.000000e+00 : f32
    %87 = vector.broadcast %cst_84 : f32 to vector<256x16xf32>
    %88 = arith.maximumf %86, %87 : vector<256x16xf32>
    %89 = vector.shape_cast %88 : vector<256x16xf32> to vector<16x16x16xf32>
    %c0_85 = arith.constant 0 : index
    %c0_86 = arith.constant 0 : index
    %c0_87 = arith.constant 0 : index
    %90 = vector.load %arg10[%c0_85, %c0_86, %c0_87] : memref<16x16x16xf32, #tpu.memory_space<vmem>>, vector<16x16x16xf32>
    tpu.vector_store %arg10[%c0_85, %c0_86, %c0_87], %89 {strides = array<i32>} : memref<16x16x16xf32, #tpu.memory_space<vmem>>, vector<16x16x16xf32>,
    %cst_88 = arith.constant 0.000000e+00 : f32
    %91 = vector.broadcast %cst_88 : f32 to vector<1x10x16xf32>
    %c0_89 = arith.constant 0 : index
    %c0_90 = arith.constant 0 : index
    %c0_91 = arith.constant 0 : index
    %92 = vector.load %arg11[%c0_89, %c0_90, %c0_91] : memref<10x10x16xf32, #tpu.memory_space<vmem>>, vector<1x10x16xf32>
    tpu.vector_store %arg11[%c0_89, %c0_90, %c0_91], %91 {strides = array<i32>} : memref<10x10x16xf32, #tpu.memory_space<vmem>>, vector<1x10x16xf32>,
    %cst_92 = arith.constant 0.000000e+00 : f32
    %93 = vector.broadcast %cst_92 : f32 to vector<1x10x16xf32>
    %c9 = arith.constant 9 : index
    %c0_93 = arith.constant 0 : index
    %c0_94 = arith.constant 0 : index
    %94 = vector.load %arg11[%c9, %c0_93, %c0_94] : memref<10x10x16xf32, #tpu.memory_space<vmem>>, vector<1x10x16xf32>
    tpu.vector_store %arg11[%c9, %c0_93, %c0_94], %93 {strides = array<i32>} : memref<10x10x16xf32, #tpu.memory_space<vmem>>, vector<1x10x16xf32>,
    %cst_95 = arith.constant 0.000000e+00 : f32
    %95 = vector.broadcast %cst_95 : f32 to vector<8x1x16xf32>
    %c1_96 = arith.constant 1 : index
    %c0_97 = arith.constant 0 : index
    %c0_98 = arith.constant 0 : index
    %96 = vector.load %arg11[%c1_96, %c0_97, %c0_98] : memref<10x10x16xf32, #tpu.memory_space<vmem>>, vector<8x1x16xf32>
    tpu.vector_store %arg11[%c1_96, %c0_97, %c0_98], %95 {strides = array<i32>} : memref<10x10x16xf32, #tpu.memory_space<vmem>>, vector<8x1x16xf32>,
    %cst_99 = arith.constant 0.000000e+00 : f32
    %97 = vector.broadcast %cst_99 : f32 to vector<8x1x16xf32>
    %c1_100 = arith.constant 1 : index
    %c9_101 = arith.constant 9 : index
    %c0_102 = arith.constant 0 : index
    %98 = vector.load %arg11[%c1_100, %c9_101, %c0_102] : memref<10x10x16xf32, #tpu.memory_space<vmem>>, vector<8x1x16xf32>
    tpu.vector_store %arg11[%c1_100, %c9_101, %c0_102], %97 {strides = array<i32>} : memref<10x10x16xf32, #tpu.memory_space<vmem>>, vector<8x1x16xf32>,
    %c0_103 = arith.constant 0 : index
    %c0_104 = arith.constant 0 : index
    %c0_105 = arith.constant 0 : index
    %99 = tpu.strided_load %arg10[%c0_103, %c0_104, %c0_105] {strides = array<i32: 2, 2, 1>} : memref<16x16x16xf32, #tpu.memory_space<vmem>>, vector<8x8x16xf32>
    %c0_106 = arith.constant 0 : index
    %c1_107 = arith.constant 1 : index
    %c0_108 = arith.constant 0 : index
    %100 = tpu.strided_load %arg10[%c0_106, %c1_107, %c0_108] {strides = array<i32: 2, 2, 1>} : memref<16x16x16xf32, #tpu.memory_space<vmem>>, vector<8x8x16xf32>
    %101 = arith.maximumf %99, %100 : vector<8x8x16xf32>
    %c1_109 = arith.constant 1 : index
    %c0_110 = arith.constant 0 : index
    %c0_111 = arith.constant 0 : index
    %102 = tpu.strided_load %arg10[%c1_109, %c0_110, %c0_111] {strides = array<i32: 2, 2, 1>} : memref<16x16x16xf32, #tpu.memory_space<vmem>>, vector<8x8x16xf32>
    %c1_112 = arith.constant 1 : index
    %c1_113 = arith.constant 1 : index
    %c0_114 = arith.constant 0 : index
    %103 = tpu.strided_load %arg10[%c1_112, %c1_113, %c0_114] {strides = array<i32: 2, 2, 1>} : memref<16x16x16xf32, #tpu.memory_space<vmem>>, vector<8x8x16xf32>
    %104 = arith.maximumf %102, %103 : vector<8x8x16xf32>
    %105 = arith.maximumf %101, %104 : vector<8x8x16xf32>
    %c1_115 = arith.constant 1 : index
    %c1_116 = arith.constant 1 : index
    %c0_117 = arith.constant 0 : index
    %106 = vector.load %arg11[%c1_115, %c1_116, %c0_117] : memref<10x10x16xf32, #tpu.memory_space<vmem>>, vector<8x8x16xf32>
    tpu.vector_store %arg11[%c1_115, %c1_116, %c0_117], %105 {strides = array<i32>} : memref<10x10x16xf32, #tpu.memory_space<vmem>>, vector<8x8x16xf32>,
    %c0_118 = arith.constant 0 : index
    %c0_119 = arith.constant 0 : index
    %c0_120 = arith.constant 0 : index
    %107 = vector.load %arg11[%c0_118, %c0_119, %c0_120] : memref<10x10x16xf32, #tpu.memory_space<vmem>>, vector<8x8x16xf32>
    %108 = vector.shape_cast %107 : vector<8x8x16xf32> to vector<64x16xf32>
    %c0_121 = arith.constant 0 : index
    %c0_122 = arith.constant 0 : index
    %109 = vector.load %arg12[%c0_121, %c0_122] : memref<64x144xf32, #tpu.memory_space<vmem>>, vector<64x16xf32>
    tpu.vector_store %arg12[%c0_121, %c0_122], %108 {strides = array<i32>} : memref<64x144xf32, #tpu.memory_space<vmem>>, vector<64x16xf32>,
    %c0_123 = arith.constant 0 : index
    %c1_124 = arith.constant 1 : index
    %c0_125 = arith.constant 0 : index
    %110 = vector.load %arg11[%c0_123, %c1_124, %c0_125] : memref<10x10x16xf32, #tpu.memory_space<vmem>>, vector<8x8x16xf32>
    %111 = vector.shape_cast %110 : vector<8x8x16xf32> to vector<64x16xf32>
    %c0_126 = arith.constant 0 : index
    %c16 = arith.constant 16 : index
    %112 = vector.load %arg12[%c0_126, %c16] : memref<64x144xf32, #tpu.memory_space<vmem>>, vector<64x16xf32>
    tpu.vector_store %arg12[%c0_126, %c16], %111 {strides = array<i32>} : memref<64x144xf32, #tpu.memory_space<vmem>>, vector<64x16xf32>,
    %c0_127 = arith.constant 0 : index
    %c2_128 = arith.constant 2 : index
    %c0_129 = arith.constant 0 : index
    %113 = vector.load %arg11[%c0_127, %c2_128, %c0_129] : memref<10x10x16xf32, #tpu.memory_space<vmem>>, vector<8x8x16xf32>
    %114 = vector.shape_cast %113 : vector<8x8x16xf32> to vector<64x16xf32>
    %c0_130 = arith.constant 0 : index
    %c32 = arith.constant 32 : index
    %115 = vector.load %arg12[%c0_130, %c32] : memref<64x144xf32, #tpu.memory_space<vmem>>, vector<64x16xf32>
    tpu.vector_store %arg12[%c0_130, %c32], %114 {strides = array<i32>} : memref<64x144xf32, #tpu.memory_space<vmem>>, vector<64x16xf32>,
    %c1_131 = arith.constant 1 : index
    %c0_132 = arith.constant 0 : index
    %c0_133 = arith.constant 0 : index
    %116 = vector.load %arg11[%c1_131, %c0_132, %c0_133] : memref<10x10x16xf32, #tpu.memory_space<vmem>>, vector<8x8x16xf32>
    %117 = vector.shape_cast %116 : vector<8x8x16xf32> to vector<64x16xf32>
    %c0_134 = arith.constant 0 : index
    %c48 = arith.constant 48 : index
    %118 = vector.load %arg12[%c0_134, %c48] : memref<64x144xf32, #tpu.memory_space<vmem>>, vector<64x16xf32>
    tpu.vector_store %arg12[%c0_134, %c48], %117 {strides = array<i32>} : memref<64x144xf32, #tpu.memory_space<vmem>>, vector<64x16xf32>,
    %c1_135 = arith.constant 1 : index
    %c1_136 = arith.constant 1 : index
    %c0_137 = arith.constant 0 : index
    %119 = vector.load %arg11[%c1_135, %c1_136, %c0_137] : memref<10x10x16xf32, #tpu.memory_space<vmem>>, vector<8x8x16xf32>
    %120 = vector.shape_cast %119 : vector<8x8x16xf32> to vector<64x16xf32>
    %c0_138 = arith.constant 0 : index
    %c64 = arith.constant 64 : index
    %121 = vector.load %arg12[%c0_138, %c64] : memref<64x144xf32, #tpu.memory_space<vmem>>, vector<64x16xf32>
    tpu.vector_store %arg12[%c0_138, %c64], %120 {strides = array<i32>} : memref<64x144xf32, #tpu.memory_space<vmem>>, vector<64x16xf32>,
    %c1_139 = arith.constant 1 : index
    %c2_140 = arith.constant 2 : index
    %c0_141 = arith.constant 0 : index
    %122 = vector.load %arg11[%c1_139, %c2_140, %c0_141] : memref<10x10x16xf32, #tpu.memory_space<vmem>>, vector<8x8x16xf32>
    %123 = vector.shape_cast %122 : vector<8x8x16xf32> to vector<64x16xf32>
    %c0_142 = arith.constant 0 : index
    %c80 = arith.constant 80 : index
    %124 = vector.load %arg12[%c0_142, %c80] : memref<64x144xf32, #tpu.memory_space<vmem>>, vector<64x16xf32>
    tpu.vector_store %arg12[%c0_142, %c80], %123 {strides = array<i32>} : memref<64x144xf32, #tpu.memory_space<vmem>>, vector<64x16xf32>,
    %c2_143 = arith.constant 2 : index
    %c0_144 = arith.constant 0 : index
    %c0_145 = arith.constant 0 : index
    %125 = vector.load %arg11[%c2_143, %c0_144, %c0_145] : memref<10x10x16xf32, #tpu.memory_space<vmem>>, vector<8x8x16xf32>
    %126 = vector.shape_cast %125 : vector<8x8x16xf32> to vector<64x16xf32>
    %c0_146 = arith.constant 0 : index
    %c96 = arith.constant 96 : index
    %127 = vector.load %arg12[%c0_146, %c96] : memref<64x144xf32, #tpu.memory_space<vmem>>, vector<64x16xf32>
    tpu.vector_store %arg12[%c0_146, %c96], %126 {strides = array<i32>} : memref<64x144xf32, #tpu.memory_space<vmem>>, vector<64x16xf32>,
    %c2_147 = arith.constant 2 : index
    %c1_148 = arith.constant 1 : index
    %c0_149 = arith.constant 0 : index
    %128 = vector.load %arg11[%c2_147, %c1_148, %c0_149] : memref<10x10x16xf32, #tpu.memory_space<vmem>>, vector<8x8x16xf32>
    %129 = vector.shape_cast %128 : vector<8x8x16xf32> to vector<64x16xf32>
    %c0_150 = arith.constant 0 : index
    %c112 = arith.constant 112 : index
    %130 = vector.load %arg12[%c0_150, %c112] : memref<64x144xf32, #tpu.memory_space<vmem>>, vector<64x16xf32>
    tpu.vector_store %arg12[%c0_150, %c112], %129 {strides = array<i32>} : memref<64x144xf32, #tpu.memory_space<vmem>>, vector<64x16xf32>,
    %c2_151 = arith.constant 2 : index
    %c2_152 = arith.constant 2 : index
    %c0_153 = arith.constant 0 : index
    %131 = vector.load %arg11[%c2_151, %c2_152, %c0_153] : memref<10x10x16xf32, #tpu.memory_space<vmem>>, vector<8x8x16xf32>
    %132 = vector.shape_cast %131 : vector<8x8x16xf32> to vector<64x16xf32>
    %c0_154 = arith.constant 0 : index
    %c128 = arith.constant 128 : index
    %133 = vector.load %arg12[%c0_154, %c128] : memref<64x144xf32, #tpu.memory_space<vmem>>, vector<64x16xf32>
    tpu.vector_store %arg12[%c0_154, %c128], %132 {strides = array<i32>} : memref<64x144xf32, #tpu.memory_space<vmem>>, vector<64x16xf32>,
    %c0_155 = arith.constant 0 : index
    %c0_156 = arith.constant 0 : index
    %134 = vector.load %arg12[%c0_155, %c0_156] : memref<64x144xf32, #tpu.memory_space<vmem>>, vector<64x144xf32>
    %c0_157 = arith.constant 0 : index
    %c0_158 = arith.constant 0 : index
    %135 = vector.load %arg4[%c0_157, %c0_158] : memref<144x32xf32, #tpu.memory_space<vmem>>, vector<144x32xf32>
    %cst_159 = arith.constant dense<0.000000e+00> : vector<64x32xf32>
    %136 = tpu.matmul %134, %135, %cst_159 {dimension_numbers = #tpu.dot_dimension_numbers<[1], [0], [0], [1], [0, 0, 1, 1], [], []>} : vector<64x144xf32>, vector<144x32xf32>, vector<64x32xf32> -> vector<64x32xf32>
    %c0_160 = arith.constant 0 : index
    %c0_161 = arith.constant 0 : index
    %137 = vector.load %arg5[%c0_160, %c0_161] : memref<1x32xf32, #tpu.memory_space<vmem>>, vector<1x32xf32>
    %138 = vector.broadcast %137 : vector<1x32xf32> to vector<64x32xf32>
    %139 = arith.addf %136, %138 : vector<64x32xf32>
    %cst_162 = arith.constant 0.000000e+00 : f32
    %140 = vector.broadcast %cst_162 : f32 to vector<64x32xf32>
    %141 = arith.maximumf %139, %140 : vector<64x32xf32>
    %142 = vector.shape_cast %141 : vector<64x32xf32> to vector<8x8x32xf32>
    %c0_163 = arith.constant 0 : index
    %c0_164 = arith.constant 0 : index
    %c0_165 = arith.constant 0 : index
    %143 = vector.load %arg13[%c0_163, %c0_164, %c0_165] : memref<8x8x32xf32, #tpu.memory_space<vmem>>, vector<8x8x32xf32>
    tpu.vector_store %arg13[%c0_163, %c0_164, %c0_165], %142 {strides = array<i32>} : memref<8x8x32xf32, #tpu.memory_space<vmem>>, vector<8x8x32xf32>,
    %cst_166 = arith.constant 0.000000e+00 : f32
    %144 = vector.broadcast %cst_166 : f32 to vector<1x6x32xf32>
    %c0_167 = arith.constant 0 : index
    %c0_168 = arith.constant 0 : index
    %c0_169 = arith.constant 0 : index
    %145 = vector.load %arg14[%c0_167, %c0_168, %c0_169] : memref<6x6x32xf32, #tpu.memory_space<vmem>>, vector<1x6x32xf32>
    tpu.vector_store %arg14[%c0_167, %c0_168, %c0_169], %144 {strides = array<i32>} : memref<6x6x32xf32, #tpu.memory_space<vmem>>, vector<1x6x32xf32>,
    %cst_170 = arith.constant 0.000000e+00 : f32
    %146 = vector.broadcast %cst_170 : f32 to vector<1x6x32xf32>
    %c5 = arith.constant 5 : index
    %c0_171 = arith.constant 0 : index
    %c0_172 = arith.constant 0 : index
    %147 = vector.load %arg14[%c5, %c0_171, %c0_172] : memref<6x6x32xf32, #tpu.memory_space<vmem>>, vector<1x6x32xf32>
    tpu.vector_store %arg14[%c5, %c0_171, %c0_172], %146 {strides = array<i32>} : memref<6x6x32xf32, #tpu.memory_space<vmem>>, vector<1x6x32xf32>,
    %cst_173 = arith.constant 0.000000e+00 : f32
    %148 = vector.broadcast %cst_173 : f32 to vector<4x1x32xf32>
    %c1_174 = arith.constant 1 : index
    %c0_175 = arith.constant 0 : index
    %c0_176 = arith.constant 0 : index
    %149 = vector.load %arg14[%c1_174, %c0_175, %c0_176] : memref<6x6x32xf32, #tpu.memory_space<vmem>>, vector<4x1x32xf32>
    tpu.vector_store %arg14[%c1_174, %c0_175, %c0_176], %148 {strides = array<i32>} : memref<6x6x32xf32, #tpu.memory_space<vmem>>, vector<4x1x32xf32>,
    %cst_177 = arith.constant 0.000000e+00 : f32
    %150 = vector.broadcast %cst_177 : f32 to vector<4x1x32xf32>
    %c1_178 = arith.constant 1 : index
    %c5_179 = arith.constant 5 : index
    %c0_180 = arith.constant 0 : index
    %151 = vector.load %arg14[%c1_178, %c5_179, %c0_180] : memref<6x6x32xf32, #tpu.memory_space<vmem>>, vector<4x1x32xf32>
    tpu.vector_store %arg14[%c1_178, %c5_179, %c0_180], %150 {strides = array<i32>} : memref<6x6x32xf32, #tpu.memory_space<vmem>>, vector<4x1x32xf32>,
    %c0_181 = arith.constant 0 : index
    %c0_182 = arith.constant 0 : index
    %c0_183 = arith.constant 0 : index
    %152 = tpu.strided_load %arg13[%c0_181, %c0_182, %c0_183] {strides = array<i32: 2, 2, 1>} : memref<8x8x32xf32, #tpu.memory_space<vmem>>, vector<4x4x32xf32>
    %c0_184 = arith.constant 0 : index
    %c1_185 = arith.constant 1 : index
    %c0_186 = arith.constant 0 : index
    %153 = tpu.strided_load %arg13[%c0_184, %c1_185, %c0_186] {strides = array<i32: 2, 2, 1>} : memref<8x8x32xf32, #tpu.memory_space<vmem>>, vector<4x4x32xf32>
    %154 = arith.maximumf %152, %153 : vector<4x4x32xf32>
    %c1_187 = arith.constant 1 : index
    %c0_188 = arith.constant 0 : index
    %c0_189 = arith.constant 0 : index
    %155 = tpu.strided_load %arg13[%c1_187, %c0_188, %c0_189] {strides = array<i32: 2, 2, 1>} : memref<8x8x32xf32, #tpu.memory_space<vmem>>, vector<4x4x32xf32>
    %c1_190 = arith.constant 1 : index
    %c1_191 = arith.constant 1 : index
    %c0_192 = arith.constant 0 : index
    %156 = tpu.strided_load %arg13[%c1_190, %c1_191, %c0_192] {strides = array<i32: 2, 2, 1>} : memref<8x8x32xf32, #tpu.memory_space<vmem>>, vector<4x4x32xf32>
    %157 = arith.maximumf %155, %156 : vector<4x4x32xf32>
    %158 = arith.maximumf %154, %157 : vector<4x4x32xf32>
    %c1_193 = arith.constant 1 : index
    %c1_194 = arith.constant 1 : index
    %c0_195 = arith.constant 0 : index
    %159 = vector.load %arg14[%c1_193, %c1_194, %c0_195] : memref<6x6x32xf32, #tpu.memory_space<vmem>>, vector<4x4x32xf32>
    tpu.vector_store %arg14[%c1_193, %c1_194, %c0_195], %158 {strides = array<i32>} : memref<6x6x32xf32, #tpu.memory_space<vmem>>, vector<4x4x32xf32>,
    %c0_196 = arith.constant 0 : index
    %c0_197 = arith.constant 0 : index
    %c0_198 = arith.constant 0 : index
    %160 = vector.load %arg14[%c0_196, %c0_197, %c0_198] : memref<6x6x32xf32, #tpu.memory_space<vmem>>, vector<1x4x32xf32>
    %161 = vector.shape_cast %160 : vector<1x4x32xf32> to vector<4x32xf32>
    %c0_199 = arith.constant 0 : index
    %c0_200 = arith.constant 0 : index
    %162 = vector.load %arg15[%c0_199, %c0_200] : memref<16x288xf32, #tpu.memory_space<vmem>>, vector<4x32xf32>
    tpu.vector_store %arg15[%c0_199, %c0_200], %161 {strides = array<i32>} : memref<16x288xf32, #tpu.memory_space<vmem>>, vector<4x32xf32>,
    %c0_201 = arith.constant 0 : index
    %c1_202 = arith.constant 1 : index
    %c0_203 = arith.constant 0 : index
    %163 = vector.load %arg14[%c0_201, %c1_202, %c0_203] : memref<6x6x32xf32, #tpu.memory_space<vmem>>, vector<1x4x32xf32>
    %164 = vector.shape_cast %163 : vector<1x4x32xf32> to vector<4x32xf32>
    %c0_204 = arith.constant 0 : index
    %c32_205 = arith.constant 32 : index
    %165 = vector.load %arg15[%c0_204, %c32_205] : memref<16x288xf32, #tpu.memory_space<vmem>>, vector<4x32xf32>
    tpu.vector_store %arg15[%c0_204, %c32_205], %164 {strides = array<i32>} : memref<16x288xf32, #tpu.memory_space<vmem>>, vector<4x32xf32>,
    %c0_206 = arith.constant 0 : index
    %c2_207 = arith.constant 2 : index
    %c0_208 = arith.constant 0 : index
    %166 = vector.load %arg14[%c0_206, %c2_207, %c0_208] : memref<6x6x32xf32, #tpu.memory_space<vmem>>, vector<1x4x32xf32>
    %167 = vector.shape_cast %166 : vector<1x4x32xf32> to vector<4x32xf32>
    %c0_209 = arith.constant 0 : index
    %c64_210 = arith.constant 64 : index
    %168 = vector.load %arg15[%c0_209, %c64_210] : memref<16x288xf32, #tpu.memory_space<vmem>>, vector<4x32xf32>
    tpu.vector_store %arg15[%c0_209, %c64_210], %167 {strides = array<i32>} : memref<16x288xf32, #tpu.memory_space<vmem>>, vector<4x32xf32>,
    %c1_211 = arith.constant 1 : index
    %c0_212 = arith.constant 0 : index
    %c0_213 = arith.constant 0 : index
    %169 = vector.load %arg14[%c1_211, %c0_212, %c0_213] : memref<6x6x32xf32, #tpu.memory_space<vmem>>, vector<1x4x32xf32>
    %170 = vector.shape_cast %169 : vector<1x4x32xf32> to vector<4x32xf32>
    %c0_214 = arith.constant 0 : index
    %c96_215 = arith.constant 96 : index
    %171 = vector.load %arg15[%c0_214, %c96_215] : memref<16x288xf32, #tpu.memory_space<vmem>>, vector<4x32xf32>
    tpu.vector_store %arg15[%c0_214, %c96_215], %170 {strides = array<i32>} : memref<16x288xf32, #tpu.memory_space<vmem>>, vector<4x32xf32>,
    %c1_216 = arith.constant 1 : index
    %c1_217 = arith.constant 1 : index
    %c0_218 = arith.constant 0 : index
    %172 = vector.load %arg14[%c1_216, %c1_217, %c0_218] : memref<6x6x32xf32, #tpu.memory_space<vmem>>, vector<1x4x32xf32>
    %173 = vector.shape_cast %172 : vector<1x4x32xf32> to vector<4x32xf32>
    %c0_219 = arith.constant 0 : index
    %c128_220 = arith.constant 128 : index
    %174 = vector.load %arg15[%c0_219, %c128_220] : memref<16x288xf32, #tpu.memory_space<vmem>>, vector<4x32xf32>
    tpu.vector_store %arg15[%c0_219, %c128_220], %173 {strides = array<i32>} : memref<16x288xf32, #tpu.memory_space<vmem>>, vector<4x32xf32>,
    %c1_221 = arith.constant 1 : index
    %c2_222 = arith.constant 2 : index
    %c0_223 = arith.constant 0 : index
    %175 = vector.load %arg14[%c1_221, %c2_222, %c0_223] : memref<6x6x32xf32, #tpu.memory_space<vmem>>, vector<1x4x32xf32>
    %176 = vector.shape_cast %175 : vector<1x4x32xf32> to vector<4x32xf32>
    %c0_224 = arith.constant 0 : index
    %c160 = arith.constant 160 : index
    %177 = vector.load %arg15[%c0_224, %c160] : memref<16x288xf32, #tpu.memory_space<vmem>>, vector<4x32xf32>
    tpu.vector_store %arg15[%c0_224, %c160], %176 {strides = array<i32>} : memref<16x288xf32, #tpu.memory_space<vmem>>, vector<4x32xf32>,
    %c2_225 = arith.constant 2 : index
    %c0_226 = arith.constant 0 : index
    %c0_227 = arith.constant 0 : index
    %178 = vector.load %arg14[%c2_225, %c0_226, %c0_227] : memref<6x6x32xf32, #tpu.memory_space<vmem>>, vector<1x4x32xf32>
    %179 = vector.shape_cast %178 : vector<1x4x32xf32> to vector<4x32xf32>
    %c0_228 = arith.constant 0 : index
    %c192 = arith.constant 192 : index
    %180 = vector.load %arg15[%c0_228, %c192] : memref<16x288xf32, #tpu.memory_space<vmem>>, vector<4x32xf32>
    tpu.vector_store %arg15[%c0_228, %c192], %179 {strides = array<i32>} : memref<16x288xf32, #tpu.memory_space<vmem>>, vector<4x32xf32>,
    %c2_229 = arith.constant 2 : index
    %c1_230 = arith.constant 1 : index
    %c0_231 = arith.constant 0 : index
    %181 = vector.load %arg14[%c2_229, %c1_230, %c0_231] : memref<6x6x32xf32, #tpu.memory_space<vmem>>, vector<1x4x32xf32>
    %182 = vector.shape_cast %181 : vector<1x4x32xf32> to vector<4x32xf32>
    %c0_232 = arith.constant 0 : index
    %c224 = arith.constant 224 : index
    %183 = vector.load %arg15[%c0_232, %c224] : memref<16x288xf32, #tpu.memory_space<vmem>>, vector<4x32xf32>
    tpu.vector_store %arg15[%c0_232, %c224], %182 {strides = array<i32>} : memref<16x288xf32, #tpu.memory_space<vmem>>, vector<4x32xf32>,
    %c2_233 = arith.constant 2 : index
    %c2_234 = arith.constant 2 : index
    %c0_235 = arith.constant 0 : index
    %184 = vector.load %arg14[%c2_233, %c2_234, %c0_235] : memref<6x6x32xf32, #tpu.memory_space<vmem>>, vector<1x4x32xf32>
    %185 = vector.shape_cast %184 : vector<1x4x32xf32> to vector<4x32xf32>
    %c0_236 = arith.constant 0 : index
    %c256 = arith.constant 256 : index
    %186 = vector.load %arg15[%c0_236, %c256] : memref<16x288xf32, #tpu.memory_space<vmem>>, vector<4x32xf32>
    tpu.vector_store %arg15[%c0_236, %c256], %185 {strides = array<i32>} : memref<16x288xf32, #tpu.memory_space<vmem>>, vector<4x32xf32>,
    %c1_237 = arith.constant 1 : index
    %c0_238 = arith.constant 0 : index
    %c0_239 = arith.constant 0 : index
    %187 = vector.load %arg14[%c1_237, %c0_238, %c0_239] : memref<6x6x32xf32, #tpu.memory_space<vmem>>, vector<1x4x32xf32>
    %188 = vector.shape_cast %187 : vector<1x4x32xf32> to vector<4x32xf32>
    %c4 = arith.constant 4 : index
    %c0_240 = arith.constant 0 : index
    %189 = vector.load %arg15[%c4, %c0_240] : memref<16x288xf32, #tpu.memory_space<vmem>>, vector<4x32xf32>
    tpu.vector_store %arg15[%c4, %c0_240], %188 {strides = array<i32>} : memref<16x288xf32, #tpu.memory_space<vmem>>, vector<4x32xf32>,
    %c1_241 = arith.constant 1 : index
    %c1_242 = arith.constant 1 : index
    %c0_243 = arith.constant 0 : index
    %190 = vector.load %arg14[%c1_241, %c1_242, %c0_243] : memref<6x6x32xf32, #tpu.memory_space<vmem>>, vector<1x4x32xf32>
    %191 = vector.shape_cast %190 : vector<1x4x32xf32> to vector<4x32xf32>
    %c4_244 = arith.constant 4 : index
    %c32_245 = arith.constant 32 : index
    %192 = vector.load %arg15[%c4_244, %c32_245] : memref<16x288xf32, #tpu.memory_space<vmem>>, vector<4x32xf32>
    tpu.vector_store %arg15[%c4_244, %c32_245], %191 {strides = array<i32>} : memref<16x288xf32, #tpu.memory_space<vmem>>, vector<4x32xf32>,
    %c1_246 = arith.constant 1 : index
    %c2_247 = arith.constant 2 : index
    %c0_248 = arith.constant 0 : index
    %193 = vector.load %arg14[%c1_246, %c2_247, %c0_248] : memref<6x6x32xf32, #tpu.memory_space<vmem>>, vector<1x4x32xf32>
    %194 = vector.shape_cast %193 : vector<1x4x32xf32> to vector<4x32xf32>
    %c4_249 = arith.constant 4 : index
    %c64_250 = arith.constant 64 : index
    %195 = vector.load %arg15[%c4_249, %c64_250] : memref<16x288xf32, #tpu.memory_space<vmem>>, vector<4x32xf32>
    tpu.vector_store %arg15[%c4_249, %c64_250], %194 {strides = array<i32>} : memref<16x288xf32, #tpu.memory_space<vmem>>, vector<4x32xf32>,
    %c2_251 = arith.constant 2 : index
    %c0_252 = arith.constant 0 : index
    %c0_253 = arith.constant 0 : index
    %196 = vector.load %arg14[%c2_251, %c0_252, %c0_253] : memref<6x6x32xf32, #tpu.memory_space<vmem>>, vector<1x4x32xf32>
    %197 = vector.shape_cast %196 : vector<1x4x32xf32> to vector<4x32xf32>
    %c4_254 = arith.constant 4 : index
    %c96_255 = arith.constant 96 : index
    %198 = vector.load %arg15[%c4_254, %c96_255] : memref<16x288xf32, #tpu.memory_space<vmem>>, vector<4x32xf32>
    tpu.vector_store %arg15[%c4_254, %c96_255], %197 {strides = array<i32>} : memref<16x288xf32, #tpu.memory_space<vmem>>, vector<4x32xf32>,
    %c2_256 = arith.constant 2 : index
    %c1_257 = arith.constant 1 : index
    %c0_258 = arith.constant 0 : index
    %199 = vector.load %arg14[%c2_256, %c1_257, %c0_258] : memref<6x6x32xf32, #tpu.memory_space<vmem>>, vector<1x4x32xf32>
    %200 = vector.shape_cast %199 : vector<1x4x32xf32> to vector<4x32xf32>
    %c4_259 = arith.constant 4 : index
    %c128_260 = arith.constant 128 : index
    %201 = vector.load %arg15[%c4_259, %c128_260] : memref<16x288xf32, #tpu.memory_space<vmem>>, vector<4x32xf32>
    tpu.vector_store %arg15[%c4_259, %c128_260], %200 {strides = array<i32>} : memref<16x288xf32, #tpu.memory_space<vmem>>, vector<4x32xf32>,
    %c2_261 = arith.constant 2 : index
    %c2_262 = arith.constant 2 : index
    %c0_263 = arith.constant 0 : index
    %202 = vector.load %arg14[%c2_261, %c2_262, %c0_263] : memref<6x6x32xf32, #tpu.memory_space<vmem>>, vector<1x4x32xf32>
    %203 = vector.shape_cast %202 : vector<1x4x32xf32> to vector<4x32xf32>
    %c4_264 = arith.constant 4 : index
    %c160_265 = arith.constant 160 : index
    %204 = vector.load %arg15[%c4_264, %c160_265] : memref<16x288xf32, #tpu.memory_space<vmem>>, vector<4x32xf32>
    tpu.vector_store %arg15[%c4_264, %c160_265], %203 {strides = array<i32>} : memref<16x288xf32, #tpu.memory_space<vmem>>, vector<4x32xf32>,
    %c3 = arith.constant 3 : index
    %c0_266 = arith.constant 0 : index
    %c0_267 = arith.constant 0 : index
    %205 = vector.load %arg14[%c3, %c0_266, %c0_267] : memref<6x6x32xf32, #tpu.memory_space<vmem>>, vector<1x4x32xf32>
    %206 = vector.shape_cast %205 : vector<1x4x32xf32> to vector<4x32xf32>
    %c4_268 = arith.constant 4 : index
    %c192_269 = arith.constant 192 : index
    %207 = vector.load %arg15[%c4_268, %c192_269] : memref<16x288xf32, #tpu.memory_space<vmem>>, vector<4x32xf32>
    tpu.vector_store %arg15[%c4_268, %c192_269], %206 {strides = array<i32>} : memref<16x288xf32, #tpu.memory_space<vmem>>, vector<4x32xf32>,
    %c3_270 = arith.constant 3 : index
    %c1_271 = arith.constant 1 : index
    %c0_272 = arith.constant 0 : index
    %208 = vector.load %arg14[%c3_270, %c1_271, %c0_272] : memref<6x6x32xf32, #tpu.memory_space<vmem>>, vector<1x4x32xf32>
    %209 = vector.shape_cast %208 : vector<1x4x32xf32> to vector<4x32xf32>
    %c4_273 = arith.constant 4 : index
    %c224_274 = arith.constant 224 : index
    %210 = vector.load %arg15[%c4_273, %c224_274] : memref<16x288xf32, #tpu.memory_space<vmem>>, vector<4x32xf32>
    tpu.vector_store %arg15[%c4_273, %c224_274], %209 {strides = array<i32>} : memref<16x288xf32, #tpu.memory_space<vmem>>, vector<4x32xf32>,
    %c3_275 = arith.constant 3 : index
    %c2_276 = arith.constant 2 : index
    %c0_277 = arith.constant 0 : index
    %211 = vector.load %arg14[%c3_275, %c2_276, %c0_277] : memref<6x6x32xf32, #tpu.memory_space<vmem>>, vector<1x4x32xf32>
    %212 = vector.shape_cast %211 : vector<1x4x32xf32> to vector<4x32xf32>
    %c4_278 = arith.constant 4 : index
    %c256_279 = arith.constant 256 : index
    %213 = vector.load %arg15[%c4_278, %c256_279] : memref<16x288xf32, #tpu.memory_space<vmem>>, vector<4x32xf32>
    tpu.vector_store %arg15[%c4_278, %c256_279], %212 {strides = array<i32>} : memref<16x288xf32, #tpu.memory_space<vmem>>, vector<4x32xf32>,
    %c2_280 = arith.constant 2 : index
    %c0_281 = arith.constant 0 : index
    %c0_282 = arith.constant 0 : index
    %214 = vector.load %arg14[%c2_280, %c0_281, %c0_282] : memref<6x6x32xf32, #tpu.memory_space<vmem>>, vector<1x4x32xf32>
    %215 = vector.shape_cast %214 : vector<1x4x32xf32> to vector<4x32xf32>
    %c8 = arith.constant 8 : index
    %c0_283 = arith.constant 0 : index
    %216 = vector.load %arg15[%c8, %c0_283] : memref<16x288xf32, #tpu.memory_space<vmem>>, vector<4x32xf32>
    tpu.vector_store %arg15[%c8, %c0_283], %215 {strides = array<i32>} : memref<16x288xf32, #tpu.memory_space<vmem>>, vector<4x32xf32>,
    %c2_284 = arith.constant 2 : index
    %c1_285 = arith.constant 1 : index
    %c0_286 = arith.constant 0 : index
    %217 = vector.load %arg14[%c2_284, %c1_285, %c0_286] : memref<6x6x32xf32, #tpu.memory_space<vmem>>, vector<1x4x32xf32>
    %218 = vector.shape_cast %217 : vector<1x4x32xf32> to vector<4x32xf32>
    %c8_287 = arith.constant 8 : index
    %c32_288 = arith.constant 32 : index
    %219 = vector.load %arg15[%c8_287, %c32_288] : memref<16x288xf32, #tpu.memory_space<vmem>>, vector<4x32xf32>
    tpu.vector_store %arg15[%c8_287, %c32_288], %218 {strides = array<i32>} : memref<16x288xf32, #tpu.memory_space<vmem>>, vector<4x32xf32>,
    %c2_289 = arith.constant 2 : index
    %c2_290 = arith.constant 2 : index
    %c0_291 = arith.constant 0 : index
    %220 = vector.load %arg14[%c2_289, %c2_290, %c0_291] : memref<6x6x32xf32, #tpu.memory_space<vmem>>, vector<1x4x32xf32>
    %221 = vector.shape_cast %220 : vector<1x4x32xf32> to vector<4x32xf32>
    %c8_292 = arith.constant 8 : index
    %c64_293 = arith.constant 64 : index
    %222 = vector.load %arg15[%c8_292, %c64_293] : memref<16x288xf32, #tpu.memory_space<vmem>>, vector<4x32xf32>
    tpu.vector_store %arg15[%c8_292, %c64_293], %221 {strides = array<i32>} : memref<16x288xf32, #tpu.memory_space<vmem>>, vector<4x32xf32>,
    %c3_294 = arith.constant 3 : index
    %c0_295 = arith.constant 0 : index
    %c0_296 = arith.constant 0 : index
    %223 = vector.load %arg14[%c3_294, %c0_295, %c0_296] : memref<6x6x32xf32, #tpu.memory_space<vmem>>, vector<1x4x32xf32>
    %224 = vector.shape_cast %223 : vector<1x4x32xf32> to vector<4x32xf32>
    %c8_297 = arith.constant 8 : index
    %c96_298 = arith.constant 96 : index
    %225 = vector.load %arg15[%c8_297, %c96_298] : memref<16x288xf32, #tpu.memory_space<vmem>>, vector<4x32xf32>
    tpu.vector_store %arg15[%c8_297, %c96_298], %224 {strides = array<i32>} : memref<16x288xf32, #tpu.memory_space<vmem>>, vector<4x32xf32>,
    %c3_299 = arith.constant 3 : index
    %c1_300 = arith.constant 1 : index
    %c0_301 = arith.constant 0 : index
    %226 = vector.load %arg14[%c3_299, %c1_300, %c0_301] : memref<6x6x32xf32, #tpu.memory_space<vmem>>, vector<1x4x32xf32>
    %227 = vector.shape_cast %226 : vector<1x4x32xf32> to vector<4x32xf32>
    %c8_302 = arith.constant 8 : index
    %c128_303 = arith.constant 128 : index
    %228 = vector.load %arg15[%c8_302, %c128_303] : memref<16x288xf32, #tpu.memory_space<vmem>>, vector<4x32xf32>
    tpu.vector_store %arg15[%c8_302, %c128_303], %227 {strides = array<i32>} : memref<16x288xf32, #tpu.memory_space<vmem>>, vector<4x32xf32>,
    %c3_304 = arith.constant 3 : index
    %c2_305 = arith.constant 2 : index
    %c0_306 = arith.constant 0 : index
    %229 = vector.load %arg14[%c3_304, %c2_305, %c0_306] : memref<6x6x32xf32, #tpu.memory_space<vmem>>, vector<1x4x32xf32>
    %230 = vector.shape_cast %229 : vector<1x4x32xf32> to vector<4x32xf32>
    %c8_307 = arith.constant 8 : index
    %c160_308 = arith.constant 160 : index
    %231 = vector.load %arg15[%c8_307, %c160_308] : memref<16x288xf32, #tpu.memory_space<vmem>>, vector<4x32xf32>
    tpu.vector_store %arg15[%c8_307, %c160_308], %230 {strides = array<i32>} : memref<16x288xf32, #tpu.memory_space<vmem>>, vector<4x32xf32>,
    %c4_309 = arith.constant 4 : index
    %c0_310 = arith.constant 0 : index
    %c0_311 = arith.constant 0 : index
    %232 = vector.load %arg14[%c4_309, %c0_310, %c0_311] : memref<6x6x32xf32, #tpu.memory_space<vmem>>, vector<1x4x32xf32>
    %233 = vector.shape_cast %232 : vector<1x4x32xf32> to vector<4x32xf32>
    %c8_312 = arith.constant 8 : index
    %c192_313 = arith.constant 192 : index
    %234 = vector.load %arg15[%c8_312, %c192_313] : memref<16x288xf32, #tpu.memory_space<vmem>>, vector<4x32xf32>
    tpu.vector_store %arg15[%c8_312, %c192_313], %233 {strides = array<i32>} : memref<16x288xf32, #tpu.memory_space<vmem>>, vector<4x32xf32>,
    %c4_314 = arith.constant 4 : index
    %c1_315 = arith.constant 1 : index
    %c0_316 = arith.constant 0 : index
    %235 = vector.load %arg14[%c4_314, %c1_315, %c0_316] : memref<6x6x32xf32, #tpu.memory_space<vmem>>, vector<1x4x32xf32>
    %236 = vector.shape_cast %235 : vector<1x4x32xf32> to vector<4x32xf32>
    %c8_317 = arith.constant 8 : index
    %c224_318 = arith.constant 224 : index
    %237 = vector.load %arg15[%c8_317, %c224_318] : memref<16x288xf32, #tpu.memory_space<vmem>>, vector<4x32xf32>
    tpu.vector_store %arg15[%c8_317, %c224_318], %236 {strides = array<i32>} : memref<16x288xf32, #tpu.memory_space<vmem>>, vector<4x32xf32>,
    %c4_319 = arith.constant 4 : index
    %c2_320 = arith.constant 2 : index
    %c0_321 = arith.constant 0 : index
    %238 = vector.load %arg14[%c4_319, %c2_320, %c0_321] : memref<6x6x32xf32, #tpu.memory_space<vmem>>, vector<1x4x32xf32>
    %239 = vector.shape_cast %238 : vector<1x4x32xf32> to vector<4x32xf32>
    %c8_322 = arith.constant 8 : index
    %c256_323 = arith.constant 256 : index
    %240 = vector.load %arg15[%c8_322, %c256_323] : memref<16x288xf32, #tpu.memory_space<vmem>>, vector<4x32xf32>
    tpu.vector_store %arg15[%c8_322, %c256_323], %239 {strides = array<i32>} : memref<16x288xf32, #tpu.memory_space<vmem>>, vector<4x32xf32>,
    %c3_324 = arith.constant 3 : index
    %c0_325 = arith.constant 0 : index
    %c0_326 = arith.constant 0 : index
    %241 = vector.load %arg14[%c3_324, %c0_325, %c0_326] : memref<6x6x32xf32, #tpu.memory_space<vmem>>, vector<1x4x32xf32>
    %242 = vector.shape_cast %241 : vector<1x4x32xf32> to vector<4x32xf32>
    %c12 = arith.constant 12 : index
    %c0_327 = arith.constant 0 : index
    %243 = vector.load %arg15[%c12, %c0_327] : memref<16x288xf32, #tpu.memory_space<vmem>>, vector<4x32xf32>
    tpu.vector_store %arg15[%c12, %c0_327], %242 {strides = array<i32>} : memref<16x288xf32, #tpu.memory_space<vmem>>, vector<4x32xf32>,
    %c3_328 = arith.constant 3 : index
    %c1_329 = arith.constant 1 : index
    %c0_330 = arith.constant 0 : index
    %244 = vector.load %arg14[%c3_328, %c1_329, %c0_330] : memref<6x6x32xf32, #tpu.memory_space<vmem>>, vector<1x4x32xf32>
    %245 = vector.shape_cast %244 : vector<1x4x32xf32> to vector<4x32xf32>
    %c12_331 = arith.constant 12 : index
    %c32_332 = arith.constant 32 : index
    %246 = vector.load %arg15[%c12_331, %c32_332] : memref<16x288xf32, #tpu.memory_space<vmem>>, vector<4x32xf32>
    tpu.vector_store %arg15[%c12_331, %c32_332], %245 {strides = array<i32>} : memref<16x288xf32, #tpu.memory_space<vmem>>, vector<4x32xf32>,
    %c3_333 = arith.constant 3 : index
    %c2_334 = arith.constant 2 : index
    %c0_335 = arith.constant 0 : index
    %247 = vector.load %arg14[%c3_333, %c2_334, %c0_335] : memref<6x6x32xf32, #tpu.memory_space<vmem>>, vector<1x4x32xf32>
    %248 = vector.shape_cast %247 : vector<1x4x32xf32> to vector<4x32xf32>
    %c12_336 = arith.constant 12 : index
    %c64_337 = arith.constant 64 : index
    %249 = vector.load %arg15[%c12_336, %c64_337] : memref<16x288xf32, #tpu.memory_space<vmem>>, vector<4x32xf32>
    tpu.vector_store %arg15[%c12_336, %c64_337], %248 {strides = array<i32>} : memref<16x288xf32, #tpu.memory_space<vmem>>, vector<4x32xf32>,
    %c4_338 = arith.constant 4 : index
    %c0_339 = arith.constant 0 : index
    %c0_340 = arith.constant 0 : index
    %250 = vector.load %arg14[%c4_338, %c0_339, %c0_340] : memref<6x6x32xf32, #tpu.memory_space<vmem>>, vector<1x4x32xf32>
    %251 = vector.shape_cast %250 : vector<1x4x32xf32> to vector<4x32xf32>
    %c12_341 = arith.constant 12 : index
    %c96_342 = arith.constant 96 : index
    %252 = vector.load %arg15[%c12_341, %c96_342] : memref<16x288xf32, #tpu.memory_space<vmem>>, vector<4x32xf32>
    tpu.vector_store %arg15[%c12_341, %c96_342], %251 {strides = array<i32>} : memref<16x288xf32, #tpu.memory_space<vmem>>, vector<4x32xf32>,
    %c4_343 = arith.constant 4 : index
    %c1_344 = arith.constant 1 : index
    %c0_345 = arith.constant 0 : index
    %253 = vector.load %arg14[%c4_343, %c1_344, %c0_345] : memref<6x6x32xf32, #tpu.memory_space<vmem>>, vector<1x4x32xf32>
    %254 = vector.shape_cast %253 : vector<1x4x32xf32> to vector<4x32xf32>
    %c12_346 = arith.constant 12 : index
    %c128_347 = arith.constant 128 : index
    %255 = vector.load %arg15[%c12_346, %c128_347] : memref<16x288xf32, #tpu.memory_space<vmem>>, vector<4x32xf32>
    tpu.vector_store %arg15[%c12_346, %c128_347], %254 {strides = array<i32>} : memref<16x288xf32, #tpu.memory_space<vmem>>, vector<4x32xf32>,
    %c4_348 = arith.constant 4 : index
    %c2_349 = arith.constant 2 : index
    %c0_350 = arith.constant 0 : index
    %256 = vector.load %arg14[%c4_348, %c2_349, %c0_350] : memref<6x6x32xf32, #tpu.memory_space<vmem>>, vector<1x4x32xf32>
    %257 = vector.shape_cast %256 : vector<1x4x32xf32> to vector<4x32xf32>
    %c12_351 = arith.constant 12 : index
    %c160_352 = arith.constant 160 : index
    %258 = vector.load %arg15[%c12_351, %c160_352] : memref<16x288xf32, #tpu.memory_space<vmem>>, vector<4x32xf32>
    tpu.vector_store %arg15[%c12_351, %c160_352], %257 {strides = array<i32>} : memref<16x288xf32, #tpu.memory_space<vmem>>, vector<4x32xf32>,
    %c5_353 = arith.constant 5 : index
    %c0_354 = arith.constant 0 : index
    %c0_355 = arith.constant 0 : index
    %259 = vector.load %arg14[%c5_353, %c0_354, %c0_355] : memref<6x6x32xf32, #tpu.memory_space<vmem>>, vector<1x4x32xf32>
    %260 = vector.shape_cast %259 : vector<1x4x32xf32> to vector<4x32xf32>
    %c12_356 = arith.constant 12 : index
    %c192_357 = arith.constant 192 : index
    %261 = vector.load %arg15[%c12_356, %c192_357] : memref<16x288xf32, #tpu.memory_space<vmem>>, vector<4x32xf32>
    tpu.vector_store %arg15[%c12_356, %c192_357], %260 {strides = array<i32>} : memref<16x288xf32, #tpu.memory_space<vmem>>, vector<4x32xf32>,
    %c5_358 = arith.constant 5 : index
    %c1_359 = arith.constant 1 : index
    %c0_360 = arith.constant 0 : index
    %262 = vector.load %arg14[%c5_358, %c1_359, %c0_360] : memref<6x6x32xf32, #tpu.memory_space<vmem>>, vector<1x4x32xf32>
    %263 = vector.shape_cast %262 : vector<1x4x32xf32> to vector<4x32xf32>
    %c12_361 = arith.constant 12 : index
    %c224_362 = arith.constant 224 : index
    %264 = vector.load %arg15[%c12_361, %c224_362] : memref<16x288xf32, #tpu.memory_space<vmem>>, vector<4x32xf32>
    tpu.vector_store %arg15[%c12_361, %c224_362], %263 {strides = array<i32>} : memref<16x288xf32, #tpu.memory_space<vmem>>, vector<4x32xf32>,
    %c5_363 = arith.constant 5 : index
    %c2_364 = arith.constant 2 : index
    %c0_365 = arith.constant 0 : index
    %265 = vector.load %arg14[%c5_363, %c2_364, %c0_365] : memref<6x6x32xf32, #tpu.memory_space<vmem>>, vector<1x4x32xf32>
    %266 = vector.shape_cast %265 : vector<1x4x32xf32> to vector<4x32xf32>
    %c12_366 = arith.constant 12 : index
    %c256_367 = arith.constant 256 : index
    %267 = vector.load %arg15[%c12_366, %c256_367] : memref<16x288xf32, #tpu.memory_space<vmem>>, vector<4x32xf32>
    tpu.vector_store %arg15[%c12_366, %c256_367], %266 {strides = array<i32>} : memref<16x288xf32, #tpu.memory_space<vmem>>, vector<4x32xf32>,
    %c0_368 = arith.constant 0 : index
    %c0_369 = arith.constant 0 : index
    %268 = vector.load %arg15[%c0_368, %c0_369] : memref<16x288xf32, #tpu.memory_space<vmem>>, vector<16x288xf32>
    %c0_370 = arith.constant 0 : index
    %c0_371 = arith.constant 0 : index
    %269 = vector.load %arg6[%c0_370, %c0_371] : memref<288x64xf32, #tpu.memory_space<vmem>>, vector<288x64xf32>
    %cst_372 = arith.constant dense<0.000000e+00> : vector<16x64xf32>
    %270 = tpu.matmul %268, %269, %cst_372 {dimension_numbers = #tpu.dot_dimension_numbers<[1], [0], [0], [1], [0, 0, 1, 1], [], []>} : vector<16x288xf32>, vector<288x64xf32>, vector<16x64xf32> -> vector<16x64xf32>
    %c0_373 = arith.constant 0 : index
    %c0_374 = arith.constant 0 : index
    %271 = vector.load %arg7[%c0_373, %c0_374] : memref<1x64xf32, #tpu.memory_space<vmem>>, vector<1x64xf32>
    %272 = vector.broadcast %271 : vector<1x64xf32> to vector<16x64xf32>
    %273 = arith.addf %270, %272 : vector<16x64xf32>
    %cst_375 = arith.constant 0.000000e+00 : f32
    %274 = vector.broadcast %cst_375 : f32 to vector<16x64xf32>
    %275 = arith.maximumf %273, %274 : vector<16x64xf32>
    %c0_376 = arith.constant 0 : index
    %c0_377 = arith.constant 0 : index
    %c0_378 = arith.constant 0 : index
    %276 = vector.load %arg8[%c0_376, %c0_377, %c0_378] : memref<1x16x64xf32, #tpu.memory_space<vmem>>, vector<1x16x64xf32>
    %277 = vector.shape_cast %276 : vector<1x16x64xf32> to vector<16x64xf32>
    %278 = vector.shape_cast %275 : vector<16x64xf32> to vector<1x16x64xf32>
    tpu.vector_store %arg8[%c0_376, %c0_377, %c0_378], %278 {strides = array<i32>} : memref<1x16x64xf32, #tpu.memory_space<vmem>>, vector<1x16x64xf32>,
    return
  }
  func.func @transform_0(%arg0: i32) -> (i32, i32, i32, i32) {
    %c0_i32 = arith.constant 0 : i32
    %c0_i32_0 = arith.constant 0 : i32
    %c0_i32_1 = arith.constant 0 : i32
    %c0_i32_2 = arith.constant 0 : i32
    return %arg0, %c0_i32, %c0_i32_0, %c0_i32_1 : i32, i32, i32, i32
  }
  func.func @transform_1(%arg0: i32) -> (i32, i32, i32, i32) {
    %c0_i32 = arith.constant 0 : i32
    %c0_i32_0 = arith.constant 0 : i32
    %c0_i32_1 = arith.constant 0 : i32
    %c0_i32_2 = arith.constant 0 : i32
    %c0_i32_3 = arith.constant 0 : i32
    return %c0_i32, %c0_i32_0, %c0_i32_1, %c0_i32_2 : i32, i32, i32, i32
  }
  func.func @transform_2(%arg0: i32) -> (i32, i32) {
    %c0_i32 = arith.constant 0 : i32
    %c0_i32_0 = arith.constant 0 : i32
    %c0_i32_1 = arith.constant 0 : i32
    return %c0_i32, %c0_i32_0 : i32, i32
  }
  func.func @transform_3(%arg0: i32) -> (i32, i32) {
    %c0_i32 = arith.constant 0 : i32
    %c0_i32_0 = arith.constant 0 : i32
    %c0_i32_1 = arith.constant 0 : i32
    return %c0_i32, %c0_i32_0 : i32, i32
  }
  func.func @transform_4(%arg0: i32) -> (i32, i32) {
    %c0_i32 = arith.constant 0 : i32
    %c0_i32_0 = arith.constant 0 : i32
    %c0_i32_1 = arith.constant 0 : i32
    return %c0_i32, %c0_i32_0 : i32, i32
  }
  func.func @transform_5(%arg0: i32) -> (i32, i32) {
    %c0_i32 = arith.constant 0 : i32
    %c0_i32_0 = arith.constant 0 : i32
    %c0_i32_1 = arith.constant 0 : i32
    return %c0_i32, %c0_i32_0 : i32, i32
  }
  func.func @transform_6(%arg0: i32) -> (i32, i32) {
    %c0_i32 = arith.constant 0 : i32
    %c0_i32_0 = arith.constant 0 : i32
    %c0_i32_1 = arith.constant 0 : i32
    return %c0_i32, %c0_i32_0 : i32, i32
  }
  func.func @transform_7(%arg0: i32) -> (i32, i32, i32) {
    %c0_i32 = arith.constant 0 : i32
    %c0_i32_0 = arith.constant 0 : i32
    %c0_i32_1 = arith.constant 0 : i32
    return %arg0, %c0_i32, %c0_i32_0 : i32, i32, i32
  }
}

</mosaic_0001>

<bundles_post_ra>
// kernel: simple_unet_forward.1
= control target key start
LH: loop header
LB: loop body
LE: loop exit
PB: predicated region body
PF: predicated region fallthrough
CT: control target
= control target key end

     0   :  { %12 = vsyncpa [#allocation10], 0  ;;  %s6598_s0 = inlined_call_operand.vmem [shape: f32[2,16,16,1], index: 0, kind: input, shape index: {}]   ;;  %s6599_s1 = inlined_call_operand.vmem [shape: f32[3,3,1,16], index: 1, kind: input, shape index: {}]   ;;  %s6600_s2 = inlined_call_operand.vmem [shape: f32[1,16], index: 2, kind: input, shape index: {}]   ;;  %s6601_s3 = inlined_call_operand.vmem [shape: f32[144,32], index: 3, kind: input, shape index: {}]   ;;  %s6602_s4 = inlined_call_operand.vmem [shape: f32[1,32], index: 4, kind: input, shape index: {}]   ;;  %s6603_s5 = inlined_call_operand.vmem [shape: f32[288,64], index: 5, kind: input, shape index: {}]   ;;  %s6604_s6 = inlined_call_operand.vmem [shape: f32[1,64], index: 6, kind: input, shape index: {}]   ;;  %s6605_s7 = inlined_call_operand.hbm [shape: f32[2,16,64], index: 7, kind: output, shape index: {}]  }
   0x1   :  { %14 = vsyncpa [#allocation10 + $0x1], 0  ;;  %s4208_s24 = smov 0   ;;  %s4210_s25 = smov 0  }
   0x2   :  { %s4212_s26 = smov 0   ;;  %s4214_s27 = smov 0  }
   0x3 LB: > { %s4229_s28 = sadd.s32 4294967295, %s4155_s27   ;;  %s3986_s29 = sadd.s32 4294967294, %s4155_s27   ;;  %s4155_s27 = sphi %s4214_s27, %s7138_s27   ;;  %s4151_s26 = sphi %s4212_s26, %s7137_s26   ;;  %s4147_s25 = sphi %s4210_s25, %s7136_s25   ;;  %s4143_s24 = sphi %s4208_s24, %s7135_s24  }
   0x4   : > { %s4233_s30 = sadd.s32 1, %s4155_s27   ;;  %s179_s8 = sadd.s32 1, %s4151_s26 }
   0x5   : > { %s176_s9 = ssub.s32 %s4155_s27, %s4233_s30  ;;  %p189_p0 = scmp.ne.s32.totalorder %s4151_s26, %s4147_s25 }
   0x6   : > { %p177_p1 = scmp.eq.s32.totalorder %s176_s9, 0  ;;  %p190_p2 = scmp.eq.s32.totalorder %s4229_s28, 1 }
   0x7   : > { %p195_p3 = scmp.ne.s32.totalorder %s4147_s25, %s4143_s24  ;;  %p196_p4 = scmp.eq.s32.totalorder %s3986_s29, 1 }
   0x8   : > { %s4244_s10 = scalar_select %p177_p1, %s4151_s26, %s179_s8  }
   0x9   : > { %p4246_p5 = por %p190_p2, %p189_p0  ;;  %p4250_p6 = por %p196_p4, %p195_p3 }
   0xa   : > { %p3989_p7 = scmp.ge.s32.totalorder %s4155_s27, 1  ;;  %p240_p8 = scmp.lt.s32.totalorder %s4155_s27, 3 }
   0xc   : > { %p241_p9 = pnand %p3989_p7, %p240_p8 }
   0xe   : > { %244 = sbr.rel (%p241_p9) target bundleno = 1568 (0x620), region = 48 }
  0x13   : > { %vm277_vm0 = vcmask 7168   ;;  %p272_p10 = scmp.lt.s32.totalorder %s4229_s28, 1  ;;  %v4157_v0 = vmov 0   ;;  %v6606_v1 = vmov 0.0   ;;  %vm287_vm1 = vcmask 0   ;;  %s4159_s29 = smov 16  }
  0x14   : > { %4068 = vset.pattern.permute.xlu0 %v4157_v0  ;;  %278 = vst.msk [vmem:[#allocation2] sm:$0xff] %vm277_vm0, %v6606_v1  ;;  %4070 = vset.pattern.permute.xlu2 %v4157_v0  ;;  %vm280_vm2 = vcmask 1024   ;;  %vm2801_vm3 = vcmask 130048   ;;  %vm2835_vm4 = vcmask 123904   ;;  %vm2841_vm5 = vcmask 122880   ;;  %s4160_s8 = smov 32  }
  0x15   : > { %279 = vst.msk [vmem:[#allocation2 + $0x8] sm:$0xff] %vm277_vm0, %v6606_v1  ;;  %4069 = vset.pattern.permute.xlu1 %v4157_v0  ;;  %s273_s13 = scalar_select %p272_p10, %s4229_s28, 1  ;;  %vm3009_vm6 = vcmask 261248   ;;  %vm3058_vm7 = vcmask 392448   ;;  %vm3107_vm8 = vcmask 523648   ;;  %vm3156_vm9 = vcmask 654848  }
  0x16   : > { %283 = vst.msk [vmem:[#allocation2 + $0x198] sm:$0xff] %vm277_vm0, %v6606_v1  ;;  %s4161_s16 = smov 80   ;;  %s4163_s18 = smov 48   ;;  %vm3205_vm10 = vcmask 786048   ;;  %vm3255_vm11 = vcmask 917248   ;;  %vm3304_vm12 = vcmask 1048448  }
  0x17   : > { %284 = vst.msk [vmem:[#allocation2 + $0x1a0] sm:$0xff] %vm277_vm0, %v6606_v1  ;;  %s4016_s14 = sshll.u32 %s273_s13, 8  ;;  %s4164_s19 = smov 112   ;;  %vm3490_vm13 = vcmask 259072   ;;  %vm3481_vm14 = vcmask 261120   ;;  %vm3495_vm15 = vcmask 253952  }
  0x18   : > { %s4269_s17 = scalar_lea.vmem %s6598_s0, %s4016_s14  ;;  %289 = vst.msk [vmem:[#allocation2 + $0x30] sm:$0x1] %vm287_vm1, %v6606_v1  ;;  %s4165_s20 = smov 96  }
  0x19   : > { %v322_v2 = vld [vmem:[%s4269_s17 + $0x10] sm:$0xff]  ;;  %288 = vst.msk [vmem:[#allocation2 + $0x18] sm:$0x1] %vm287_vm1, %v6606_v1  ;;  %v320_v6 = vld [vmem:[%s4269_s17] sm:$0xff]  ;;  %v323_v7 = vld [vmem:[%s4269_s17 + $0x18] sm:$0xff]  ;;  %s269_s23 = sand.u32 1, %s4147_s25  }
  0x1a   : > { %354 = vst.msk [vmem:[#allocation2 + $0x31] sm:$0xff] %vm277_vm0, %v322_v2  ;;  %v321_v8 = vld [vmem:[%s4269_s17 + $0x8] sm:$0xff]  ;;  %v324_v9 = vld [vmem:[%s4269_s17 + $0x20] sm:$0xff]  ;;  %v326_v10 = vld [vmem:[%s4269_s17 + $0x30] sm:$0xff]  ;;  %s3887_s14 = scalar_lea.sflag [#allocation10], %s269_s23 }
  0x1b   : > { %v384_v3 = vld [vmem:[#allocation2] sm:$0xff]  ;;  %290 = vst.msk [vmem:[#allocation2 + $0x48] sm:$0x1] %vm287_vm1, %v6606_v1  ;;  %v325_v11 = vld [vmem:[%s4269_s17 + $0x28] sm:$0xff]  ;;  %v327_v12 = vld [vmem:[%s4269_s17 + $0x38] sm:$0xff] }
  0x1c   : > { %419 = vperm.xlu0 %4068, %v384_v3   ;;  %291 = vst.msk [vmem:[#allocation2 + $0x60] sm:$0x1] %vm287_vm1, %v6606_v1  ;;  %v385_v5 = vld [vmem:[#allocation2 + $0x8] sm:$0xff]  ;;  %v328_v13 = vld [vmem:[%s4269_s17 + $0x40] sm:$0xff]  ;;  %v330_v15 = vld [vmem:[%s4269_s17 + $0x50] sm:$0xff] }
  0x1d   : > { %292 = vst.msk [vmem:[#allocation2 + $0x78] sm:$0x1] %vm287_vm1, %v6606_v1  ;;  %v329_v14 = vld [vmem:[%s4269_s17 + $0x48] sm:$0xff]  ;;  %v332_v17 = vld [vmem:[%s4269_s17 + $0x60] sm:$0xff]  ;;  %v331_v19 = vld [vmem:[%s4269_s17 + $0x58] sm:$0xff] }
  0x1e   : > { %293 = vst.msk [vmem:[#allocation2 + $0x90] sm:$0x1] %vm287_vm1, %v6606_v1  ;;  %v333_v20 = vld [vmem:[%s4269_s17 + $0x68] sm:$0xff]  ;;  %v334_v22 = vld [vmem:[%s4269_s17 + $0x70] sm:$0xff]  ;;  %v335_v23 = vld [vmem:[%s4269_s17 + $0x78] sm:$0xff] }
  0x1f   : > { %294 = vst.msk [vmem:[#allocation2 + $0xa8] sm:$0x1] %vm287_vm1, %v6606_v1  ;;  %v336_v24 = vld [vmem:[%s4269_s17 + $0x80] sm:$0xff]  ;;  %v338_v27 = vld [vmem:[%s4269_s17 + $0x90] sm:$0xff]  ;;  %v337_v28 = vld [vmem:[%s4269_s17 + $0x88] sm:$0xff] }
  0x20   : > { %295 = vst.msk [vmem:[#allocation2 + $0xc0] sm:$0x1] %vm287_vm1, %v6606_v1  ;;  %v339_v30 = vld [vmem:[%s4269_s17 + $0x98] sm:$0xff]  ;;  %v340_v33 = vld [vmem:[%s4269_s17 + $0xa0] sm:$0xff]  ;;  %v341_v34 = vld [vmem:[%s4269_s17 + $0xa8] sm:$0xff] }
  0x21   : > { %v4289_v4 = vld [vmem:[#allocation2 + $0x30] sm:$0xff]  ;;  %296 = vst.msk [vmem:[#allocation2 + $0xd8] sm:$0x1] %vm287_vm1, %v6606_v1  ;;  %v344_v39 = vld [vmem:[%s4269_s17 + $0xc0] sm:$0xff]  ;;  %v343_v40 = vld [vmem:[%s4269_s17 + $0xb8] sm:$0xff] }
  0x22   : > { %439 = vperm.xlu2 %4070, %v4289_v4   ;;  %297 = vst.msk [vmem:[#allocation2 + $0xf0] sm:$0x1] %vm287_vm1, %v6606_v1  ;;  %v342_v36 = vld [vmem:[%s4269_s17 + $0xb0] sm:$0xff]  ;;  %v345_v42 = vld [vmem:[%s4269_s17 + $0xc8] sm:$0xff]  ;;  %v347_v46 = vld [vmem:[%s4269_s17 + $0xd8] sm:$0xff] }
  0x23   : > { %298 = vst.msk [vmem:[#allocation2 + $0x108] sm:$0x1] %vm287_vm1, %v6606_v1  ;;  %v346_v45 = vld [vmem:[%s4269_s17 + $0xd0] sm:$0xff]  ;;  %v348_v48 = vld [vmem:[%s4269_s17 + $0xe0] sm:$0xff]  ;;  %v349_v51 = vld [vmem:[%s4269_s17 + $0xe8] sm:$0xff] }
  0x24   : > { %299 = vst.msk [vmem:[#allocation2 + $0x120] sm:$0x1] %vm287_vm1, %v6606_v1  ;;  %424 = vperm.xlu0 %4068, %v385_v5   ;;  %v644_v63 = vld [vmem:[#allocation2 + $0x1] sm:$0xff]  ;;  %v4489_v5 = vld [vmem:[#allocation2 + $0x31] sm:$0xff] }
  0x25   : > { %300 = vst.msk [vmem:[#allocation2 + $0x138] sm:$0x1] %vm287_vm1, %v6606_v1 }
  0x26   : > { %301 = vst.msk [vmem:[#allocation2 + $0x150] sm:$0x1] %vm287_vm1, %v6606_v1 }
  0x27   : > { %302 = vst.msk [vmem:[#allocation2 + $0x168] sm:$0x1] %vm287_vm1, %v6606_v1 }
  0x28   : > { %303 = vst.msk [vmem:[#allocation2 + $0x180] sm:$0x1] %vm287_vm1, %v6606_v1 }
  0x29   : > { %304 = vst.msk [vmem:[#allocation2 + $0x29] sm:$0x1] %vm287_vm1, %v6606_v1 }
  0x2a   : > { %305 = vst.msk [vmem:[#allocation2 + $0x41] sm:$0x1] %vm287_vm1, %v6606_v1 }
  0x2b   : > { %306 = vst.msk [vmem:[#allocation2 + $0x59] sm:$0x1] %vm287_vm1, %v6606_v1 }
  0x2c   : > { %307 = vst.msk [vmem:[#allocation2 + $0x71] sm:$0x1] %vm287_vm1, %v6606_v1 }
  0x2d   : > { %308 = vst.msk [vmem:[#allocation2 + $0x89] sm:$0x1] %vm287_vm1, %v6606_v1 }
  0x2e   : > { %309 = vst.msk [vmem:[#allocation2 + $0xa1] sm:$0x1] %vm287_vm1, %v6606_v1 }
  0x2f   : > { %310 = vst.msk [vmem:[#allocation2 + $0xb9] sm:$0x1] %vm287_vm1, %v6606_v1 }
  0x30   : > { %311 = vst.msk [vmem:[#allocation2 + $0xd1] sm:$0x1] %vm287_vm1, %v6606_v1 }
  0x31   : > { %312 = vst.msk [vmem:[#allocation2 + $0xe9] sm:$0x1] %vm287_vm1, %v6606_v1 }
  0x32   : > { %313 = vst.msk [vmem:[#allocation2 + $0x101] sm:$0x1] %vm287_vm1, %v6606_v1 }
  0x33   : > { %314 = vst.msk [vmem:[#allocation2 + $0x119] sm:$0x1] %vm287_vm1, %v6606_v1 }
  0x34   : > { %315 = vst.msk [vmem:[#allocation2 + $0x131] sm:$0x1] %vm287_vm1, %v6606_v1 }
  0x35   : > { %316 = vst.msk [vmem:[#allocation2 + $0x149] sm:$0x1] %vm287_vm1, %v6606_v1 }
  0x36   : > { %317 = vst.msk [vmem:[#allocation2 + $0x161] sm:$0x1] %vm287_vm1, %v6606_v1 }
  0x37   : > { %318 = vst.msk [vmem:[#allocation2 + $0x179] sm:$0x1] %vm287_vm1, %v6606_v1 }
  0x38   : > { %319 = vst.msk [vmem:[#allocation2 + $0x191] sm:$0x1] %vm287_vm1, %v6606_v1  ;;  %vm3602_vm1 = vcmask 261124  }
  0x39   : > { %352 = vst.msk [vmem:[#allocation2 + $0x19] sm:$0xff] %vm277_vm0, %v320_v6 }
  0x3a   : > { %355 = vst.msk [vmem:[#allocation2 + $0x39] sm:$0xff] %vm277_vm0, %v323_v7 }
  0x3b   : > { %353 = vst.msk [vmem:[#allocation2 + $0x21] sm:$0xff] %vm277_vm0, %v321_v8 }
  0x3c   : > { %356 = vst.msk [vmem:[#allocation2 + $0x49] sm:$0xff] %vm277_vm0, %v324_v9 }
  0x3d   : > { %358 = vst.msk [vmem:[#allocation2 + $0x61] sm:$0xff] %vm277_vm0, %v326_v10 }
  0x3e   : > { %357 = vst.msk [vmem:[#allocation2 + $0x51] sm:$0xff] %vm277_vm0, %v325_v11 }
  0x3f   : > { %359 = vst.msk [vmem:[#allocation2 + $0x69] sm:$0xff] %vm277_vm0, %v327_v12 }
  0x40   : > { %v4357_v16 = vld [vmem:[#allocation2 + $0x18] sm:$0xff]  ;;  %360 = vst.msk [vmem:[#allocation2 + $0x79] sm:$0xff] %vm277_vm0, %v328_v13 }
  0x41   : > { %429 = vperm.xlu1 %4069, %v4357_v16   ;;  %v4362_v18 = vld [vmem:[#allocation2 + $0x38] sm:$0xff]  ;;  %361 = vst.msk [vmem:[#allocation2 + $0x81] sm:$0xff] %vm277_vm0, %v329_v14 }
  0x42   : > { %444 = vperm.xlu2 %4070, %v4362_v18   ;;  %362 = vst.msk [vmem:[#allocation2 + $0x91] sm:$0xff] %vm277_vm0, %v330_v15  ;;  %v4378_v25 = vld [vmem:[#allocation2 + $0x20] sm:$0xff] }
  0x43   : > { %v4369_v21 = vld [vmem:[#allocation2 + $0x48] sm:$0xff]  ;;  %364 = vst.msk [vmem:[#allocation2 + $0xa9] sm:$0xff] %vm277_vm0, %v332_v17  ;;  %v4495_v7 = vld [vmem:[#allocation2 + $0x19] sm:$0xff] }
  0x44   : > { %449 = vperm.xlu0 %4068, %v4369_v21   ;;  %363 = vst.msk [vmem:[#allocation2 + $0x99] sm:$0xff] %vm277_vm0, %v331_v19  ;;  %v4381_v26 = vld [vmem:[#allocation2 + $0x60] sm:$0xff]  ;;  %v4497_v8 = vld [vmem:[#allocation2 + $0x49] sm:$0xff] }
  0x45   : > { %365 = vst.msk [vmem:[#allocation2 + $0xb1] sm:$0xff] %vm277_vm0, %v333_v20  ;;  %v4396_v31 = vld [vmem:[#allocation2 + $0x50] sm:$0xff]  ;;  %v4486_v3 = vld [vmem:[#allocation2 + $0x21] sm:$0xff]  ;;  %v4506_v11 = vld [vmem:[#allocation2 + $0x39] sm:$0xff] }
  0x46   : > { %366 = vst.msk [vmem:[#allocation2 + $0xc1] sm:$0xff] %vm277_vm0, %v334_v22  ;;  %v4388_v29 = vld [vmem:[#allocation2 + $0x68] sm:$0xff]  ;;  %v4500_v9 = vld [vmem:[#allocation2 + $0x51] sm:$0xff] }
  0x47   : > { %367 = vst.msk [vmem:[#allocation2 + $0xc9] sm:$0xff] %vm277_vm0, %v335_v23  ;;  %v4411_v37 = vld [vmem:[#allocation2 + $0x78] sm:$0xff]  ;;  %v4508_v12 = vld [vmem:[#allocation2 + $0x69] sm:$0xff]  ;;  %v4519_v17 = vld [vmem:[#allocation2 + $0x61] sm:$0xff] }
  0x48   : > { %368 = vst.msk [vmem:[#allocation2 + $0xd9] sm:$0xff] %vm277_vm0, %v336_v24  ;;  %v4398_v32 = vld [vmem:[#allocation2 + $0x80] sm:$0xff] }
  0x49   : > { %434 = vperm.xlu1 %4069, %v4378_v25   ;;  %370 = vst.msk [vmem:[#allocation2 + $0xf1] sm:$0xff] %vm277_vm0, %v338_v27  ;;  %v4403_v35 = vld [vmem:[#allocation2 + $0x90] sm:$0xff]  ;;  %v4511_v13 = vld [vmem:[#allocation2 + $0x79] sm:$0xff]  ;;  %v4532_v24 = vld [vmem:[#allocation2 + $0x81] sm:$0xff] }
  0x4a   : > { %459 = vperm.xlu2 %4070, %v4381_v26   ;;  %369 = vst.msk [vmem:[#allocation2 + $0xe1] sm:$0xff] %vm277_vm0, %v337_v28  ;;  %v4413_v38 = vld [vmem:[#allocation2 + $0xa8] sm:$0xff]  ;;  %v4521_v19 = vld [vmem:[#allocation2 + $0x91] sm:$0xff] }
  0x4b   : > { %371 = vst.msk [vmem:[#allocation2 + $0xf9] sm:$0xff] %vm277_vm0, %v339_v30  ;;  %v4426_v43 = vld [vmem:[#allocation2 + $0x98] sm:$0xff] }
  0x4c   : > { %464 = vperm.xlu0 %4068, %v4388_v29   ;;  %372 = vst.msk [vmem:[#allocation2 + $0x109] sm:$0xff] %vm277_vm0, %v340_v33  ;;  %v4418_v41 = vld [vmem:[#allocation2 + $0xb0] sm:$0xff]  ;;  %v4524_v20 = vld [vmem:[#allocation2 + $0x99] sm:$0xff] }
  0x4d   : > { %373 = vst.msk [vmem:[#allocation2 + $0x111] sm:$0xff] %vm277_vm0, %v341_v34  ;;  %v4441_v49 = vld [vmem:[#allocation2 + $0xc0] sm:$0xff]  ;;  %v4534_v27 = vld [vmem:[#allocation2 + $0xb1] sm:$0xff]  ;;  %v4545_v34 = vld [vmem:[#allocation2 + $0xa9] sm:$0xff] }
  0x4e   : > { %374 = vst.msk [vmem:[#allocation2 + $0x121] sm:$0xff] %vm277_vm0, %v342_v36  ;;  %v4428_v44 = vld [vmem:[#allocation2 + $0xc8] sm:$0xff] }
  0x4f   : > { %376 = vst.msk [vmem:[#allocation2 + $0x139] sm:$0xff] %vm277_vm0, %v344_v39  ;;  %v4433_v47 = vld [vmem:[#allocation2 + $0xd8] sm:$0xff]  ;;  %v4537_v28 = vld [vmem:[#allocation2 + $0xc1] sm:$0xff] }
  0x50   : > { %375 = vst.msk [vmem:[#allocation2 + $0x129] sm:$0xff] %vm277_vm0, %v343_v40  ;;  %v4443_v50 = vld [vmem:[#allocation2 + $0xf0] sm:$0xff]  ;;  %v4549_v39 = vld [vmem:[#allocation2 + $0xd9] sm:$0xff] }
  0x51   : > { %454 = vperm.xlu1 %4069, %v4396_v31   ;;  %377 = vst.msk [vmem:[#allocation2 + $0x141] sm:$0xff] %vm277_vm0, %v345_v42  ;;  %v4454_v53 = vld [vmem:[#allocation2 + $0xe0] sm:$0xff] }
  0x52   : > { %474 = vperm.xlu2 %4070, %v4398_v32   ;;  %378 = vst.msk [vmem:[#allocation2 + $0x151] sm:$0xff] %vm277_vm0, %v346_v45  ;;  %v4447_v52 = vld [vmem:[#allocation2 + $0xf8] sm:$0xff]  ;;  %v4552_v40 = vld [vmem:[#allocation2 + $0xe1] sm:$0xff] }
  0x53   : > { %379 = vst.msk [vmem:[#allocation2 + $0x159] sm:$0xff] %vm277_vm0, %v347_v46  ;;  %v4463_v56 = vld [vmem:[#allocation2 + $0x108] sm:$0xff] }
  0x54   : > { %479 = vperm.xlu0 %4068, %v4403_v35   ;;  %380 = vst.msk [vmem:[#allocation2 + $0x169] sm:$0xff] %vm277_vm0, %v348_v48  ;;  %v4456_v54 = vld [vmem:[#allocation2 + $0x110] sm:$0xff] }
  0x55   : > { %381 = vst.msk [vmem:[#allocation2 + $0x171] sm:$0xff] %vm277_vm0, %v349_v51  ;;  %v4459_v55 = vld [vmem:[#allocation2 + $0x120] sm:$0xff]  ;;  %v4560_v46 = vld [vmem:[#allocation2 + $0xc9] sm:$0xff] }
  0x56   : > { %281 = vst.msk [vmem:[#allocation2 + $0x10] sm:$0x3] %vm280_vm2, %v6606_v1  ;;  %v4465_v57 = vld [vmem:[#allocation2 + $0x138] sm:$0xff] }
  0x57   : > { %285 = vst.msk [vmem:[#allocation2 + $0x1a8] sm:$0x3] %vm280_vm2, %v6606_v1  ;;  %v4472_v59 = vld [vmem:[#allocation2 + $0x128] sm:$0xff]  ;;  %v4564_v51 = vld [vmem:[#allocation2 + $0xf9] sm:$0xff]  ;;  %vm3559_vm2 = vcmask 519424  }
  0x58   : > { %v4468_v58 = vld [vmem:[#allocation2 + $0x140] sm:$0xff] }
  0x59   : > { %469 = vperm.xlu1 %4069, %v4411_v37   ;;  %v4481_v62 = vld [vmem:[#allocation2 + $0x150] sm:$0xff] }
  0x5a   : > { %489 = vperm.xlu2 %4070, %v4413_v38   ;;  %v4474_v60 = vld [vmem:[#allocation2 + $0x158] sm:$0xff] }
  0x5b   : > { %v4477_v61 = vld [vmem:[#allocation2 + $0x168] sm:$0xff] }
  0x5c   : > { %494 = vperm.xlu0 %4068, %v4418_v41   ;;  %v4484_v2 = vld [vmem:[#allocation2 + $0x170] sm:$0xff] }
  0x5d   : > { %v645_v0 = vld [vmem:[#allocation2 + $0x9] sm:$0xff] }
  0x61   : > { %484 = vperm.xlu1 %4069, %v4426_v43  }
  0x62   : > { %504 = vperm.xlu2 %4070, %v4428_v44  }
  0x64   : > { %509 = vperm.xlu0 %4068, %v4433_v47  }
  0x69   : > { %499 = vperm.xlu1 %4069, %v4441_v49  }
  0x6a   : > { %519 = vperm.xlu2 %4070, %v4443_v50  }
  0x6c   : > { %524 = vperm.xlu0 %4068, %v4447_v52  }
  0x71   : > { %514 = vperm.xlu1 %4069, %v4454_v53  }
  0x72   : > { %534 = vperm.xlu2 %4070, %v4456_v54  }
  0x74   : > { %539 = vperm.xlu0 %4068, %v4459_v55  }
  0x79   : > { %529 = vperm.xlu1 %4069, %v4463_v56  }
  0x7a   : > { %549 = vperm.xlu2 %4070, %v4465_v57  }
  0x7c   : > { %554 = vperm.xlu0 %4068, %v4468_v58   ;;  %v4492_v6 = vpop.permute.xlu2 %439 }
  0x7d   : > { %6647 = vst [vmem:[#allocation12_spill] sm:$0xff] %v4492_v6  ;;  %v4620_v6 = vld [vmem:[#allocation2 + $0x159] sm:$0xff] }
  0x7e   : > { %6675 = vst [vmem:[#allocation40_spill] sm:$0xff] %v4620_v6 }
  0x81   : > { %544 = vperm.xlu1 %4069, %v4472_v59  }
  0x82   : > { %564 = vperm.xlu2 %4070, %v4474_v60  }
  0x84   : > { %569 = vperm.xlu0 %4068, %v4477_v61  }
  0x89   : > { %559 = vperm.xlu1 %4069, %v4481_v62  }
  0x8a   : > { %680 = vperm.xlu2 %4070, %v644_v63   ;;  %v4567_v63 = vld [vmem:[#allocation2 + $0x109] sm:$0xff] }
  0x8c   : > { %685 = vperm.xlu0 %4068, %v645_v0  }
  0x8e   : > { %v4514_v14 = vpop.permute.xlu0 %419 }
  0x8f   : > { %6649 = vst [vmem:[#allocation14_spill] sm:$0xff] %v4514_v14 }
  0x91   : > { %574 = vperm.xlu1 %4069, %v4484_v2  }
  0x92   : > { %695 = vperm.xlu2 %4070, %v4486_v3  }
  0x94   : > { %700 = vperm.xlu0 %4068, %v4489_v5  }
  0x96   : > { %v4530_v23 = vpop.permute.xlu0 %424 }
  0x97   : > { %6652 = vst [vmem:[#allocation17_spill] sm:$0xff] %v4530_v23  ;;  %v4609_v23 = vld [vmem:[#allocation2 + $0x169] sm:$0xff] }
  0x98   : > { %6671 = vst [vmem:[#allocation36_spill] sm:$0xff] %v4609_v23 }
  0x99   : > { %690 = vperm.xlu1 %4069, %v4495_v7  }
  0x9a   : > { %710 = vperm.xlu2 %4070, %v4497_v8  }
  0x9c   : > { %715 = vperm.xlu0 %4068, %v4500_v9   ;;  %v4504_v10 = vpop.permute.xlu2 %444 }
  0x9d   : > { %6648 = vst [vmem:[#allocation13_spill] sm:$0xff] %v4504_v10  ;;  %v4605_v10 = vld [vmem:[#allocation2 + $0x139] sm:$0xff] }
  0xa1   : > { %705 = vperm.xlu1 %4069, %v4506_v11  }
  0xa2   : > { %725 = vperm.xlu2 %4070, %v4508_v12  }
  0xa4   : > { %730 = vperm.xlu0 %4068, %v4511_v13   ;;  %v4517_v15 = vpop.permute.xlu2 %459 }
  0xa5   : > { %6650 = vst [vmem:[#allocation15_spill] sm:$0xff] %v4517_v15 }
  0xa9   : > { %720 = vperm.xlu1 %4069, %v4519_v17  }
  0xaa   : > { %740 = vperm.xlu2 %4070, %v4521_v19  }
  0xac   : > { %745 = vperm.xlu0 %4068, %v4524_v20   ;;  %v4528_v22 = vpop.permute.xlu2 %474 }
  0xad   : > { %6651 = vst [vmem:[#allocation16_spill] sm:$0xff] %v4528_v22  ;;  %v4594_v22 = vld [vmem:[#allocation2 + $0x141] sm:$0xff] }
  0xae   : > { %6666 = vst [vmem:[#allocation31_spill] sm:$0xff] %v4594_v22 }
  0xb1   : > { %735 = vperm.xlu1 %4069, %v4532_v24  }
  0xb2   : > { %755 = vperm.xlu2 %4070, %v4534_v27  }
  0xb3   : > { %v4540_v30 = vpop.permute.xlu1 %429 }
  0xb4   : > { %6653 = vst [vmem:[#allocation18_spill] sm:$0xff] %v4540_v30  ;;  %760 = vperm.xlu0 %4068, %v4537_v28   ;;  %v4543_v33 = vpop.permute.xlu2 %489  ;;  %v4590_v30 = vld [vmem:[#allocation2 + $0x111] sm:$0xff] }
  0xb5   : > { %6654 = vst [vmem:[#allocation19_spill] sm:$0xff] %v4543_v33 }
  0xb6   : > { %v4547_v36 = vpop.permute.xlu0 %449 }
  0xb7   : > { %6655 = vst [vmem:[#allocation20_spill] sm:$0xff] %v4547_v36  ;;  %v4575_v36 = vld [vmem:[#allocation2 + $0xf1] sm:$0xff] }
  0xb9   : > { %750 = vperm.xlu1 %4069, %v4545_v34  }
  0xba   : > { %770 = vperm.xlu2 %4070, %v4549_v39  }
  0xbb   : > { %v4555_v42 = vpop.permute.xlu1 %434 }
  0xbc   : > { %6656 = vst [vmem:[#allocation21_spill] sm:$0xff] %v4555_v42  ;;  %775 = vperm.xlu0 %4068, %v4552_v40   ;;  %v4558_v45 = vpop.permute.xlu2 %504  ;;  %v4579_v42 = vld [vmem:[#allocation2 + $0x121] sm:$0xff] }
  0xbd   : > { %6657 = vst [vmem:[#allocation22_spill] sm:$0xff] %v4558_v45 }
  0xbe   : > { %v4562_v48 = vpop.permute.xlu0 %464 }
  0xbf   : > { %6658 = vst [vmem:[#allocation23_spill] sm:$0xff] %v4562_v48  ;;  %v4582_v48 = vld [vmem:[#allocation2 + $0x129] sm:$0xff] }
  0xc0   : > { %6662 = vst [vmem:[#allocation27_spill] sm:$0xff] %v4582_v48 }
  0xc1   : > { %765 = vperm.xlu1 %4069, %v4560_v46  }
  0xc2   : > { %785 = vperm.xlu2 %4070, %v4564_v51  }
  0xc3   : > { %v4570_v0 = vpop.permute.xlu1 %454 }
  0xc4   : > { %6659 = vst [vmem:[#allocation24_spill] sm:$0xff] %v4570_v0  ;;  %790 = vperm.xlu0 %4068, %v4567_v63   ;;  %v4573_v1 = vpop.permute.xlu2 %519 }
  0xc5   : > { %6660 = vst [vmem:[#allocation25_spill] sm:$0xff] %v4573_v1 }
  0xc6   : > { %v4577_v45 = vpop.permute.xlu0 %479 }
  0xc7   : > { %6661 = vst [vmem:[#allocation26_spill] sm:$0xff] %v4577_v45  ;;  %v4597_v45 = vld [vmem:[#allocation2 + $0x151] sm:$0xff] }
  0xc8   : > { %6667 = vst [vmem:[#allocation32_spill] sm:$0xff] %v4597_v45 }
  0xc9   : > { %780 = vperm.xlu1 %4069, %v4575_v36  }
  0xca   : > { %800 = vperm.xlu2 %4070, %v4579_v42  }
  0xcb   : > { %v4585_v33 = vpop.permute.xlu1 %469 }
  0xcc   : > { %6663 = vst [vmem:[#allocation28_spill] sm:$0xff] %v4585_v33  ;;  %805 = vperm.xlu0 %4068, %v4582_v48   ;;  %v4588_v0 = vpop.permute.xlu2 %534 }
  0xcd   : > { %6664 = vst [vmem:[#allocation29_spill] sm:$0xff] %v4588_v0 }
  0xce   : > { %v4592_v1 = vpop.permute.xlu0 %494 }
  0xcf   : > { %6665 = vst [vmem:[#allocation30_spill] sm:$0xff] %v4592_v1  ;;  %v4612_v1 = vld [vmem:[#allocation2 + $0x171] sm:$0xff] }
  0xd0   : > { %6672 = vst [vmem:[#allocation37_spill] sm:$0xff] %v4612_v1 }
  0xd1   : > { %795 = vperm.xlu1 %4069, %v4590_v30  }
  0xd2   : > { %815 = vperm.xlu2 %4070, %v4594_v22  }
  0xd3   : > { %v4600_v15 = vpop.permute.xlu1 %484 }
  0xd4   : > { %6668 = vst [vmem:[#allocation33_spill] sm:$0xff] %v4600_v15  ;;  %820 = vperm.xlu0 %4068, %v4597_v45   ;;  %v4603_v33 = vpop.permute.xlu2 %549  ;;  %v906_v45 = vld [vmem:[#allocation2 + $0xa] sm:$0xff] }
  0xd5   : > { %6669 = vst [vmem:[#allocation34_spill] sm:$0xff] %v4603_v33 }
  0xd6   : > { %v4607_v0 = vpop.permute.xlu0 %509 }
  0xd7   : > { %6670 = vst [vmem:[#allocation35_spill] sm:$0xff] %v4607_v0  ;;  %v4625_v0 = vld [vmem:[#allocation2 + $0x1a] sm:$0xff] }
  0xd8   : > { %6677 = vst [vmem:[#allocation42_spill] sm:$0xff] %v4625_v0 }
  0xd9   : > { %810 = vperm.xlu1 %4069, %v4605_v10  }
  0xda   : > { %830 = vperm.xlu2 %4070, %v4609_v23   ;;  %v4636_v23 = vld [vmem:[#allocation2 + $0x3a] sm:$0xff] }
  0xdb   : > { %v4615_v14 = vpop.permute.xlu1 %499  ;;  %6682 = vst [vmem:[#allocation47_spill] sm:$0xff] %v4636_v23 }
  0xdc   : > { %6673 = vst [vmem:[#allocation38_spill] sm:$0xff] %v4615_v14  ;;  %835 = vperm.xlu0 %4068, %v4612_v1   ;;  %v4618_v15 = vpop.permute.xlu2 %564  ;;  %v905_v14 = vld [vmem:[#allocation2 + $0x2] sm:$0xff] }
  0xdd   : > { %6674 = vst [vmem:[#allocation39_spill] sm:$0xff] %v4618_v15  ;;  %v4634_v15 = vld [vmem:[#allocation2 + $0x32] sm:$0xff] }
  0xde   : > { %v4622_v33 = vpop.permute.xlu0 %524  ;;  %6681 = vst [vmem:[#allocation46_spill] sm:$0xff] %v4634_v15 }
  0xdf   : > { %6676 = vst [vmem:[#allocation41_spill] sm:$0xff] %v4622_v33 }
  0xe1   : > { %825 = vperm.xlu1 %4069, %v4620_v6  }
  0xe2   : > { %946 = vperm.xlu2 %4070, %v906_v45   ;;  %v4644_v45 = vld [vmem:[#allocation2 + $0x22] sm:$0xff] }
  0xe3   : > { %v4627_v48 = vpop.permute.xlu1 %514 }
  0xe4   : > { %6678 = vst [vmem:[#allocation43_spill] sm:$0xff] %v4627_v48  ;;  %v4629_v22 = vpop.permute.xlu2 %680  ;;  %951 = vperm.xlu0 %4068, %v4625_v0  }
  0xe5   : > { %6679 = vst [vmem:[#allocation44_spill] sm:$0xff] %v4629_v22  ;;  %v4648_v22 = vld [vmem:[#allocation2 + $0x52] sm:$0xff] }
  0xe6   : > { %v4632_v1 = vpop.permute.xlu0 %539  ;;  %6686 = vst [vmem:[#allocation51_spill] sm:$0xff] %v4648_v22 }
  0xe7   : > { %6680 = vst [vmem:[#allocation45_spill] sm:$0xff] %v4632_v1  ;;  %v4651_v1 = vld [vmem:[#allocation2 + $0x62] sm:$0xff] }
  0xe8   : > { %6687 = vst [vmem:[#allocation52_spill] sm:$0xff] %v4651_v1 }
  0xe9   : > { %941 = vperm.xlu1 %4069, %v905_v14  }
  0xea   : > { %961 = vperm.xlu2 %4070, %v4634_v15  }
  0xeb   : > { %v4639_v33 = vpop.permute.xlu1 %529 }
  0xec   : > { %6683 = vst [vmem:[#allocation48_spill] sm:$0xff] %v4639_v33  ;;  %v4641_v6 = vpop.permute.xlu2 %695  ;;  %966 = vperm.xlu0 %4068, %v4636_v23   ;;  %v4659_v33 = vld [vmem:[#allocation2 + $0x4a] sm:$0xff]  ;;  %v4663_v23 = vld [vmem:[#allocation2 + $0x7a] sm:$0xff] }
  0xed   : > { %6684 = vst [vmem:[#allocation49_spill] sm:$0xff] %v4641_v6 }
  0xee   : > { %v4646_v48 = vpop.permute.xlu0 %554  ;;  %6690 = vst [vmem:[#allocation55_spill] sm:$0xff] %v4659_v33 }
  0xef   : > { %6685 = vst [vmem:[#allocation50_spill] sm:$0xff] %v4646_v48  ;;  %v4666_v48 = vld [vmem:[#allocation2 + $0x82] sm:$0xff] }
  0xf0   : > { %6692 = vst [vmem:[#allocation57_spill] sm:$0xff] %v4663_v23 }
  0xf1   : > { %956 = vperm.xlu1 %4069, %v4644_v45   ;;  %6693 = vst [vmem:[#allocation58_spill] sm:$0xff] %v4666_v48 }
  0xf2   : > { %976 = vperm.xlu2 %4070, %v4648_v22  }
  0xf3   : > { %v4654_v14 = vpop.permute.xlu1 %544 }
  0xf4   : > { %6688 = vst [vmem:[#allocation53_spill] sm:$0xff] %v4654_v14  ;;  %v4656_v0 = vpop.permute.xlu2 %710  ;;  %981 = vperm.xlu0 %4068, %v4651_v1   ;;  %v4674_v14 = vld [vmem:[#allocation2 + $0x6a] sm:$0xff]  ;;  %v4678_v1 = vld [vmem:[#allocation2 + $0x9a] sm:$0xff] }
  0xf5   : > { %6689 = vst [vmem:[#allocation54_spill] sm:$0xff] %v4656_v0 }
  0xf6   : > { %v4661_v6 = vpop.permute.xlu0 %569  ;;  %6696 = vst [vmem:[#allocation61_spill] sm:$0xff] %v4674_v14 }
  0xf7   : > { %6691 = vst [vmem:[#allocation56_spill] sm:$0xff] %v4661_v6  ;;  %v4681_v6 = vld [vmem:[#allocation2 + $0xaa] sm:$0xff] }
  0xf8   : > { %6698 = vst [vmem:[#allocation63_spill] sm:$0xff] %v4678_v1 }
  0xf9   : > { %971 = vperm.xlu1 %4069, %v4659_v33   ;;  %6699 = vst [vmem:[#allocation64_spill] sm:$0xff] %v4681_v6 }
  0xfa   : > { %991 = vperm.xlu2 %4070, %v4663_v23  }
  0xfb   : > { %v4669_v15 = vpop.permute.xlu1 %559 }
  0xfc   : > { %6694 = vst [vmem:[#allocation59_spill] sm:$0xff] %v4669_v15  ;;  %v4671_v22 = vpop.permute.xlu2 %725  ;;  %996 = vperm.xlu0 %4068, %v4666_v48   ;;  %v4689_v15 = vld [vmem:[#allocation2 + $0x92] sm:$0xff]  ;;  %v4693_v48 = vld [vmem:[#allocation2 + $0xc2] sm:$0xff] }
  0xfd   : > { %6695 = vst [vmem:[#allocation60_spill] sm:$0xff] %v4671_v22 }
  0xfe   : > { %v4676_v0 = vpop.permute.xlu0 %685  ;;  %6702 = vst [vmem:[#allocation67_spill] sm:$0xff] %v4689_v15 }
  0xff   : > { %6697 = vst [vmem:[#allocation62_spill] sm:$0xff] %v4676_v0  ;;  %v4696_v0 = vld [vmem:[#allocation2 + $0xca] sm:$0xff] }
 0x100   : > { %6704 = vst [vmem:[#allocation69_spill] sm:$0xff] %v4693_v48 }
 0x101   : > { %986 = vperm.xlu1 %4069, %v4674_v14   ;;  %6705 = vst [vmem:[#allocation70_spill] sm:$0xff] %v4696_v0 }
 0x102   : > { %1006 = vperm.xlu2 %4070, %v4678_v1  }
 0x103   : > { %v4684_v33 = vpop.permute.xlu1 %574 }
 0x104   : > { %6700 = vst [vmem:[#allocation65_spill] sm:$0xff] %v4684_v33  ;;  %v4686_v23 = vpop.permute.xlu2 %740  ;;  %1011 = vperm.xlu0 %4068, %v4681_v6   ;;  %v4704_v33 = vld [vmem:[#allocation2 + $0xb2] sm:$0xff]  ;;  %v4708_v6 = vld [vmem:[#allocation2 + $0xe2] sm:$0xff] }
 0x105   : > { %6701 = vst [vmem:[#allocation66_spill] sm:$0xff] %v4686_v23 }
 0x106   : > { %v4691_v22 = vpop.permute.xlu0 %700  ;;  %6708 = vst [vmem:[#allocation73_spill] sm:$0xff] %v4704_v33 }
 0x107   : > { %6703 = vst [vmem:[#allocation68_spill] sm:$0xff] %v4691_v22  ;;  %v4711_v22 = vld [vmem:[#allocation2 + $0xf2] sm:$0xff] }
 0x108   : > { %6710 = vst [vmem:[#allocation75_spill] sm:$0xff] %v4708_v6 }
 0x109   : > { %1001 = vperm.xlu1 %4069, %v4689_v15   ;;  %6711 = vst [vmem:[#allocation76_spill] sm:$0xff] %v4711_v22 }
 0x10a   : > { %1021 = vperm.xlu2 %4070, %v4693_v48  }
 0x10b   : > { %v4699_v14 = vpop.permute.xlu1 %690 }
 0x10c   : > { %6706 = vst [vmem:[#allocation71_spill] sm:$0xff] %v4699_v14  ;;  %v4701_v1 = vpop.permute.xlu2 %755  ;;  %1026 = vperm.xlu0 %4068, %v4696_v0   ;;  %v4723_v0 = vld [vmem:[#allocation2 + $0x10a] sm:$0xff] }
 0x10d   : > { %6707 = vst [vmem:[#allocation72_spill] sm:$0xff] %v4701_v1  ;;  %v4719_v1 = vld [vmem:[#allocation2 + $0xda] sm:$0xff] }
 0x10e   : > { %v4706_v23 = vpop.permute.xlu0 %715  ;;  %6714 = vst [vmem:[#allocation79_spill] sm:$0xff] %v4719_v1 }
 0x10f   : > { %6709 = vst [vmem:[#allocation74_spill] sm:$0xff] %v4706_v23  ;;  %v4726_v23 = vld [vmem:[#allocation2 + $0x112] sm:$0xff] }
 0x110   : > { %6716 = vst [vmem:[#allocation81_spill] sm:$0xff] %v4723_v0 }
 0x111   : > { %1016 = vperm.xlu1 %4069, %v4704_v33   ;;  %6717 = vst [vmem:[#allocation82_spill] sm:$0xff] %v4726_v23 }
 0x112   : > { %1036 = vperm.xlu2 %4070, %v4708_v6  }
 0x113   : > { %v4714_v15 = vpop.permute.xlu1 %705 }
 0x114   : > { %6712 = vst [vmem:[#allocation77_spill] sm:$0xff] %v4714_v15  ;;  %v4716_v48 = vpop.permute.xlu2 %770  ;;  %1041 = vperm.xlu0 %4068, %v4711_v22   ;;  %v4738_v22 = vld [vmem:[#allocation2 + $0x12a] sm:$0xff] }
 0x115   : > { %6713 = vst [vmem:[#allocation78_spill] sm:$0xff] %v4716_v48  ;;  %v4734_v48 = vld [vmem:[#allocation2 + $0xfa] sm:$0xff] }
 0x116   : > { %v4721_v14 = vpop.permute.xlu0 %730  ;;  %6720 = vst [vmem:[#allocation85_spill] sm:$0xff] %v4734_v48 }
 0x117   : > { %6715 = vst [vmem:[#allocation80_spill] sm:$0xff] %v4721_v14  ;;  %v4741_v14 = vld [vmem:[#allocation2 + $0x13a] sm:$0xff] }
 0x118   : > { %6722 = vst [vmem:[#allocation87_spill] sm:$0xff] %v4738_v22 }
 0x119   : > { %1031 = vperm.xlu1 %4069, %v4719_v1   ;;  %6723 = vst [vmem:[#allocation88_spill] sm:$0xff] %v4741_v14 }
 0x11a   : > { %1051 = vperm.xlu2 %4070, %v4723_v0  }
 0x11b   : > { %v4729_v33 = vpop.permute.xlu1 %720 }
 0x11c   : > { %6718 = vst [vmem:[#allocation83_spill] sm:$0xff] %v4729_v33  ;;  %v4731_v6 = vpop.permute.xlu2 %785  ;;  %1056 = vperm.xlu0 %4068, %v4726_v23   ;;  %v4753_v23 = vld [vmem:[#allocation2 + $0x152] sm:$0xff] }
 0x11d   : > { %6719 = vst [vmem:[#allocation84_spill] sm:$0xff] %v4731_v6  ;;  %v4749_v6 = vld [vmem:[#allocation2 + $0x122] sm:$0xff] }
 0x11e   : > { %v4736_v15 = vpop.permute.xlu0 %745  ;;  %6726 = vst [vmem:[#allocation91_spill] sm:$0xff] %v4749_v6 }
 0x11f   : > { %6721 = vst [vmem:[#allocation86_spill] sm:$0xff] %v4736_v15  ;;  %v4756_v15 = vld [vmem:[#allocation2 + $0x15a] sm:$0xff] }
 0x120   : > { %6728 = vst [vmem:[#allocation93_spill] sm:$0xff] %v4756_v15 }
 0x121   : > { %1046 = vperm.xlu1 %4069, %v4734_v48  }
 0x122   : > { %1066 = vperm.xlu2 %4070, %v4738_v22  }
 0x123   : > { %v4744_v1 = vpop.permute.xlu1 %735 }
 0x124   : > { %6724 = vst [vmem:[#allocation89_spill] sm:$0xff] %v4744_v1  ;;  %v4746_v0 = vpop.permute.xlu2 %800  ;;  %1071 = vperm.xlu0 %4068, %v4741_v14   ;;  %v4768_v14 = vld [vmem:[#allocation2 + $0x172] sm:$0xff] }
 0x125   : > { %6725 = vst [vmem:[#allocation90_spill] sm:$0xff] %v4746_v0  ;;  %v4764_v0 = vld [vmem:[#allocation2 + $0x142] sm:$0xff] }
 0x126   : > { %v4751_v33 = vpop.permute.xlu0 %760  ;;  %6732 = vst [vmem:[#allocation97_spill] sm:$0xff] %v4768_v14 }
 0x127   : > { %6727 = vst [vmem:[#allocation92_spill] sm:$0xff] %v4751_v33 }
 0x129   : > { %1061 = vperm.xlu1 %4069, %v4749_v6  }
 0x12a   : > { %1081 = vperm.xlu2 %4070, %v4753_v23  }
 0x12b   : > { %v4759_v48 = vpop.permute.xlu1 %750 }
 0x12c   : > { %6729 = vst [vmem:[#allocation94_spill] sm:$0xff] %v4759_v48  ;;  %v4761_v22 = vpop.permute.xlu2 %815  ;;  %1086 = vperm.xlu0 %4068, %v4756_v15   ;;  %v4777_v48 = vld [vmem:[#allocation2 + $0x16a] sm:$0xff] }
 0x12d   : > { %6730 = vst [vmem:[#allocation95_spill] sm:$0xff] %v4761_v22 }
 0x12e   : > { %v4766_v1 = vpop.permute.xlu0 %775 }
 0x12f   : > { %6731 = vst [vmem:[#allocation96_spill] sm:$0xff] %v4766_v1 }
 0x131   : > { %1076 = vperm.xlu1 %4069, %v4764_v0  }
 0x132   : > { %1096 = vperm.xlu2 %4070, %v4768_v14  }
 0x133   : > { %v4772_v33 = vpop.permute.xlu1 %765 }
 0x134   : > { %6733 = vst [vmem:[#allocation98_spill] sm:$0xff] %v4772_v33  ;;  %v4774_v6 = vpop.permute.xlu2 %830  ;;  %1202 = vperm.xlu0 %4068, %v4357_v16  }
 0x135   : > { %6734 = vst [vmem:[#allocation99_spill] sm:$0xff] %v4774_v6 }
 0x136   : > { %v4779_v22 = vpop.permute.xlu0 %790 }
 0x137   : > { %6735 = vst [vmem:[#allocation100_spill] sm:$0xff] %v4779_v22 }
 0x139   : > { %1091 = vperm.xlu1 %4069, %v4777_v48  }
 0x13a   : > { %1212 = vperm.xlu2 %4070, %v4289_v4  }
 0x13b   : > { %v4783_v1 = vpop.permute.xlu1 %780 }
 0x13c   : > { %6736 = vst [vmem:[#allocation101_spill] sm:$0xff] %v4783_v1  ;;  %v4785_v15 = vpop.permute.xlu2 %946  ;;  %1217 = vperm.xlu0 %4068, %v4362_v18  }
 0x13e   : > { %v4788_v14 = vpop.permute.xlu0 %805 }
 0x13f   : > { %6737 = vst [vmem:[#allocation102_spill] sm:$0xff] %v4788_v14  ;;  %v6796_v14 = vld [vmem:[#allocation51_spill] sm:$0xff] }
 0x141   : > { %1207 = vperm.xlu1 %4069, %v4378_v25  }
 0x142   : > { %1227 = vperm.xlu2 %4070, %v4396_v31  }
 0x143   : > { %v4792_v16 = vpop.permute.xlu1 %795 }
 0x144   : > { %6738 = vst [vmem:[#allocation103_spill] sm:$0xff] %v4792_v16  ;;  %v4794_v6 = vpop.permute.xlu2 %961  ;;  %1232 = vperm.xlu0 %4068, %v4381_v26  }
 0x146   : > { %v4797_v22 = vpop.permute.xlu0 %820 }
 0x147   : > { %6739 = vst [vmem:[#allocation104_spill] sm:$0xff] %v4797_v22 }
 0x149   : > { %1222 = vperm.xlu1 %4069, %v4369_v21  }
 0x14a   : > { %1242 = vperm.xlu2 %4070, %v4411_v37  }
 0x14b   : > { %v4801_v4 = vpop.permute.xlu1 %810 }
 0x14c   : > { %6740 = vst [vmem:[#allocation105_spill] sm:$0xff] %v4801_v4  ;;  %v4803_v18 = vpop.permute.xlu2 %976  ;;  %1247 = vperm.xlu0 %4068, %v4398_v32  }
 0x14e   : > { %v4806_v25 = vpop.permute.xlu0 %835 }
 0x14f   : > { %6741 = vst [vmem:[#allocation106_spill] sm:$0xff] %v4806_v25  ;;  %v351_v25 = vld [vmem:[%s4269_s17 + $0xf8] sm:$0xff] }
 0x150   : > { %383 = vst.msk [vmem:[#allocation2 + $0x189] sm:$0xff] %vm277_vm0, %v351_v25 }
 0x151   : > { %1237 = vperm.xlu1 %4069, %v4388_v29  }
 0x152   : > { %1257 = vperm.xlu2 %4070, %v4426_v43  }
 0x153   : > { %v4810_v26 = vpop.permute.xlu1 %825 }
 0x154   : > { %6742 = vst [vmem:[#allocation107_spill] sm:$0xff] %v4810_v26  ;;  %v4812_v31 = vpop.permute.xlu2 %991  ;;  %1262 = vperm.xlu0 %4068, %v4413_v38   ;;  %v350_v38 = vld [vmem:[%s4269_s17 + $0xf0] sm:$0xff]  ;;  %s4162_s17 = smov 64  }
 0x155   : > { %382 = vst.msk [vmem:[#allocation2 + $0x181] sm:$0xff] %vm277_vm0, %v350_v38  ;;  %vm3547_vm0 = vcmask 257024  }
 0x156   : > { %v4815_v21 = vpop.permute.xlu0 %951 }
 0x159   : > { %1252 = vperm.xlu1 %4069, %v4403_v35  }
 0x15a   : > { %1272 = vperm.xlu2 %4070, %v4441_v49  }
 0x15b   : > { %v4819_v32 = vpop.permute.xlu1 %941 }
 0x15c   : > { %v4821_v37 = vpop.permute.xlu2 %1006  ;;  %1277 = vperm.xlu0 %4068, %v4428_v44  }
 0x15d   : > { %6743 = vst [vmem:[#allocation108_spill] sm:$0xff] %v4821_v37 }
 0x15e   : > { %v4824_v29 = vpop.permute.xlu0 %966 }
 0x161   : > { %1267 = vperm.xlu1 %4069, %v4418_v41  }
 0x162   : > { %1287 = vperm.xlu2 %4070, %v4454_v53  }
 0x163   : > { %v4829_v43 = vpop.permute.xlu1 %956 }
 0x164   : > { %v4832_v35 = vpop.permute.xlu2 %1021  ;;  %1292 = vperm.xlu0 %4068, %v4443_v50  }
 0x165   : > { %6744 = vst [vmem:[#allocation109_spill] sm:$0xff] %v4832_v35  ;;  %v1954_v35 = vld [vmem:[#allocation2 + $0x60] sm:$0xff] }
 0x166   : > { %v4835_v49 = vpop.permute.xlu0 %981 }
 0x169   : > { %1282 = vperm.xlu1 %4069, %v4433_v47  }
 0x16a   : > { %1302 = vperm.xlu2 %4070, %v4463_v56  }
 0x16b   : > { %v4841_v41 = vpop.permute.xlu1 %971 }
 0x16c   : > { %v4843_v44 = vpop.permute.xlu2 %1036  ;;  %1307 = vperm.xlu0 %4068, %v4456_v54  }
 0x16d   : > { %6745 = vst [vmem:[#allocation110_spill] sm:$0xff] %v4843_v44  ;;  %v6839_v44 = vld [vmem:[#allocation97_spill] sm:$0xff] }
 0x16e   : > { %v4846_v53 = vpop.permute.xlu0 %996 }
 0x171   : > { %1297 = vperm.xlu1 %4069, %v4447_v52  }
 0x172   : > { %1317 = vperm.xlu2 %4070, %v4472_v59   ;;  %v4867_v59 = vld [vmem:[#allocation2 + $0x180] sm:$0xff] }
 0x173   : > { %v4850_v50 = vpop.permute.xlu1 %986 }
 0x174   : > { %v4852_v38 = vpop.permute.xlu2 %1051  ;;  %1322 = vperm.xlu0 %4068, %v4465_v57  }
 0x175   : > { %6746 = vst [vmem:[#allocation111_spill] sm:$0xff] %v4852_v38  ;;  %v6819_v38 = vld [vmem:[#allocation75_spill] sm:$0xff] }
 0x176   : > { %v4855_v47 = vpop.permute.xlu0 %1011 }
 0x179   : > { %1312 = vperm.xlu1 %4069, %v4459_v55  }
 0x17a   : > { %1332 = vperm.xlu2 %4070, %v4481_v62  }
 0x17b   : > { %v4859_v56 = vpop.permute.xlu1 %1001 }
 0x17c   : > { %v4861_v54 = vpop.permute.xlu2 %1066  ;;  %1337 = vperm.xlu0 %4068, %v4474_v60  }
 0x17d   : > { %6747 = vst [vmem:[#allocation112_spill] sm:$0xff] %v4861_v54  ;;  %v6781_v54 = vld [vmem:[#allocation36_spill] sm:$0xff] }
 0x17e   : > { %v4864_v52 = vpop.permute.xlu0 %1026 }
 0x17f   : > { %6748 = vst [vmem:[#allocation113_spill] sm:$0xff] %v4864_v52 }
 0x181   : > { %1327 = vperm.xlu1 %4069, %v4468_v58   ;;  %v4884_v58 = vld [vmem:[#allocation2 + $0x188] sm:$0xff] }
 0x182   : > { %1347 = vperm.xlu2 %4070, %v4484_v2  }
 0x183   : > { %v4870_v57 = vpop.permute.xlu1 %1016 }
 0x184   : > { %6749 = vst [vmem:[#allocation114_spill] sm:$0xff] %v4870_v57  ;;  %v4872_v25 = vpop.permute.xlu2 %1081  ;;  %1352 = vperm.xlu0 %4068, %v4867_v59   ;;  %v6944_v57 = vld [vmem:[#allocation66_spill] sm:$0xff] }
 0x185   : > { %6750 = vst [vmem:[#allocation115_spill] sm:$0xff] %v4872_v25 }
 0x186   : > { %v4875_v55 = vpop.permute.xlu0 %1041 }
 0x187   : > { %6751 = vst [vmem:[#allocation116_spill] sm:$0xff] %v4875_v55 }
 0x189   : > { %1342 = vperm.xlu1 %4069, %v4477_v61  }
 0x18a   : > { %1463 = vperm.xlu2 %4070, %v4495_v7  }
 0x18b   : > { %v4879_v60 = vpop.permute.xlu1 %1031 }
 0x18c   : > { %6752 = vst [vmem:[#allocation117_spill] sm:$0xff] %v4879_v60  ;;  %v4881_v62 = vpop.permute.xlu2 %1096  ;;  %1468 = vperm.xlu0 %4068, %v4486_v3  }
 0x18d   : > { %6753 = vst [vmem:[#allocation118_spill] sm:$0xff] %v4881_v62 }
 0x18e   : > { %v4886_v2 = vpop.permute.xlu0 %1056 }
 0x18f   : > { %6754 = vst [vmem:[#allocation119_spill] sm:$0xff] %v4886_v2  ;;  %v6799_v2 = vld [vmem:[#allocation61_spill] sm:$0xff] }
 0x191   : > { %1357 = vperm.xlu1 %4069, %v4884_v58  }
 0x192   : > { %1478 = vperm.xlu2 %4070, %v4506_v11  }
 0x193   : > { %v4890_v25 = vpop.permute.xlu1 %1046 }
 0x194   : > { %6755 = vst [vmem:[#allocation120_spill] sm:$0xff] %v4890_v25  ;;  %v4892_v26 = vpop.permute.xlu2 %1212  ;;  %1483 = vperm.xlu0 %4068, %v4497_v8   ;;  %v6824_v25 = vld [vmem:[#allocation81_spill] sm:$0xff] }
 0x196   : > { %v4895_v61 = vpop.permute.xlu0 %1071 }
 0x197   : > { %6756 = vst [vmem:[#allocation121_spill] sm:$0xff] %v4895_v61  ;;  %v1458_v61 = vld [vmem:[#allocation2 + $0x189] sm:$0xff] }
 0x199   : > { %1473 = vperm.xlu1 %4069, %v4489_v5  }
 0x19a   : > { %1493 = vperm.xlu2 %4070, %v4519_v17  }
 0x19b   : > { %v4899_v3 = vpop.permute.xlu1 %1061 }
 0x19c   : > { %6757 = vst [vmem:[#allocation122_spill] sm:$0xff] %v4899_v3  ;;  %v4901_v7 = vpop.permute.xlu2 %1227  ;;  %1498 = vperm.xlu0 %4068, %v4508_v12   ;;  %v6790_v3 = vld [vmem:[#allocation46_spill] sm:$0xff] }
 0x19e   : > { %v4904_v62 = vpop.permute.xlu0 %1086 }
 0x19f   : > { %6758 = vst [vmem:[#allocation123_spill] sm:$0xff] %v4904_v62  ;;  %v6778_v62 = vld [vmem:[#allocation40_spill] sm:$0xff] }
 0x1a1   : > { %1488 = vperm.xlu1 %4069, %v4500_v9  }
 0x1a2   : > { %1508 = vperm.xlu2 %4070, %v4532_v24  }
 0x1a3   : > { %v4908_v11 = vpop.permute.xlu1 %1076 }
 0x1a4   : > { %6759 = vst [vmem:[#allocation124_spill] sm:$0xff] %v4908_v11  ;;  %v4910_v8 = vpop.permute.xlu2 %1242  ;;  %1513 = vperm.xlu0 %4068, %v4521_v19   ;;  %v6783_v11 = vld [vmem:[#allocation32_spill] sm:$0xff] }
 0x1a6   : > { %v4913_v5 = vpop.permute.xlu0 %1202 }
 0x1a7   : > { %6760 = vst [vmem:[#allocation125_spill] sm:$0xff] %v4913_v5 }
 0x1a9   : > { %1503 = vperm.xlu1 %4069, %v4511_v13  }
 0x1aa   : > { %1523 = vperm.xlu2 %4070, %v4545_v34  }
 0x1ab   : > { %v4917_v17 = vpop.permute.xlu1 %1091 }
 0x1ac   : > { %6761 = vst [vmem:[#allocation126_spill] sm:$0xff] %v4917_v17  ;;  %v4919_v12 = vpop.permute.xlu2 %1257  ;;  %1528 = vperm.xlu0 %4068, %v4534_v27   ;;  %v6775_v17 = vld [vmem:[#allocation31_spill] sm:$0xff] }
 0x1ad   : > { %6762 = vst [vmem:[#allocation127_spill] sm:$0xff] %v4919_v12 }
 0x1ae   : > { %v4922_v9 = vpop.permute.xlu0 %1217 }
 0x1af   : > { %6763 = vst [vmem:[#allocation128_spill] sm:$0xff] %v4922_v9 }
 0x1b1   : > { %1518 = vperm.xlu1 %4069, %v4524_v20  }
 0x1b2   : > { %1538 = vperm.xlu2 %4070, %v4560_v46  }
 0x1b3   : > { %v4926_v24 = vpop.permute.xlu1 %1207 }
 0x1b4   : > { %6764 = vst [vmem:[#allocation129_spill] sm:$0xff] %v4926_v24  ;;  %v4928_v19 = vpop.permute.xlu2 %1272  ;;  %1543 = vperm.xlu0 %4068, %v4549_v39  }
 0x1b5   : > { %6765 = vst [vmem:[#allocation130_spill] sm:$0xff] %v4928_v19  ;;  %v6942_v19 = vld [vmem:[#allocation30_spill] sm:$0xff] }
 0x1b6   : > { %v4931_v13 = vpop.permute.xlu0 %1232 }
 0x1b7   : > { %6766 = vst [vmem:[#allocation131_spill] sm:$0xff] %v4931_v13 }
 0x1b9   : > { %1533 = vperm.xlu1 %4069, %v4537_v28  }
 0x1ba   : > { %1553 = vperm.xlu2 %4070, %v4575_v36  }
 0x1bb   : > { %v4935_v34 = vpop.permute.xlu1 %1222 }
 0x1bc   : > { %6767 = vst [vmem:[#allocation132_spill] sm:$0xff] %v4935_v34  ;;  %v4937_v27 = vpop.permute.xlu2 %1287  ;;  %1558 = vperm.xlu0 %4068, %v4564_v51  }
 0x1bd   : > { %6768 = vst [vmem:[#allocation133_spill] sm:$0xff] %v4937_v27  ;;  %v6842_v27 = vld [vmem:[#allocation93_spill] sm:$0xff] }
 0x1be   : > { %v4940_v20 = vpop.permute.xlu0 %1247 }
 0x1bf   : > { %6769 = vst [vmem:[#allocation134_spill] sm:$0xff] %v4940_v20 }
 0x1c1   : > { %1548 = vperm.xlu1 %4069, %v4552_v40  }
 0x1c2   : > { %1568 = vperm.xlu2 %4070, %v4590_v30   ;;  %v6777_v30 = vld [vmem:[#allocation27_spill] sm:$0xff] }
 0x1c3   : > { %v4944_v46 = vpop.permute.xlu1 %1237 }
 0x1c4   : > { %6770 = vst [vmem:[#allocation135_spill] sm:$0xff] %v4944_v46  ;;  %v4946_v39 = vpop.permute.xlu2 %1302  ;;  %1573 = vperm.xlu0 %4068, %v4579_v42  }
 0x1c5   : > { %6771 = vst [vmem:[#allocation136_spill] sm:$0xff] %v4946_v39  ;;  %v6805_v39 = vld [vmem:[#allocation67_spill] sm:$0xff] }
 0x1c6   : > { %v4949_v28 = vpop.permute.xlu0 %1262 }
 0x1c7   : > { %6772 = vst [vmem:[#allocation137_spill] sm:$0xff] %v4949_v28 }
 0x1c9   : > { %1563 = vperm.xlu1 %4069, %v4567_v63  }
 0x1ca   : > { %1583 = vperm.xlu2 %4070, %v4605_v10   ;;  %v1457_v10 = vld [vmem:[#allocation2 + $0x181] sm:$0xff] }
 0x1cb   : > { %v4953_v36 = vpop.permute.xlu1 %1252 }
 0x1cc   : > { %6773 = vst [vmem:[#allocation138_spill] sm:$0xff] %v4953_v36  ;;  %v4955_v51 = vpop.permute.xlu2 %1317  ;;  %1588 = vperm.xlu0 %4068, %v6775_v17  }
 0x1cd   : > { %6774 = vst [vmem:[#allocation139_spill] sm:$0xff] %v4955_v51  ;;  %v6793_v51 = vld [vmem:[#allocation55_spill] sm:$0xff] }
 0x1ce   : > { %v4958_v40 = vpop.permute.xlu0 %1277 }
 0x1cf   : > { %6776 = vst [vmem:[#allocation31_spill] sm:$0xff] %v4958_v40  ;;  %v1971_v40 = vld [vmem:[#allocation2 + $0x128] sm:$0xff] }
 0x1d1   : > { %1578 = vperm.xlu1 %4069, %v6777_v30  }
 0x1d2   : > { %1598 = vperm.xlu2 %4070, %v6778_v62   ;;  %v6787_v62 = vld [vmem:[#allocation37_spill] sm:$0xff] }
 0x1d3   : > { %v4962_v22 = vpop.permute.xlu1 %1267 }
 0x1d4   : > { %6779 = vst [vmem:[#allocation27_spill] sm:$0xff] %v4962_v22  ;;  %v4964_v42 = vpop.permute.xlu2 %1332  ;;  %1603 = vperm.xlu0 %4068, %v6781_v54  }
 0x1d5   : > { %6780 = vst [vmem:[#allocation40_spill] sm:$0xff] %v4964_v42 }
 0x1d6   : > { %v4967_v63 = vpop.permute.xlu0 %1292 }
 0x1d7   : > { %6782 = vst [vmem:[#allocation36_spill] sm:$0xff] %v4967_v63  ;;  %v6827_v63 = vld [vmem:[#allocation91_spill] sm:$0xff] }
 0x1d9   : > { %1593 = vperm.xlu1 %4069, %v6783_v11  }
 0x1da   : > { %1613 = vperm.xlu2 %4070, %v1457_v10   ;;  %v6792_v10 = vld [vmem:[#allocation42_spill] sm:$0xff] }
 0x1db   : > { %v4970_v17 = vpop.permute.xlu1 %1282 }
 0x1dc   : > { %6784 = vst [vmem:[#allocation32_spill] sm:$0xff] %v4970_v17  ;;  %v4972_v4 = vpop.permute.xlu2 %1347  ;;  %1618 = vperm.xlu0 %4068, %v1458_v61   ;;  %v1951_v17 = vld [vmem:[#allocation2 + $0x38] sm:$0xff] }
 0x1dd   : > { %6785 = vst [vmem:[#allocation140_spill] sm:$0xff] %v4972_v4 }
 0x1de   : > { %v4974_v30 = vpop.permute.xlu0 %1307 }
 0x1df   : > { %6786 = vst [vmem:[#allocation141_spill] sm:$0xff] %v4974_v30 }
 0x1e1   : > { %1608 = vperm.xlu1 %4069, %v6787_v62  }
 0x1e2   : > { %1729 = vperm.xlu2 %4070, %v4644_v45   ;;  %v6798_v45 = vld [vmem:[#allocation47_spill] sm:$0xff] }
 0x1e3   : > { %v4978_v42 = vpop.permute.xlu1 %1297 }
 0x1e4   : > { %6788 = vst [vmem:[#allocation37_spill] sm:$0xff] %v4978_v42  ;;  %v4980_v54 = vpop.permute.xlu2 %1463  ;;  %1734 = vperm.xlu0 %4068, %v6790_v3   ;;  %v6830_v42 = vld [vmem:[#allocation87_spill] sm:$0xff] }
 0x1e5   : > { %6789 = vst [vmem:[#allocation142_spill] sm:$0xff] %v4980_v54 }
 0x1e6   : > { %v4983_v11 = vpop.permute.xlu0 %1322 }
 0x1e7   : > { %6791 = vst [vmem:[#allocation46_spill] sm:$0xff] %v4983_v11  ;;  %v6802_v11 = vld [vmem:[#allocation57_spill] sm:$0xff] }
 0x1e9   : > { %1724 = vperm.xlu1 %4069, %v6792_v10  }
 0x1ea   : > { %1744 = vperm.xlu2 %4070, %v6793_v51   ;;  %v6804_v51 = vld [vmem:[#allocation52_spill] sm:$0xff] }
 0x1eb   : > { %v4987_v4 = vpop.permute.xlu1 %1312 }
 0x1ec   : > { %6794 = vst [vmem:[#allocation42_spill] sm:$0xff] %v4987_v4  ;;  %v4989_v61 = vpop.permute.xlu2 %1478  ;;  %1749 = vperm.xlu0 %4068, %v6796_v14  }
 0x1ed   : > { %6795 = vst [vmem:[#allocation55_spill] sm:$0xff] %v4989_v61 }
 0x1ee   : > { %v4992_v62 = vpop.permute.xlu0 %1337 }
 0x1ef   : > { %6797 = vst [vmem:[#allocation51_spill] sm:$0xff] %v4992_v62  ;;  %v6808_v62 = vld [vmem:[#allocation63_spill] sm:$0xff] }
 0x1f1   : > { %1739 = vperm.xlu1 %4069, %v6798_v45  }
 0x1f2   : > { %1759 = vperm.xlu2 %4070, %v6799_v2   ;;  %v6810_v2 = vld [vmem:[#allocation58_spill] sm:$0xff] }
 0x1f3   : > { %v4996_v16 = vpop.permute.xlu1 %1327 }
 0x1f4   : > { %6800 = vst [vmem:[#allocation47_spill] sm:$0xff] %v4996_v16  ;;  %v4998_v3 = vpop.permute.xlu2 %1493  ;;  %1764 = vperm.xlu0 %4068, %v6802_v11   ;;  %v6811_v16 = vld [vmem:[#allocation73_spill] sm:$0xff] }
 0x1f5   : > { %6801 = vst [vmem:[#allocation61_spill] sm:$0xff] %v4998_v3  ;;  %v6933_v3 = vld [vmem:[#allocation24_spill] sm:$0xff] }
 0x1f6   : > { %v5001_v10 = vpop.permute.xlu0 %1352 }
 0x1f7   : > { %6803 = vst [vmem:[#allocation57_spill] sm:$0xff] %v5001_v10  ;;  %v6814_v10 = vld [vmem:[#allocation69_spill] sm:$0xff] }
 0x1f9   : > { %1754 = vperm.xlu1 %4069, %v6804_v51  }
 0x1fa   : > { %1774 = vperm.xlu2 %4070, %v6805_v39   ;;  %v6816_v39 = vld [vmem:[#allocation64_spill] sm:$0xff] }
 0x1fb   : > { %v5005_v4 = vpop.permute.xlu1 %1342 }
 0x1fc   : > { %6806 = vst [vmem:[#allocation52_spill] sm:$0xff] %v5005_v4  ;;  %v5007_v14 = vpop.permute.xlu2 %1508  ;;  %1779 = vperm.xlu0 %4068, %v6808_v62   ;;  %v6817_v4 = vld [vmem:[#allocation79_spill] sm:$0xff] }
 0x1fd   : > { %6807 = vst [vmem:[#allocation67_spill] sm:$0xff] %v5007_v14  ;;  %v6923_v14 = vld [vmem:[#allocation13_spill] sm:$0xff] }
 0x1fe   : > { %v5010_v45 = vpop.permute.xlu0 %1468 }
 0x1ff   : > { %6809 = vst [vmem:[#allocation63_spill] sm:$0xff] %v5010_v45  ;;  %v6926_v45 = vld [vmem:[#allocation18_spill] sm:$0xff] }
 0x201   : > { %1769 = vperm.xlu1 %4069, %v6810_v2  }
 0x202   : > { %1789 = vperm.xlu2 %4070, %v6811_v16   ;;  %v6821_v16 = vld [vmem:[#allocation70_spill] sm:$0xff] }
 0x203   : > { %v5014_v55 = vpop.permute.xlu1 %1357 }
 0x204   : > { %6812 = vst [vmem:[#allocation58_spill] sm:$0xff] %v5014_v55  ;;  %v5016_v11 = vpop.permute.xlu2 %1523  ;;  %1794 = vperm.xlu0 %4068, %v6814_v10   ;;  %v6822_v55 = vld [vmem:[#allocation85_spill] sm:$0xff] }
 0x205   : > { %6813 = vst [vmem:[#allocation73_spill] sm:$0xff] %v5016_v11  ;;  %v1974_v11 = vld [vmem:[#allocation2 + $0x150] sm:$0xff] }
 0x206   : > { %v5019_v51 = vpop.permute.xlu0 %1483 }
 0x207   : > { %6815 = vst [vmem:[#allocation69_spill] sm:$0xff] %v5019_v51 }
 0x209   : > { %1784 = vperm.xlu1 %4069, %v6816_v39  }
 0x20a   : > { %1804 = vperm.xlu2 %4070, %v6817_v4   ;;  %v6826_v4 = vld [vmem:[#allocation76_spill] sm:$0xff] }
 0x20b   : > { %v5023_v30 = vpop.permute.xlu1 %1473 }
 0x20c   : > { %v5025_v62 = vpop.permute.xlu2 %1538  ;;  %1809 = vperm.xlu0 %4068, %v6819_v38  }
 0x20d   : > { %6818 = vst [vmem:[#allocation64_spill] sm:$0xff] %v5025_v62 }
 0x20e   : > { %v5028_v2 = vpop.permute.xlu0 %1498 }
 0x20f   : > { %6820 = vst [vmem:[#allocation79_spill] sm:$0xff] %v5028_v2 }
 0x211   : > { %1799 = vperm.xlu1 %4069, %v6821_v16  }
 0x212   : > { %1819 = vperm.xlu2 %4070, %v6822_v55   ;;  %v6832_v55 = vld [vmem:[#allocation82_spill] sm:$0xff] }
 0x213   : > { %v5032_v1 = vpop.permute.xlu1 %1488 }
 0x214   : > { %v5034_v10 = vpop.permute.xlu2 %1553  ;;  %1824 = vperm.xlu0 %4068, %v6824_v25  }
 0x215   : > { %6823 = vst [vmem:[#allocation75_spill] sm:$0xff] %v5034_v10 }
 0x216   : > { %v5037_v39 = vpop.permute.xlu0 %1513 }
 0x217   : > { %6825 = vst [vmem:[#allocation70_spill] sm:$0xff] %v5037_v39 }
 0x219   : > { %1814 = vperm.xlu1 %4069, %v6826_v4  }
 0x21a   : > { %1834 = vperm.xlu2 %4070, %v6827_v63   ;;  %v6836_v63 = vld [vmem:[#allocation88_spill] sm:$0xff] }
 0x21b   : > { %v5041_v60 = vpop.permute.xlu1 %1503 }
 0x21c   : > { %6828 = vst [vmem:[#allocation85_spill] sm:$0xff] %v5041_v60  ;;  %v5043_v38 = vpop.permute.xlu2 %1568  ;;  %1839 = vperm.xlu0 %4068, %v6830_v42  }
 0x21d   : > { %6829 = vst [vmem:[#allocation81_spill] sm:$0xff] %v5043_v38 }
 0x21e   : > { %v5046_v16 = vpop.permute.xlu0 %1528 }
 0x21f   : > { %6831 = vst [vmem:[#allocation76_spill] sm:$0xff] %v5046_v16 }
 0x221   : > { %1829 = vperm.xlu1 %4069, %v6832_v55  }
 0x222   : > { %1849 = vperm.xlu2 %4070, %v4764_v0   ;;  %v5066_v0 = vld [vmem:[#allocation2 + $0x18a] sm:$0xff] }
 0x223   : > { %v5050_v10 = vpop.permute.xlu1 %1518  ;;  %6841 = vst [vmem:[#allocation144_spill] sm:$0xff] %v5066_v0 }
 0x224   : > { %6833 = vst [vmem:[#allocation91_spill] sm:$0xff] %v5050_v10  ;;  %v5052_v25 = vpop.permute.xlu2 %1583  ;;  %1854 = vperm.xlu0 %4068, %v4753_v23   ;;  %v6936_v10 = vld [vmem:[#allocation71_spill] sm:$0xff] }
 0x225   : > { %6834 = vst [vmem:[#allocation87_spill] sm:$0xff] %v5052_v25  ;;  %v1950_v25 = vld [vmem:[#allocation2 + $0x30] sm:$0xff] }
 0x226   : > { %v5055_v4 = vpop.permute.xlu0 %1543 }
 0x227   : > { %6835 = vst [vmem:[#allocation82_spill] sm:$0xff] %v5055_v4 }
 0x229   : > { %1844 = vperm.xlu1 %4069, %v6836_v63  }
 0x22a   : > { %1864 = vperm.xlu2 %4070, %v4777_v48   ;;  %v5074_v48 = vld [vmem:[#allocation2 + $0x182] sm:$0xff] }
 0x22b   : > { %v5059_v38 = vpop.permute.xlu1 %1533  ;;  %6845 = vst [vmem:[#allocation146_spill] sm:$0xff] %v5074_v48 }
 0x22c   : > { %6837 = vst [vmem:[#allocation88_spill] sm:$0xff] %v5059_v38  ;;  %v5061_v42 = vpop.permute.xlu2 %1598  ;;  %1869 = vperm.xlu0 %4068, %v6839_v44   ;;  %v1953_v44 = vld [vmem:[#allocation2 + $0x50] sm:$0xff] }
 0x22d   : > { %6838 = vst [vmem:[#allocation143_spill] sm:$0xff] %v5061_v42  ;;  %v1952_v42 = vld [vmem:[#allocation2 + $0x48] sm:$0xff]  ;;  %v6925_v38 = vld [vmem:[#allocation16_spill] sm:$0xff] }
 0x22e   : > { %v5064_v55 = vpop.permute.xlu0 %1558 }
 0x22f   : > { %6840 = vst [vmem:[#allocation97_spill] sm:$0xff] %v5064_v55 }
 0x231   : > { %1859 = vperm.xlu1 %4069, %v6842_v27  }
 0x232   : > { %1879 = vperm.xlu2 %4070, %v5066_v0  }
 0x233   : > { %v5070_v23 = vpop.permute.xlu1 %1548 }
 0x234   : > { %6843 = vst [vmem:[#allocation93_spill] sm:$0xff] %v5070_v23  ;;  %v5072_v63 = vpop.permute.xlu2 %1613  ;;  %1986 = vperm.xlu0 %4068, %v1950_v25   ;;  %v1955_v23 = vld [vmem:[#allocation2 + $0x68] sm:$0xff]  ;;  %v1956_v25 = vld [vmem:[#allocation2 + $0x78] sm:$0xff] }
 0x235   : > { %6844 = vst [vmem:[#allocation145_spill] sm:$0xff] %v5072_v63 }
 0x236   : > { %v5076_v4 = vpop.permute.xlu0 %1573 }
 0x237   : > { %6846 = vst [vmem:[#allocation147_spill] sm:$0xff] %v5076_v4 }
 0x239   : > { %1874 = vperm.xlu1 %4069, %v5074_v48  }
 0x23a   : > { %1996 = vperm.xlu2 %4070, %v1952_v42   ;;  %v1958_v42 = vld [vmem:[#allocation2 + $0x90] sm:$0xff] }
 0x23b   : > { %v5079_v55 = vpop.permute.xlu1 %1563 }
 0x23c   : > { %6847 = vst [vmem:[#allocation148_spill] sm:$0xff] %v5079_v55  ;;  %v5081_v27 = vpop.permute.xlu2 %1729  ;;  %2001 = vperm.xlu0 %4068, %v1953_v44   ;;  %v1959_v55 = vld [vmem:[#allocation2 + $0x98] sm:$0xff] }
 0x23d   : > { %6848 = vst [vmem:[#allocation149_spill] sm:$0xff] %v5081_v27 }
 0x23e   : > { %v5083_v52 = vpop.permute.xlu0 %1588 }
 0x23f   : > { %6849 = vst [vmem:[#allocation150_spill] sm:$0xff] %v5083_v52 }
 0x241   : > { %1991 = vperm.xlu1 %4069, %v1951_v17   ;;  %v1957_v17 = vld [vmem:[#allocation2 + $0x80] sm:$0xff] }
 0x242   : > { %2011 = vperm.xlu2 %4070, %v1955_v23   ;;  %v1961_v23 = vld [vmem:[#allocation2 + $0xb0] sm:$0xff] }
 0x243   : > { %v5085_v63 = vpop.permute.xlu1 %1578 }
 0x244   : > { %6850 = vst [vmem:[#allocation151_spill] sm:$0xff] %v5085_v63  ;;  %v5087_v4 = vpop.permute.xlu2 %1744  ;;  %2016 = vperm.xlu0 %4068, %v1956_v25   ;;  %v1962_v63 = vld [vmem:[#allocation2 + $0xc0] sm:$0xff] }
 0x245   : > { %6851 = vst [vmem:[#allocation152_spill] sm:$0xff] %v5087_v4 }
 0x246   : > { %v5089_v33 = vpop.permute.xlu0 %1603 }
 0x247   : > { %6852 = vst [vmem:[#allocation153_spill] sm:$0xff] %v5089_v33 }
 0x249   : > { %2006 = vperm.xlu1 %4069, %v1954_v35   ;;  %v1960_v35 = vld [vmem:[#allocation2 + $0xa8] sm:$0xff] }
 0x24a   : > { %2026 = vperm.xlu2 %4070, %v1958_v42   ;;  %v1964_v42 = vld [vmem:[#allocation2 + $0xd8] sm:$0xff] }
 0x24b   : > { %v5091_v44 = vpop.permute.xlu1 %1593 }
 0x24c   : > { %6853 = vst [vmem:[#allocation154_spill] sm:$0xff] %v5091_v44  ;;  %v5093_v16 = vpop.permute.xlu2 %1759  ;;  %2031 = vperm.xlu0 %4068, %v1959_v55   ;;  %v1965_v44 = vld [vmem:[#allocation2 + $0xe0] sm:$0xff] }
 0x24d   : > { %6854 = vst [vmem:[#allocation155_spill] sm:$0xff] %v5093_v16  ;;  %v1977_v16 = vld [vmem:[#allocation2 + $0x170] sm:$0xff] }
 0x24e   : > { %v5095_v52 = vpop.permute.xlu0 %1618 }
 0x24f   : > { %6855 = vst [vmem:[#allocation156_spill] sm:$0xff] %v5095_v52 }
 0x251   : > { %2021 = vperm.xlu1 %4069, %v1957_v17   ;;  %v1963_v17 = vld [vmem:[#allocation2 + $0xc8] sm:$0xff] }
 0x252   : > { %2041 = vperm.xlu2 %4070, %v1961_v23   ;;  %v1967_v23 = vld [vmem:[#allocation2 + $0xf8] sm:$0xff] }
 0x253   : > { %v5097_v25 = vpop.permute.xlu1 %1608 }
 0x254   : > { %6856 = vst [vmem:[#allocation157_spill] sm:$0xff] %v5097_v25  ;;  %v5099_v22 = vpop.permute.xlu2 %1774  ;;  %2046 = vperm.xlu0 %4068, %v1962_v63   ;;  %v1968_v25 = vld [vmem:[#allocation2 + $0x108] sm:$0xff] }
 0x255   : > { %6857 = vst [vmem:[#allocation158_spill] sm:$0xff] %v5099_v22 }
 0x256   : > { %v5101_v33 = vpop.permute.xlu0 %1734 }
 0x259   : > { %2036 = vperm.xlu1 %4069, %v1960_v35   ;;  %v1966_v35 = vld [vmem:[#allocation2 + $0xf0] sm:$0xff] }
 0x25a   : > { %2056 = vperm.xlu2 %4070, %v1964_v42   ;;  %v1970_v42 = vld [vmem:[#allocation2 + $0x120] sm:$0xff] }
 0x25b   : > { %v5103_v55 = vpop.permute.xlu1 %1724 }
 0x25c   : > { %6858 = vst [vmem:[#allocation159_spill] sm:$0xff] %v5103_v55  ;;  %v5105_v62 = vpop.permute.xlu2 %1789  ;;  %2061 = vperm.xlu0 %4068, %v1965_v44   ;;  %v6943_v55 = vld [vmem:[#allocation62_spill] sm:$0xff] }
 0x25d   : > { %6859 = vst [vmem:[#allocation160_spill] sm:$0xff] %v5105_v62 }
 0x25e   : > { %v5107_v52 = vpop.permute.xlu0 %1749 }
 0x261   : > { %2051 = vperm.xlu1 %4069, %v1963_v17   ;;  %v1969_v17 = vld [vmem:[#allocation2 + $0x110] sm:$0xff] }
 0x262   : > { %2071 = vperm.xlu2 %4070, %v1967_v23   ;;  %v1973_v23 = vld [vmem:[#allocation2 + $0x140] sm:$0xff] }
 0x263   : > { %v5109_v63 = vpop.permute.xlu1 %1739 }
 0x264   : > { %6860 = vst [vmem:[#allocation161_spill] sm:$0xff] %v5109_v63  ;;  %v5111_v22 = vpop.permute.xlu2 %1804  ;;  %2076 = vperm.xlu0 %4068, %v1968_v25   ;;  %v6931_v63 = vld [vmem:[#allocation23_spill] sm:$0xff] }
 0x265   : > { %6861 = vst [vmem:[#allocation162_spill] sm:$0xff] %v5111_v22 }
 0x266   : > { %v5113_v39 = vpop.permute.xlu0 %1764 }
 0x267   : > { %6862 = vst [vmem:[#allocation163_spill] sm:$0xff] %v5113_v39  ;;  %v2235_v39 = vld [vmem:[#allocation2 + $0x151] sm:$0xff] }
 0x269   : > { %2066 = vperm.xlu1 %4069, %v1966_v35   ;;  %v1972_v35 = vld [vmem:[#allocation2 + $0x138] sm:$0xff] }
 0x26a   : > { %2086 = vperm.xlu2 %4070, %v1970_v42   ;;  %v1976_v42 = vld [vmem:[#allocation2 + $0x168] sm:$0xff] }
 0x26b   : > { %v5115_v44 = vpop.permute.xlu1 %1754 }
 0x26c   : > { %6863 = vst [vmem:[#allocation164_spill] sm:$0xff] %v5115_v44  ;;  %v5117_v62 = vpop.permute.xlu2 %1819  ;;  %2091 = vperm.xlu0 %4068, %v1971_v40  }
 0x26d   : > { %6864 = vst [vmem:[#allocation165_spill] sm:$0xff] %v5117_v62 }
 0x26e   : > { %v5119_v36 = vpop.permute.xlu0 %1779 }
 0x26f   : > { %6865 = vst [vmem:[#allocation166_spill] sm:$0xff] %v5119_v36 }
 0x271   : > { %2081 = vperm.xlu1 %4069, %v1969_v17   ;;  %v1975_v17 = vld [vmem:[#allocation2 + $0x158] sm:$0xff] }
 0x272   : > { %2101 = vperm.xlu2 %4070, %v1973_v23   ;;  %v1980_v23 = vld [vmem:[#allocation2 + $0x198] sm:$0xff] }
 0x273   : > { %v5121_v25 = vpop.permute.xlu1 %1769 }
 0x274   : > { %6866 = vst [vmem:[#allocation167_spill] sm:$0xff] %v5121_v25  ;;  %v5123_v22 = vpop.permute.xlu2 %1834  ;;  %2106 = vperm.xlu0 %4068, %v1974_v11  }
 0x275   : > { %6867 = vst [vmem:[#allocation168_spill] sm:$0xff] %v5123_v22 }
 0x276   : > { %v5125_v37 = vpop.permute.xlu0 %1794 }
 0x277   : > { %6868 = vst [vmem:[#allocation169_spill] sm:$0xff] %v5125_v37  ;;  %v6922_v37 = vld [vmem:[#allocation17_spill] sm:$0xff] }
 0x279   : > { %2096 = vperm.xlu1 %4069, %v1972_v35  }
 0x27a   : > { %2116 = vperm.xlu2 %4070, %v1976_v42   ;;  %v2211_v42 = vld [vmem:[#allocation2 + $0x31] sm:$0xff] }
 0x27b   : > { %v5127_v40 = vpop.permute.xlu1 %1784 }
 0x27c   : > { %6869 = vst [vmem:[#allocation170_spill] sm:$0xff] %v5127_v40  ;;  %v5129_v62 = vpop.permute.xlu2 %1849  ;;  %2121 = vperm.xlu0 %4068, %v1977_v16   ;;  %v2212_v40 = vld [vmem:[#allocation2 + $0x39] sm:$0xff] }
 0x27d   : > { %6870 = vst [vmem:[#allocation171_spill] sm:$0xff] %v5129_v62 }
 0x27e   : > { %v5131_v2 = vpop.permute.xlu0 %1809 }
 0x27f   : > { %6871 = vst [vmem:[#allocation172_spill] sm:$0xff] %v5131_v2 }
 0x281   : > { %2111 = vperm.xlu1 %4069, %v1975_v17   ;;  %v1981_v17 = vld [vmem:[#allocation2 + $0x1a0] sm:$0xff] }
 0x282   : > { %2131 = vperm.xlu2 %4070, %v4884_v58   ;;  %v2214_v58 = vld [vmem:[#allocation2 + $0x51] sm:$0xff] }
 0x283   : > { %v5134_v11 = vpop.permute.xlu1 %1799 }
 0x284   : > { %6872 = vst [vmem:[#allocation173_spill] sm:$0xff] %v5134_v11  ;;  %v5136_v22 = vpop.permute.xlu2 %1864  ;;  %2136 = vperm.xlu0 %4068, %v1980_v23   ;;  %v2215_v11 = vld [vmem:[#allocation2 + $0x61] sm:$0xff] }
 0x285   : > { %6873 = vst [vmem:[#allocation174_spill] sm:$0xff] %v5136_v22 }
 0x286   : > { %v5138_v35 = vpop.permute.xlu0 %1824 }
 0x287   : > { %6874 = vst [vmem:[#allocation175_spill] sm:$0xff] %v5138_v35 }
 0x289   : > { %2126 = vperm.xlu1 %4069, %v4867_v59   ;;  %v2213_v59 = vld [vmem:[#allocation2 + $0x49] sm:$0xff] }
 0x28a   : > { %2247 = vperm.xlu2 %4070, %v2211_v42   ;;  %v2217_v42 = vld [vmem:[#allocation2 + $0x79] sm:$0xff] }
 0x28b   : > { %v5141_v16 = vpop.permute.xlu1 %1814 }
 0x28c   : > { %6875 = vst [vmem:[#allocation176_spill] sm:$0xff] %v5141_v16  ;;  %v5143_v62 = vpop.permute.xlu2 %1879  ;;  %2252 = vperm.xlu0 %4068, %v2212_v40   ;;  %v2218_v16 = vld [vmem:[#allocation2 + $0x81] sm:$0xff] }
 0x28d   : > { %6876 = vst [vmem:[#allocation177_spill] sm:$0xff] %v5143_v62 }
 0x28e   : > { %v5145_v2 = vpop.permute.xlu0 %1839 }
 0x28f   : > { %6877 = vst [vmem:[#allocation178_spill] sm:$0xff] %v5145_v2 }
 0x291   : > { %2141 = vperm.xlu1 %4069, %v1981_v17   ;;  %v2216_v17 = vld [vmem:[#allocation2 + $0x69] sm:$0xff] }
 0x292   : > { %2262 = vperm.xlu2 %4070, %v2214_v58   ;;  %v2220_v58 = vld [vmem:[#allocation2 + $0x99] sm:$0xff] }
 0x293   : > { %v5147_v23 = vpop.permute.xlu1 %1829 }
 0x294   : > { %6878 = vst [vmem:[#allocation179_spill] sm:$0xff] %v5147_v23  ;;  %v5149_v22 = vpop.permute.xlu2 %1996  ;;  %2267 = vperm.xlu0 %4068, %v2215_v11   ;;  %v2221_v23 = vld [vmem:[#allocation2 + $0xa9] sm:$0xff] }
 0x296   : > { %v5151_v35 = vpop.permute.xlu0 %1854 }
 0x297   : > { %6879 = vst [vmem:[#allocation180_spill] sm:$0xff] %v5151_v35 }
 0x299   : > { %2257 = vperm.xlu1 %4069, %v2213_v59   ;;  %v2219_v59 = vld [vmem:[#allocation2 + $0x91] sm:$0xff] }
 0x29a   : > { %2277 = vperm.xlu2 %4070, %v2217_v42   ;;  %v2223_v42 = vld [vmem:[#allocation2 + $0xc1] sm:$0xff] }
 0x29b   : > { %v5153_v40 = vpop.permute.xlu1 %1844 }
 0x29c   : > { %6880 = vst [vmem:[#allocation181_spill] sm:$0xff] %v5153_v40  ;;  %v5155_v62 = vpop.permute.xlu2 %2011  ;;  %2282 = vperm.xlu0 %4068, %v2218_v16   ;;  %v2224_v40 = vld [vmem:[#allocation2 + $0xc9] sm:$0xff] }
 0x29e   : > { %v5157_v2 = vpop.permute.xlu0 %1869 }
 0x29f   : > { %6881 = vst [vmem:[#allocation182_spill] sm:$0xff] %v5157_v2 }
 0x2a1   : > { %2272 = vperm.xlu1 %4069, %v2216_v17   ;;  %v2222_v17 = vld [vmem:[#allocation2 + $0xb1] sm:$0xff] }
 0x2a2   : > { %2292 = vperm.xlu2 %4070, %v2220_v58   ;;  %v2226_v58 = vld [vmem:[#allocation2 + $0xe1] sm:$0xff] }
 0x2a3   : > { %v5159_v11 = vpop.permute.xlu1 %1859 }
 0x2a4   : > { %6882 = vst [vmem:[#allocation183_spill] sm:$0xff] %v5159_v11  ;;  %v5161_v28 = vpop.permute.xlu2 %2026  ;;  %2297 = vperm.xlu0 %4068, %v2221_v23   ;;  %v2472_v11 = vld [vmem:[#allocation2 + $0x32] sm:$0xff] }
 0x2a5   : > { %6883 = vst [vmem:[#allocation184_spill] sm:$0xff] %v5161_v28 }
 0x2a6   : > { %v5163_v35 = vpop.permute.xlu0 %1986 }
 0x2a7   : > { %6884 = vst [vmem:[#allocation185_spill] sm:$0xff] %v5163_v35  ;;  %v2492_v35 = vld [vmem:[#allocation2 + $0x122] sm:$0xff] }
 0x2a9   : > { %2287 = vperm.xlu1 %4069, %v2219_v59   ;;  %v2225_v59 = vld [vmem:[#allocation2 + $0xd9] sm:$0xff] }
 0x2aa   : > { %2307 = vperm.xlu2 %4070, %v2223_v42   ;;  %v2474_v42 = vld [vmem:[#allocation2 + $0x4a] sm:$0xff] }
 0x2ab   : > { %v5165_v16 = vpop.permute.xlu1 %1874 }
 0x2ac   : > { %6885 = vst [vmem:[#allocation186_spill] sm:$0xff] %v5165_v16  ;;  %v5167_v25 = vpop.permute.xlu2 %2041  ;;  %2312 = vperm.xlu0 %4068, %v2224_v40   ;;  %v2475_v16 = vld [vmem:[#allocation2 + $0x52] sm:$0xff] }
 0x2ad   : > { %6886 = vst [vmem:[#allocation187_spill] sm:$0xff] %v5167_v25  ;;  %v6930_v25 = vld [vmem:[#allocation20_spill] sm:$0xff] }
 0x2ae   : > { %v5169_v2 = vpop.permute.xlu0 %2001 }
 0x2af   : > { %6887 = vst [vmem:[#allocation188_spill] sm:$0xff] %v5169_v2 }
 0x2b1   : > { %2302 = vperm.xlu1 %4069, %v2222_v17   ;;  %v2473_v17 = vld [vmem:[#allocation2 + $0x3a] sm:$0xff] }
 0x2b2   : > { %2322 = vperm.xlu2 %4070, %v2226_v58   ;;  %v2477_v58 = vld [vmem:[#allocation2 + $0x6a] sm:$0xff] }
 0x2b3   : > { %v5171_v23 = vpop.permute.xlu1 %1991 }
 0x2b4   : > { %6888 = vst [vmem:[#allocation189_spill] sm:$0xff] %v5171_v23  ;;  %v5173_v46 = vpop.permute.xlu2 %2056  ;;  %2508 = vperm.xlu0 %4068, %v2472_v11   ;;  %v2478_v23 = vld [vmem:[#allocation2 + $0x7a] sm:$0xff] }
 0x2b5   : > { %6889 = vst [vmem:[#allocation190_spill] sm:$0xff] %v5173_v46 }
 0x2b6   : > { %v5175_v4 = vpop.permute.xlu0 %2016 }
 0x2b7   : > { %6890 = vst [vmem:[#allocation191_spill] sm:$0xff] %v5175_v4 }
 0x2b9   : > { %2317 = vperm.xlu1 %4069, %v2225_v59   ;;  %v2476_v59 = vld [vmem:[#allocation2 + $0x62] sm:$0xff] }
 0x2ba   : > { %2518 = vperm.xlu2 %4070, %v2474_v42   ;;  %v2480_v42 = vld [vmem:[#allocation2 + $0x92] sm:$0xff] }
 0x2bb   : > { %v5177_v40 = vpop.permute.xlu1 %2006 }
 0x2bc   : > { %6891 = vst [vmem:[#allocation192_spill] sm:$0xff] %v5177_v40  ;;  %v5179_v51 = vpop.permute.xlu2 %2071  ;;  %2523 = vperm.xlu0 %4068, %v2475_v16   ;;  %v2481_v40 = vld [vmem:[#allocation2 + $0x9a] sm:$0xff] }
 0x2bd   : > { %6892 = vst [vmem:[#allocation193_spill] sm:$0xff] %v5179_v51 }
 0x2be   : > { %v5181_v44 = vpop.permute.xlu0 %2031 }
 0x2bf   : > { %6893 = vst [vmem:[#allocation194_spill] sm:$0xff] %v5181_v44 }
 0x2c1   : > { %2513 = vperm.xlu1 %4069, %v2473_v17   ;;  %v2479_v17 = vld [vmem:[#allocation2 + $0x82] sm:$0xff] }
 0x2c2   : > { %2533 = vperm.xlu2 %4070, %v2477_v58   ;;  %v2483_v58 = vld [vmem:[#allocation2 + $0xb2] sm:$0xff] }
 0x2c3   : > { %v5183_v11 = vpop.permute.xlu1 %2021 }
 0x2c4   : > { %6894 = vst [vmem:[#allocation195_spill] sm:$0xff] %v5183_v11  ;;  %v5185_v46 = vpop.permute.xlu2 %2086  ;;  %2538 = vperm.xlu0 %4068, %v2478_v23   ;;  %v2484_v11 = vld [vmem:[#allocation2 + $0xc2] sm:$0xff] }
 0x2c5   : > { %6895 = vst [vmem:[#allocation196_spill] sm:$0xff] %v5185_v46 }
 0x2c6   : > { %v5187_v4 = vpop.permute.xlu0 %2046 }
 0x2c7   : > { %6896 = vst [vmem:[#allocation197_spill] sm:$0xff] %v5187_v4 }
 0x2c9   : > { %2528 = vperm.xlu1 %4069, %v2476_v59   ;;  %v2482_v59 = vld [vmem:[#allocation2 + $0xaa] sm:$0xff] }
 0x2ca   : > { %2548 = vperm.xlu2 %4070, %v2480_v42   ;;  %v2486_v42 = vld [vmem:[#allocation2 + $0xda] sm:$0xff] }
 0x2cb   : > { %v5189_v16 = vpop.permute.xlu1 %2036 }
 0x2cc   : > { %6897 = vst [vmem:[#allocation198_spill] sm:$0xff] %v5189_v16  ;;  %v5191_v51 = vpop.permute.xlu2 %2101  ;;  %2553 = vperm.xlu0 %4068, %v2481_v40   ;;  %v2487_v16 = vld [vmem:[#allocation2 + $0xe2] sm:$0xff] }
 0x2cd   : > { %6898 = vst [vmem:[#allocation199_spill] sm:$0xff] %v5191_v51 }
 0x2ce   : > { %v5193_v44 = vpop.permute.xlu0 %2061 }
 0x2cf   : > { %6899 = vst [vmem:[#allocation200_spill] sm:$0xff] %v5193_v44 }
 0x2d1   : > { %2543 = vperm.xlu1 %4069, %v2479_v17   ;;  %v2485_v17 = vld [vmem:[#allocation2 + $0xca] sm:$0xff] }
 0x2d2   : > { %2563 = vperm.xlu2 %4070, %v2483_v58   ;;  %v2228_v58 = vld [vmem:[#allocation2 + $0xf9] sm:$0xff] }
 0x2d3   : > { %v5195_v23 = vpop.permute.xlu1 %2051 }
 0x2d4   : > { %6900 = vst [vmem:[#allocation201_spill] sm:$0xff] %v5195_v23  ;;  %v5197_v46 = vpop.permute.xlu2 %2116  ;;  %2568 = vperm.xlu0 %4068, %v2484_v11   ;;  %v2229_v23 = vld [vmem:[#allocation2 + $0x109] sm:$0xff] }
 0x2d5   : > { %6901 = vst [vmem:[#allocation202_spill] sm:$0xff] %v5197_v46 }
 0x2d6   : > { %v5199_v4 = vpop.permute.xlu0 %2076 }
 0x2d7   : > { %6902 = vst [vmem:[#allocation203_spill] sm:$0xff] %v5199_v4 }
 0x2d9   : > { %2558 = vperm.xlu1 %4069, %v2482_v59   ;;  %v2227_v59 = vld [vmem:[#allocation2 + $0xf1] sm:$0xff] }
 0x2da   : > { %2578 = vperm.xlu2 %4070, %v2486_v42   ;;  %v2488_v42 = vld [vmem:[#allocation2 + $0xf2] sm:$0xff] }
 0x2db   : > { %v5201_v40 = vpop.permute.xlu1 %2066 }
 0x2dc   : > { %6903 = vst [vmem:[#allocation204_spill] sm:$0xff] %v5201_v40  ;;  %v5203_v51 = vpop.permute.xlu2 %2131  ;;  %2583 = vperm.xlu0 %4068, %v2487_v16   ;;  %v2489_v40 = vld [vmem:[#allocation2 + $0xfa] sm:$0xff] }
 0x2dd   : > { %6904 = vst [vmem:[#allocation205_spill] sm:$0xff] %v5203_v51 }
 0x2de   : > { %v5205_v44 = vpop.permute.xlu0 %2091 }
 0x2df   : > { %6905 = vst [vmem:[#allocation206_spill] sm:$0xff] %v5205_v44 }
 0x2e1   : > { %2573 = vperm.xlu1 %4069, %v2485_v17   ;;  %v2230_v17 = vld [vmem:[#allocation2 + $0x111] sm:$0xff] }
 0x2e2   : > { %2332 = vperm.xlu2 %4070, %v2228_v58   ;;  %v2491_v58 = vld [vmem:[#allocation2 + $0x112] sm:$0xff] }
 0x2e3   : > { %v5207_v11 = vpop.permute.xlu1 %2081 }
 0x2e4   : > { %6906 = vst [vmem:[#allocation207_spill] sm:$0xff] %v5207_v11  ;;  %v5209_v46 = vpop.permute.xlu2 %2247  ;;  %2337 = vperm.xlu0 %4068, %v2229_v23   ;;  %v2231_v11 = vld [vmem:[#allocation2 + $0x121] sm:$0xff] }
 0x2e5   : > { %6907 = vst [vmem:[#allocation208_spill] sm:$0xff] %v5209_v46 }
 0x2e6   : > { %v5211_v4 = vpop.permute.xlu0 %2106 }
 0x2e7   : > { %6908 = vst [vmem:[#allocation209_spill] sm:$0xff] %v5211_v4 }
 0x2e9   : > { %2327 = vperm.xlu1 %4069, %v2227_v59   ;;  %v2490_v59 = vld [vmem:[#allocation2 + $0x10a] sm:$0xff] }
 0x2ea   : > { %2588 = vperm.xlu2 %4070, %v2488_v42   ;;  %v2233_v42 = vld [vmem:[#allocation2 + $0x139] sm:$0xff] }
 0x2eb   : > { %v5213_v16 = vpop.permute.xlu1 %2096 }
 0x2ec   : > { %6909 = vst [vmem:[#allocation210_spill] sm:$0xff] %v5213_v16  ;;  %v5215_v51 = vpop.permute.xlu2 %2262  ;;  %2593 = vperm.xlu0 %4068, %v2489_v40   ;;  %v2234_v16 = vld [vmem:[#allocation2 + $0x141] sm:$0xff]  ;;  %v6915_v40 = vmov 0.0  }
 0x2ed   : > { %6910 = vst [vmem:[#allocation211_spill] sm:$0xff] %v5215_v51  ;;  %v6924_v51 = vld [vmem:[#allocation15_spill] sm:$0xff] }
 0x2ee   : > { %v5217_v44 = vpop.permute.xlu0 %2121  ;;  %2834 = vst.msk [vmem:[#allocation4] sm:$0xff] %vm2801_vm3, %v6915_v40 }
 0x2ef   : > { %6911 = vst [vmem:[#allocation212_spill] sm:$0xff] %v5217_v44 }
 0x2f0   : > { %2838 = vst.msk [vmem:[#allocation4 + $0x90] sm:$0xff] %vm2801_vm3, %v6915_v40 }
 0x2f1   : > { %2342 = vperm.xlu1 %4069, %v2230_v17  }
 0x2f2   : > { %2603 = vperm.xlu2 %4070, %v2491_v58   ;;  %v2232_v58 = vld [vmem:[#allocation2 + $0x129] sm:$0xff] }
 0x2f3   : > { %v5219_v23 = vpop.permute.xlu1 %2111 }
 0x2f4   : > { %6912 = vst [vmem:[#allocation213_spill] sm:$0xff] %v5219_v23  ;;  %v5221_v0 = vpop.permute.xlu2 %2277  ;;  %2347 = vperm.xlu0 %4068, %v2231_v11   ;;  %v5236_v11 = vld [vmem:[%s6599_s1] ss:$0 sm:$0xff]  ;;  %v6920_v23 = vld [vmem:[#allocation12_spill] sm:$0xff] }
 0x2f5   : > { %6913 = vst [vmem:[#allocation214_spill] sm:$0xff] %v5221_v0  ;;  %v581_v27 = vmul.f32 %v5236_v11, %v6922_v37  ;;  %v5255_v48 = vmul.f32 %v5236_v11, %v6924_v51  ;;  %v586_v51 = vmul.f32 %v5236_v11, %v6930_v25  ;;  %v589_v36 = vmul.f32 %v5236_v11, %v6931_v63  ;;  %v5288_v25 = vld [vmem:[%s6599_s1 + $0x2] ss:$0 sm:$0xff]  ;;  %v5293_v63 = vld [vmem:[%s6599_s1 + $0x3] ss:$0 sm:$0xff] }
 0x2f6   : > { %v5223_v4 = vpop.permute.xlu0 %2136  ;;  %6918 = vst [vmem:[#allocation218_spill] sm:$0xff] %v5236_v11  ;;  %v595_v28 = vmul.f32 %v5236_v11, %v6942_v19  ;;  %v6948_v19 = vld [vmem:[#allocation74_spill] sm:$0xff] }
 0x2f7   : > { %6914 = vst [vmem:[#allocation215_spill] sm:$0xff] %v5223_v4  ;;  %v5243_v4 = vld [vmem:[%s6599_s1 + $0x1] ss:$0 sm:$0xff] }
 0x2f8   : > { %v842_v24 = vmul.f32 %v5243_v4, %v6943_v55  ;;  %v848_v12 = vmul.f32 %v5243_v4, %v6948_v19 }
 0x2f9   : > { %2598 = vperm.xlu1 %4069, %v2490_v59  }
 0x2fa   : > { %2357 = vperm.xlu2 %4070, %v2233_v42   ;;  %v2493_v42 = vld [vmem:[#allocation2 + $0x12a] sm:$0xff] }
 0x2fb   : > { %v5227_v44 = vpop.permute.xlu1 %2126 }
 0x2fc   : > { %6916 = vst [vmem:[#allocation216_spill] sm:$0xff] %v5227_v44  ;;  %v5231_v17 = vpop.permute.xlu2 %2292  ;;  %2362 = vperm.xlu0 %4068, %v2234_v16   ;;  %v2494_v44 = vld [vmem:[#allocation2 + $0x13a] sm:$0xff] }
 0x2fd   : > { %6917 = vst [vmem:[#allocation217_spill] sm:$0xff] %v5231_v17  ;;  %v584_v17 = vmul.f32 %v5236_v11, %v6920_v23  ;;  %v6921_v16 = vld [vmem:[#allocation14_spill] sm:$0xff]  ;;  %v582_v23 = vmul.f32 %v5236_v11, %v6926_v45  ;;  %v587_v45 = vmul.f32 %v5236_v11, %v6933_v3  ;;  %v6937_v3 = vld [vmem:[#allocation28_spill] sm:$0xff] }
 0x2fe   : > { %v5238_v59 = vpop.permute.xlu0 %2252  ;;  %v580_v0 = vmul.f32 %v5236_v11, %v6921_v16  ;;  %v6928_v16 = vld [vmem:[#allocation19_spill] sm:$0xff] }
 0x2ff   : > { %6919 = vst [vmem:[#allocation219_spill] sm:$0xff] %v5238_v59  ;;  %v585_v59 = vmul.f32 %v5236_v11, %v6923_v14  ;;  %v5267_v37 = vmul.f32 %v5236_v11, %v6928_v16  ;;  %v6935_v16 = vld [vmem:[#allocation44_spill] sm:$0xff] }
 0x300   : > { %v841_v46 = vmul.f32 %v5243_v4, %v6935_v16  ;;  %v6939_v16 = vld [vmem:[#allocation54_spill] sm:$0xff] }
 0x301   : > { %2352 = vperm.xlu1 %4069, %v2232_v58   ;;  %v5259_v58 = vmul.f32 %v5236_v11, %v6925_v38  ;;  %v847_v20 = vmul.f32 %v5243_v4, %v6939_v16  ;;  %v6945_v16 = vld [vmem:[#allocation33_spill] sm:$0xff] }
 0x302   : > { %2613 = vperm.xlu2 %4070, %v2493_v42   ;;  %v6929_v42 = vld [vmem:[#allocation21_spill] sm:$0xff]  ;;  %v593_v54 = vmul.f32 %v5236_v11, %v6945_v16  ;;  %v5321_v55 = vadd.f32 %v841_v46, %v580_v0  ;;  %v5330_v16 = vld [vmem:[%s6599_s1 + $0x4] ss:$0 sm:$0xff]  ;;  %v6950_v0 = vld [vmem:[#allocation80_spill] sm:$0xff] }
 0x303   : > { %v5263_v2 = vpop.permute.xlu1 %2141  ;;  %v583_v14 = vmul.f32 %v5236_v11, %v6929_v42  ;;  %v843_v42 = vmul.f32 %v5243_v4, %v6936_v10  ;;  %v6940_v10 = vld [vmem:[#allocation60_spill] sm:$0xff] }
 0x304   : > { %6927 = vst [vmem:[#allocation12_spill] sm:$0xff] %v5263_v2  ;;  %v5275_v38 = vpop.permute.xlu2 %2307  ;;  %2618 = vperm.xlu0 %4068, %v2494_v44   ;;  %v6934_v2 = vld [vmem:[#allocation26_spill] sm:$0xff]  ;;  %v590_v44 = vmul.f32 %v5236_v11, %v6937_v3  ;;  %v850_v34 = vmul.f32 %v5243_v4, %v6940_v10  ;;  %v853_v3 = vmul.f32 %v5243_v4, %v6944_v57  ;;  %v6946_v10 = vld [vmem:[#allocation68_spill] sm:$0xff]  ;;  %v6949_v57 = vld [vmem:[#allocation77_spill] sm:$0xff] }
 0x305   : > { %6932 = vst [vmem:[#allocation14_spill] sm:$0xff] %v5275_v38  ;;  %v592_v61 = vmul.f32 %v5236_v11, %v6934_v2  ;;  %v6938_v2 = vld [vmem:[#allocation49_spill] sm:$0xff]  ;;  %v845_v9 = vmul.f32 %v5243_v4, %v6946_v10  ;;  %v875_v5 = vadd.f32 %v843_v42, %v582_v23  ;;  %v846_v40 = vmul.f32 %v5243_v4, %v6949_v57 }
 0x306   : > { %v844_v38 = vmul.f32 %v5243_v4, %v6938_v2  ;;  %v5303_v13 = vpop.permute.xlu0 %2267  ;;  %v1104_v2 = vmul.f32 %v5288_v25, %v4815_v21  ;;  %v1365_v21 = vmul.f32 %v5293_v63, %v4892_v26  ;;  %v2236_v10 = vld [vmem:[#allocation2 + $0x159] sm:$0xff]  ;;  %v5334_v11 = vadd.f32 %v847_v20, %v586_v51 }
 0x307   : > { %6941 = vst [vmem:[#allocation17_spill] sm:$0xff] %v5303_v13  ;;  %v6947_v13 = vld [vmem:[#allocation72_spill] sm:$0xff]  ;;  %v5336_v46 = vadd.f32 %v850_v34, %v589_v36  ;;  %v851_v23 = vmul.f32 %v5243_v4, %v6950_v0  ;;  %v874_v42 = vadd.f32 %v842_v24, %v581_v27  ;;  %v5340_v19 = vadd.f32 %v853_v3, %v592_v61  ;;  %v5352_v34 = vld [vmem:[%s6599_s1 + $0x6] ss:$0 sm:$0xff]  ;;  %v6951_v61 = vld [vmem:[#allocation83_spill] sm:$0xff] }
 0x308   : > { %v856_v60 = vmul.f32 %v5243_v4, %v6947_v13  ;;  %v5332_v13 = vadd.f32 %v844_v38, %v583_v14  ;;  %v1136_v26 = vadd.f32 %v1104_v2, %v875_v5  ;;  %v1626_v57 = vmul.f32 %v5330_v16, %v5023_v30  ;;  %v6952_v14 = vld [vmem:[#allocation86_spill] sm:$0xff]  ;;  %v6953_v0 = vld [vmem:[#allocation89_spill] sm:$0xff] }
 0x309   : > { %2608 = vperm.xlu1 %4069, %v2492_v35   ;;  %v5347_v35 = vld [vmem:[%s6599_s1 + $0x5] ss:$0 sm:$0xff]  ;;  %v877_v36 = vadd.f32 %v845_v9, %v584_v17  ;;  %v880_v24 = vadd.f32 %v848_v12, %v587_v45  ;;  %v849_v5 = vmul.f32 %v5243_v4, %v6951_v61  ;;  %v878_v30 = vadd.f32 %v846_v40, %v585_v59 }
 0x30a   : > { %2367 = vperm.xlu2 %4070, %v2235_v39   ;;  %v5354_v39 = vadd.f32 %v856_v60, %v595_v28  ;;  %v854_v51 = vmul.f32 %v5243_v4, %v6952_v14  ;;  %v1397_v38 = vadd.f32 %v1365_v21, %v1136_v26  ;;  %v1887_v3 = vmul.f32 %v5347_v35, %v5101_v33  ;;  %v6954_v9 = vld [vmem:[#allocation94_spill] sm:$0xff] }
 0x30b   : > { %v2258_v20 = vpop.permute.xlu1 %2257  ;;  %v883_v2 = vadd.f32 %v851_v23, %v590_v44  ;;  %v852_v60 = vmul.f32 %v5243_v4, %v6953_v0  ;;  %v855_v12 = vmul.f32 %v5243_v4, %v6954_v9  ;;  %v1103_v28 = vmul.f32 %v5288_v25, %v4785_v15  ;;  %v2495_v17 = vld [vmem:[#allocation2 + $0x142] sm:$0xff] }
 0x30c   : > { %v5358_v27 = vpop.permute.xlu2 %2322  ;;  %2372 = vperm.xlu0 %4068, %v2236_v10   ;;  %v1106_v40 = vmul.f32 %v5288_v25, %v4794_v6  ;;  %v1107_v59 = vmul.f32 %v5288_v25, %v4824_v29  ;;  %v1658_v33 = vadd.f32 %v1626_v57, %v1397_v38  ;;  %v2149_v44 = vmul.f32 %v5352_v34, %v5149_v22  ;;  %v5381_v21 = vld [vmem:[%s6599_s1 + $0x7] ss:$0 sm:$0xff]  ;;  %v2238_v10 = vld [vmem:[#allocation2 + $0x171] sm:$0xff] }
 0x30d   : > { %v881_v15 = vadd.f32 %v849_v5, %v5255_v48  ;;  %v1109_v23 = vmul.f32 %v5288_v25, %v4803_v18  ;;  %v1112_v6 = vmul.f32 %v5288_v25, %v4812_v31  ;;  %v1102_v29 = vmul.f32 %v5288_v25, %v4819_v32  ;;  %v5398_v48 = vld [vmem:[%s6599_s1 + $0x8] ss:$0 sm:$0xff]  ;;  %v2496_v18 = vld [vmem:[#allocation2 + $0x152] sm:$0xff] }
 0x30e   : > { %v5370_v45 = vpop.permute.xlu0 %2282  ;;  %v5390_v26 = vadd.f32 %v854_v51, %v593_v54  ;;  %v1368_v22 = vmul.f32 %v5293_v63, %v4901_v7  ;;  %v1919_v57 = vadd.f32 %v1887_v3, %v1658_v33  ;;  %v2410_v61 = vmul.f32 %v5381_v21, %v2258_v20 }
 0x30f   : > { %v884_v31 = vadd.f32 %v852_v60, %v5259_v58  ;;  %v887_v5 = vadd.f32 %v855_v12, %v5267_v37  ;;  %v5402_v32 = vadd.f32 %v1103_v28, %v874_v42  ;;  %v1105_v54 = vmul.f32 %v5288_v25, %v4829_v43 }
 0x310   : > { %v5406_v7 = vadd.f32 %v1106_v40, %v877_v36  ;;  %v1139_v20 = vadd.f32 %v1107_v59, %v878_v30  ;;  %v1629_v14 = vmul.f32 %v5330_v16, %v5032_v1  ;;  %v2181_v51 = vadd.f32 %v2149_v44, %v1919_v57  ;;  %v5422_v1 = vld [vmem:[%s6600_s2] ss:$0 sm:$0xff]  ;;  %v2498_v40 = vld [vmem:[#allocation2 + $0x16a] sm:$0xff] }
 0x311   : > { %2623 = vperm.xlu1 %4069, %v2495_v17   ;;  %v5410_v3 = vadd.f32 %v1109_v23, %v880_v24  ;;  %v5412_v0 = vadd.f32 %v1112_v6, %v883_v2  ;;  %v1134_v58 = vadd.f32 %v1102_v29, %v5321_v55  ;;  %v1110_v37 = vmul.f32 %v5288_v25, %v4835_v49  ;;  %v6956_v23 = vld [vmem:[#allocation125_spill] sm:$0xff]  ;;  %v6957_v6 = vld [vmem:[#allocation127_spill] sm:$0xff] }
 0x312   : > { %2382 = vperm.xlu2 %4070, %v2238_v10   ;;  %v1400_v43 = vadd.f32 %v1368_v22, %v1139_v20  ;;  %v1890_v36 = vmul.f32 %v5347_v35, %v5107_v52  ;;  %v2442_v30 = vadd.f32 %v2410_v61, %v2181_v51  ;;  %v1137_v2 = vadd.f32 %v1105_v54, %v5332_v13  ;;  %v2237_v52 = vld [vmem:[#allocation2 + $0x169] sm:$0xff]  ;;  %v2499_v10 = vld [vmem:[#allocation2 + $0x172] sm:$0xff]  ;;  %v6960_v51 = vld [vmem:[#allocation142_spill] sm:$0xff] }
 0x313   : > { %v2273_v38 = vpop.permute.xlu1 %2272  ;;  %v1108_v55 = vmul.f32 %v5288_v25, %v4841_v41  ;;  %v1111_v49 = vmul.f32 %v5288_v25, %v4850_v50  ;;  %v1113_v60 = vmul.f32 %v5288_v25, %v4846_v53  ;;  %v2152_v28 = vmul.f32 %v5352_v34, %v5155_v62  ;;  %v6958_v22 = vld [vmem:[#allocation85_spill] sm:$0xff] }
 0x314   : > { %v2519_v42 = vpop.permute.xlu2 %2518  ;;  %2628 = vperm.xlu0 %4068, %v2496_v18   ;;  %v1661_v12 = vadd.f32 %v1629_v14, %v1400_v43  ;;  %v1142_v13 = vadd.f32 %v1110_v37, %v881_v15  ;;  %v1114_v41 = vmul.f32 %v5288_v25, %v4859_v56  ;;  %v1116_v50 = vmul.f32 %v5288_v25, %v4855_v47 }
 0x315   : > { %v2671_v24 = vmul.f32 %v5398_v48, %v2519_v42  ;;  %v1371_v53 = vmul.f32 %v5293_v63, %v4910_v8  ;;  %v6955_v59 = vmov 0.0   ;;  %v2413_v44 = vmul.f32 %v5381_v21, %v2273_v38 }
 0x316   : > { %v5432_v9 = vpop.permute.xlu0 %2297  ;;  %2836 = vst.msk [vmem:[#allocation4 + $0x8] sm:$0x3] %vm2835_vm4, %v6955_v59  ;;  %v1922_v33 = vadd.f32 %v1890_v36, %v1661_v12  ;;  %v1140_v15 = vadd.f32 %v1108_v55, %v5334_v11  ;;  %v1145_v56 = vadd.f32 %v1113_v60, %v884_v31  ;;  %v1363_v47 = vmul.f32 %v5293_v63, %v6956_v23  ;;  %v6959_v31 = vld [vmem:[#allocation128_spill] sm:$0xff] }
 0x317   : > { %v2703_v17 = vadd.f32 %v2671_v24, %v2442_v30  ;;  %2839 = vst.msk [vmem:[#allocation4 + $0x98] sm:$0x3] %vm2835_vm4, %v6955_v59  ;;  %v1374_v8 = vmul.f32 %v5293_v63, %v6957_v6  ;;  %v1143_v29 = vadd.f32 %v1111_v49, %v5336_v46  ;;  %v1632_v57 = vmul.f32 %v5330_v16, %v6958_v22  ;;  %v6961_v46 = vld [vmem:[#allocation163_spill] sm:$0xff]  ;;  %v6963_v49 = vld [vmem:[#allocation129_spill] sm:$0xff] }
 0x318   : > { %v2184_v61 = vadd.f32 %v2152_v28, %v1922_v33  ;;  %v5455_v20 = vadd.f32 %v1114_v41, %v5340_v19  ;;  %v1148_v11 = vadd.f32 %v1116_v50, %v887_v5  ;;  %v1366_v14 = vmul.f32 %v5293_v63, %v6959_v31  ;;  %v6962_v19 = vld [vmem:[#allocation114_spill] sm:$0xff]  ;;  %2850 = vst.msk [vmem:[#allocation4 + $0x19] sm:$0x1] %vm2841_vm5, %v6955_v59 }
 0x319   : > { %2377 = vperm.xlu1 %4069, %v2237_v52   ;;  %v2739_v62 = vadd.f32 %v5422_v1, %v2703_v17  ;;  %v1624_v38 = vmul.f32 %v5330_v16, %v6960_v51  ;;  %v1403_v42 = vadd.f32 %v1371_v53, %v1142_v13  ;;  %v1893_v43 = vmul.f32 %v5347_v35, %v6961_v46  ;;  %v2497_v52 = vld [vmem:[#allocation2 + $0x15a] sm:$0xff]  ;;  %v6964_v17 = vld [vmem:[#allocation159_spill] sm:$0xff]  ;;  %v6965_v13 = vld [vmem:[#allocation184_spill] sm:$0xff] }
 0x31a   : > { %2638 = vperm.xlu2 %4070, %v2498_v40   ;;  %v2445_v36 = vadd.f32 %v2413_v44, %v2184_v61  ;;  %v5467_v5 = vmul.f32 %v5288_v25, %v6962_v19  ;;  %v1395_v24 = vadd.f32 %v1363_v47, %v1134_v58  ;;  %v1406_v55 = vadd.f32 %v1374_v8, %v1145_v56  ;;  %v2240_v53 = vld [vmem:[#allocation2 + $0x189] sm:$0xff]  ;;  %v6966_v44 = vld [vmem:[#allocation130_spill] sm:$0xff]  ;;  %v6968_v47 = vld [vmem:[#allocation185_spill] sm:$0xff] }
 0x31b   : > { %v2771_v18 = vmax.f32 %v2739_v62, 0.0  ;;  %v2288_v54 = vpop.permute.xlu1 %2287  ;;  %v1364_v60 = vmul.f32 %v5293_v63, %v6963_v49  ;;  %v1664_v28 = vadd.f32 %v1632_v57, %v1403_v42  ;;  %v1885_v40 = vmul.f32 %v5347_v35, %v6964_v17  ;;  %v6967_v62 = vld [vmem:[#allocation131_spill] sm:$0xff]  ;;  %v2241_v57 = vld [vmem:[#allocation2 + $0x199] sm:$0xff]  ;;  %v6972_v46 = vld [vmem:[#allocation208_spill] sm:$0xff]  ;;  %2842 = vst.msk [vmem:[#allocation4 + $0x10] sm:$0x1] %vm2841_vm5, %v6955_v59 }
 0x31c   : > { %v2534_v37 = vpop.permute.xlu2 %2533  ;;  %2643 = vperm.xlu0 %4068, %v2499_v10   ;;  %v2155_v41 = vmul.f32 %v5352_v34, %v6965_v13  ;;  %v1398_v33 = vadd.f32 %v1366_v14, %v1137_v2  ;;  %v1377_v58 = vmul.f32 %v5293_v63, %v6966_v44  ;;  %v1369_v10 = vmul.f32 %v5293_v63, %v6967_v62  ;;  %v6969_v2 = vld [vmem:[#allocation132_spill] sm:$0xff]  ;;  %v6970_v31 = vld [vmem:[#allocation134_spill] sm:$0xff]  ;;  %v6971_v51 = vld [vmem:[#allocation91_spill] sm:$0xff] }
 0x31d   : > { %2804 = vst.msk [vmem:[#allocation3 + $0x10] sm:$0xff] %vm2801_vm3, %v2771_v18  ;;  %v2674_v30 = vmul.f32 %v5398_v48, %v2534_v37  ;;  %v1656_v56 = vadd.f32 %v1624_v38, %v1395_v24  ;;  %v1925_v23 = vadd.f32 %v1893_v43, %v1664_v28  ;;  %v2147_v6 = vmul.f32 %v5352_v34, %v6968_v47  ;;  %v6973_v19 = vld [vmem:[#allocation55_spill] sm:$0xff]  ;;  %v6974_v24 = vld [vmem:[#allocation61_spill] sm:$0xff] }
 0x31e   : > { %v5471_v12 = vpop.permute.xlu0 %2312  ;;  %v2416_v8 = vmul.f32 %v5381_v21, %v2288_v54  ;;  %v1396_v61 = vadd.f32 %v1364_v60, %v5402_v32  ;;  %v1367_v18 = vmul.f32 %v5293_v63, %v6969_v2  ;;  %v1372_v14 = vmul.f32 %v5293_v63, %v6970_v31  ;;  %v6975_v60 = vld [vmem:[#allocation166_spill] sm:$0xff]  ;;  %v6976_v44 = vld [vmem:[#allocation161_spill] sm:$0xff]  ;;  %v6979_v31 = vld [vmem:[#allocation63_spill] sm:$0xff]  ;;  %2843 = vst.msk [vmem:[#allocation4 + $0x20] sm:$0x1] %vm2841_vm5, %v6955_v59 }
 0x31f   : > { %v2706_v50 = vadd.f32 %v2674_v30, %v2445_v36  ;;  %v1635_v38 = vmul.f32 %v5330_v16, %v6971_v51  ;;  %v1917_v37 = vadd.f32 %v1885_v40, %v1656_v56  ;;  %v2187_v42 = vadd.f32 %v2155_v41, %v1925_v23  ;;  %v2239_v62 = vld [vmem:[#allocation2 + $0x181] sm:$0xff]  ;;  %v6980_v51 = vld [vmem:[#allocation88_spill] sm:$0xff]  ;;  %2844 = vst.msk [vmem:[#allocation4 + $0x30] sm:$0x1] %vm2841_vm5, %v6955_v59 }
 0x320   : > { %v2408_v54 = vmul.f32 %v5381_v21, %v6972_v46  ;;  %v1409_v30 = vadd.f32 %v1377_v58, %v1148_v11  ;;  %v1627_v32 = vmul.f32 %v5330_v16, %v6973_v19  ;;  %v1630_v49 = vmul.f32 %v5330_v16, %v6974_v24  ;;  %v6977_v23 = vld [vmem:[#allocation187_spill] sm:$0xff]  ;;  %2845 = vst.msk [vmem:[#allocation4 + $0x40] sm:$0x1] %vm2841_vm5, %v6955_v59 }
 0x321   : > { %2633 = vperm.xlu1 %4069, %v2497_v52   ;;  %v2742_v22 = vadd.f32 %v5422_v1, %v2706_v50  ;;  %v1896_v52 = vmul.f32 %v5347_v35, %v6975_v60  ;;  %v1401_v17 = vadd.f32 %v1369_v10, %v1140_v15  ;;  %v2179_v40 = vadd.f32 %v2147_v6, %v1917_v37  ;;  %v6982_v46 = vld [vmem:[#allocation211_spill] sm:$0xff] }
 0x322   : > { %2392 = vperm.xlu2 %4070, %v2240_v53   ;;  %v2448_v13 = vadd.f32 %v2416_v8, %v2187_v42  ;;  %v5503_v11 = vadd.f32 %v1367_v18, %v5406_v7  ;;  %v5505_v50 = vadd.f32 %v1372_v14, %v1143_v29  ;;  %v1667_v53 = vadd.f32 %v1635_v38, %v1406_v55  ;;  %v6978_v7 = vld [vmem:[#allocation188_spill] sm:$0xff] }
 0x323   : > { %v2774_v43 = vmax.f32 %v2742_v22, 0.0  ;;  %v2303_v36 = vpop.permute.xlu1 %2302  ;;  %v1888_v58 = vmul.f32 %v5347_v35, %v6976_v44  ;;  %v2158_v15 = vmul.f32 %v5352_v34, %v6977_v23  ;;  %v2440_v10 = vadd.f32 %v2408_v54, %v2179_v40  ;;  %v6986_v40 = vld [vmem:[#allocation144_spill] sm:$0xff]  ;;  %2846 = vst.msk [vmem:[#allocation4 + $0x50] sm:$0x1] %vm2841_vm5, %v6955_v59 }
 0x324   : > { %v2549_v28 = vpop.permute.xlu2 %2548  ;;  %2397 = vperm.xlu0 %4068, %v2241_v57   ;;  %v1659_v8 = vadd.f32 %v1627_v32, %v1398_v33  ;;  %v1662_v22 = vadd.f32 %v1630_v49, %v1401_v17  ;;  %v1928_v57 = vadd.f32 %v1896_v52, %v1667_v53  ;;  %v2150_v29 = vmul.f32 %v5352_v34, %v6978_v7  ;;  %v6981_v33 = vld [vmem:[#allocation146_spill] sm:$0xff]  ;;  %v6983_v32 = vld [vmem:[#allocation67_spill] sm:$0xff]  ;;  %v6984_v49 = vld [vmem:[#allocation149_spill] sm:$0xff] }
 0x325   : > { %2807 = vst.msk [vmem:[#allocation3 + $0x28] sm:$0xff] %vm2801_vm3, %v2774_v43  ;;  %v2677_v41 = vmul.f32 %v5398_v48, %v2549_v28  ;;  %v2419_v55 = vmul.f32 %v5381_v21, %v2303_v36  ;;  %v1625_v14 = vmul.f32 %v5330_v16, %v6979_v31  ;;  %v1638_v38 = vmul.f32 %v5330_v16, %v6980_v51  ;;  %v6985_v52 = vld [vmem:[#allocation169_spill] sm:$0xff] }
 0x326   : > { %v2509_v56 = vpop.permute.xlu0 %2508  ;;  %v1920_v37 = vadd.f32 %v1888_v58, %v1659_v8  ;;  %v2190_v42 = vadd.f32 %v2158_v15, %v1928_v57  ;;  %v2411_v54 = vmul.f32 %v5381_v21, %v6982_v46  ;;  %v5530_v24 = vmul.f32 %v5330_v16, %v6983_v32  ;;  %v6988_v15 = vld [vmem:[#allocation189_spill] sm:$0xff]  ;;  %v6989_v8 = vld [vmem:[#allocation190_spill] sm:$0xff]  ;;  %2847 = vst.msk [vmem:[#allocation4 + $0x60] sm:$0x1] %vm2841_vm5, %v6955_v59 }
 0x327   : > { %v2709_v47 = vadd.f32 %v2677_v41, %v2448_v13  ;;  %v2669_v6 = vmul.f32 %v5398_v48, %v2509_v56  ;;  %v1886_v60 = vmul.f32 %v5347_v35, %v6984_v49  ;;  %v1899_v28 = vmul.f32 %v5347_v35, %v6985_v52  ;;  %v6987_v56 = vld [vmem:[#allocation164_spill] sm:$0xff]  ;;  %v6992_v46 = vld [vmem:[#allocation69_spill] sm:$0xff]  ;;  %v6993_v49 = vld [vmem:[#allocation214_spill] sm:$0xff]  ;;  %2848 = vst.msk [vmem:[#allocation4 + $0x70] sm:$0x1] %vm2841_vm5, %v6955_v59 }
 0x328   : > { %v2182_v13 = vadd.f32 %v2150_v29, %v1920_v37  ;;  %v2451_v41 = vadd.f32 %v2419_v55, %v2190_v42  ;;  %v1657_v58 = vadd.f32 %v1625_v14, %v1396_v61  ;;  %v1891_v23 = vmul.f32 %v5347_v35, %v6987_v56  ;;  %v6991_v14 = vld [vmem:[#allocation219_spill] sm:$0xff]  ;;  %v2969_v42 = vld [vmem:[#allocation4 + $0x1] sm:$0xff]  ;;  %2849 = vst.msk [vmem:[#allocation4 + $0x80] sm:$0x1] %vm2841_vm5, %v6955_v59 }
 0x329   : > { %2387 = vperm.xlu1 %4069, %v2239_v62   ;;  %v2745_v2 = vadd.f32 %v5422_v1, %v2709_v47  ;;  %v2701_v18 = vadd.f32 %v2669_v6, %v2440_v10  ;;  %v1670_v62 = vadd.f32 %v1638_v38, %v1409_v30  ;;  %v2148_v10 = vmul.f32 %v5352_v34, %v6988_v15  ;;  %v2242_v47 = vld [vmem:[#allocation2 + $0x1a1] sm:$0xff] }
 0x32a   : > { %2648 = vperm.xlu2 %4070, %v6981_v33   ;;  %v2161_v57 = vmul.f32 %v5352_v34, %v6989_v8  ;;  %v2443_v7 = vadd.f32 %v2411_v54, %v2182_v13  ;;  %v2503_v30 = vld [vmem:[#allocation2 + $0x1a2] sm:$0xff]  ;;  %v1918_v55 = vadd.f32 %v1886_v60, %v1657_v58  ;;  %v2409_v51 = vmul.f32 %v5381_v21, %v6991_v14  ;;  %v2502_v8 = vld [vmem:[#allocation2 + $0x19a] sm:$0xff] }
 0x32b   : > { %v2777_v43 = vmax.f32 %v2745_v2, 0.0  ;;  %v2318_v36 = vpop.permute.xlu1 %2317  ;;  %v2737_v19 = vadd.f32 %v5422_v1, %v2701_v18  ;;  %v1931_v2 = vadd.f32 %v1899_v28, %v1670_v62  ;;  %v6990_v18 = vld [vmem:[#allocation191_spill] sm:$0xff]  ;;  %v1628_v54 = vmul.f32 %v5330_v16, %v6992_v46  ;;  %2851 = vst.msk [vmem:[#allocation4 + $0x29] sm:$0x1] %vm2841_vm5, %v6955_v59 }
 0x32c   : > { %v2564_v17 = vpop.permute.xlu2 %2563  ;;  %2653 = vperm.xlu0 %4068, %v6986_v40   ;;  %v2153_v31 = vmul.f32 %v5352_v34, %v6990_v18  ;;  %v2422_v38 = vmul.f32 %v5381_v21, %v2318_v36  ;;  %v2414_v36 = vmul.f32 %v5381_v21, %v6993_v49  ;;  %v6995_v56 = vld [vmem:[#allocation135_spill] sm:$0xff]  ;;  %v6998_v18 = vld [vmem:[#allocation17_spill] sm:$0xff]  ;;  %2852 = vst.msk [vmem:[#allocation4 + $0x39] sm:$0x1] %vm2841_vm5, %v6955_v59  ;;  %vm3610_vm4 = vcmask 523524  }
 0x32d   : > { %2810 = vst.msk [vmem:[#allocation3 + $0x40] sm:$0xff] %vm2801_vm3, %v2777_v43  ;;  %v2769_v53 = vmax.f32 %v2737_v19, 0.0  ;;  %v2680_v44 = vmul.f32 %v5398_v48, %v2564_v17  ;;  %v1923_v43 = vadd.f32 %v1891_v23, %v1662_v22  ;;  %v2180_v19 = vadd.f32 %v2148_v10, %v1918_v55  ;;  %v6994_v17 = vld [vmem:[#allocation152_spill] sm:$0xff] }
 0x32e   : > { %v2524_v6 = vpop.permute.xlu0 %2523  ;;  %v2193_v32 = vadd.f32 %v2161_v57, %v1931_v2  ;;  %v1889_v40 = vmul.f32 %v5347_v35, %v6994_v17  ;;  %v1370_v23 = vmul.f32 %v5293_v63, %v6995_v56  ;;  %v1660_v15 = vadd.f32 %v1628_v54, %v5503_v11  ;;  %v6996_v10 = vld [vmem:[#allocation192_spill] sm:$0xff]  ;;  %2853 = vst.msk [vmem:[#allocation4 + $0x49] sm:$0x1] %vm2841_vm5, %v6955_v59  ;;  %v7003_v17 = vld [vmem:[#allocation155_spill] sm:$0xff] }
 0x32f   : > { %2802 = vst.msk [vmem:[#allocation3] sm:$0xff] %vm2801_vm3, %v2769_v53  ;;  %v2712_v29 = vadd.f32 %v2680_v44, %v2451_v41  ;;  %v2672_v61 = vmul.f32 %v5398_v48, %v2524_v6  ;;  %v2441_v22 = vadd.f32 %v2409_v51, %v2180_v19  ;;  %v2185_v53 = vadd.f32 %v2153_v31, %v1923_v43  ;;  %v6999_v51 = vld [vmem:[#allocation194_spill] sm:$0xff] }
 0x330   : > { %v2454_v44 = vadd.f32 %v2422_v38, %v2193_v32  ;;  %v1665_v11 = vadd.f32 %v5530_v24, %v5505_v50  ;;  %v1921_v2 = vadd.f32 %v1889_v40, %v1660_v15  ;;  %v2412_v31 = vmul.f32 %v5381_v21, %v6998_v18  ;;  %v7000_v50 = vld [vmem:[#allocation137_spill] sm:$0xff]  ;;  %2854 = vst.msk [vmem:[#allocation4 + $0x59] sm:$0x1] %vm2841_vm5, %v6955_v59  ;;  %v7006_v15 = vld [vmem:[#allocation195_spill] sm:$0xff] }
 0x331   : > { %2402 = vperm.xlu1 %4069, %v2242_v47   ;;  %v2748_v37 = vadd.f32 %v5422_v1, %v2712_v29  ;;  %v2704_v33 = vadd.f32 %v2672_v61, %v2443_v7  ;;  %v2151_v47 = vmul.f32 %v5352_v34, %v6996_v10  ;;  %v6997_v7 = vld [vmem:[#allocation167_spill] sm:$0xff]  ;;  %v2446_v61 = vadd.f32 %v2414_v36, %v2185_v53  ;;  %v7002_v32 = vld [vmem:[#allocation217_spill] sm:$0xff] }
 0x332   : > { %2663 = vperm.xlu2 %4070, %v2503_v30   ;;  %v1894_v29 = vmul.f32 %v5347_v35, %v6997_v7  ;;  %v2156_v38 = vmul.f32 %v5352_v34, %v6999_v51  ;;  %v1375_v24 = vmul.f32 %v5293_v63, %v7000_v50  ;;  %v2417_v49 = vmul.f32 %v5381_v21, %v7002_v32  ;;  %v7010_v50 = vld [vmem:[#allocation197_spill] sm:$0xff]  ;;  %v7012_v32 = vld [vmem:[#allocation14_spill] sm:$0xff] }
 0x333   : > { %v2780_v60 = vmax.f32 %v2748_v37, 0.0  ;;  %v2514_v52 = vpop.permute.xlu1 %2513  ;;  %v2740_v28 = vadd.f32 %v5422_v1, %v2704_v33  ;;  %v2183_v54 = vadd.f32 %v2151_v47, %v1921_v2  ;;  %2855 = vst.msk [vmem:[#allocation4 + $0x69] sm:$0x1] %vm2841_vm5, %v6955_v59  ;;  %v1892_v40 = vmul.f32 %v5347_v35, %v7003_v17  ;;  %v7013_v17 = vld [vmem:[#allocation158_spill] sm:$0xff] }
 0x334   : > { %v2670_v13 = vmul.f32 %v5398_v48, %v2514_v52  ;;  %v2579_v41 = vpop.permute.xlu2 %2578  ;;  %2985 = vrot.lane.b32.xlu0 %v2969_v42, %s4159_s29  ;;  %v7001_v42 = vld [vmem:[#allocation79_spill] sm:$0xff]  ;;  %v1926_v19 = vadd.f32 %v1894_v29, %v1665_v11  ;;  %v2154_v10 = vmul.f32 %v5352_v34, %v7006_v15  ;;  %2856 = vst.msk [vmem:[#allocation4 + $0x79] sm:$0x1] %vm2841_vm5, %v6955_v59  ;;  %v7008_v29 = vld [vmem:[#allocation170_spill] sm:$0xff] }
 0x335   : > { %2813 = vst.msk [vmem:[#allocation3 + $0x58] sm:$0xff] %vm2801_vm3, %v2780_v60  ;;  %v2772_v58 = vmax.f32 %v2740_v28, 0.0  ;;  %v2683_v62 = vmul.f32 %v5398_v48, %v2579_v41  ;;  %v1631_v46 = vmul.f32 %v5330_v16, %v7001_v42  ;;  %v1402_v28 = vadd.f32 %v1370_v23, %v5410_v3  ;;  %v7004_v41 = vld [vmem:[#allocation108_spill] sm:$0xff]  ;;  %v7015_v15 = vld [vmem:[#allocation198_spill] sm:$0xff] }
 0x336   : > { %v2702_v6 = vadd.f32 %v2670_v13, %v2441_v22  ;;  %v2539_v57 = vpop.permute.xlu0 %2538  ;;  %v2444_v22 = vadd.f32 %v2412_v31, %v2183_v54  ;;  %v5619_v53 = vmul.f32 %v5288_v25, %v7004_v41  ;;  %v1407_v3 = vadd.f32 %v1375_v24, %v5455_v20  ;;  %2857 = vst.msk [vmem:[#allocation4 + $0x89] sm:$0x1] %vm2841_vm5, %v6955_v59 }
 0x337   : > { %2805 = vst.msk [vmem:[#allocation3 + $0x18] sm:$0xff] %vm2801_vm3, %v2772_v58  ;;  %v2715_v30 = vadd.f32 %v2683_v62, %v2454_v44  ;;  %v2675_v55 = vmul.f32 %v5398_v48, %v2539_v57  ;;  %v7005_v44 = vld [vmem:[#allocation73_spill] sm:$0xff]  ;;  %v2188_v62 = vadd.f32 %v2156_v38, %v1926_v19  ;;  %v1663_v23 = vadd.f32 %v1631_v46, %v1402_v28  ;;  %v7007_v57 = vld [vmem:[#allocation138_spill] sm:$0xff]  ;;  %v7009_v38 = vld [vmem:[#allocation31_spill] sm:$0xff] }
 0x338   : > { %v2738_v14 = vadd.f32 %v5422_v1, %v2702_v6  ;;  %v1636_v58 = vmul.f32 %v5330_v16, %v7005_v44  ;;  %v3018_v6 = vld [vmem:[#allocation4 + $0x2] sm:$0xff]  ;;  %v1373_v7 = vmul.f32 %v5293_v63, %v7007_v57  ;;  %v1149_v18 = vadd.f32 %v5467_v5, %v5354_v39  ;;  %v7011_v5 = vld [vmem:[#allocation70_spill] sm:$0xff]  ;;  %3491 = vst.msk [vmem:[#allocation7] sm:$0x3f] %vm3490_vm13, %v6955_v59 }
 0x339   : > { %2658 = vperm.xlu1 %4069, %v2502_v8   ;;  %v2751_v37 = vadd.f32 %v5422_v1, %v2715_v30  ;;  %v2707_v33 = vadd.f32 %v2675_v55, %v2446_v61  ;;  %v1897_v61 = vmul.f32 %v5347_v35, %v7008_v29  ;;  %v2449_v30 = vadd.f32 %v2417_v49, %v2188_v62  ;;  %v3361_v57 = vld [vmem:[%s6601_s3 + $0x80] sm:$0xff] }
 0x33a   : > { %v2770_v43 = vmax.f32 %v2738_v14, 0.0  ;;  %v1924_v31 = vadd.f32 %v1892_v40, %v1663_v23  ;;  %v2415_v14 = vmul.f32 %v5381_v21, %v5370_v45  ;;  %v2159_v24 = vmul.f32 %v5352_v34, %v7010_v50  ;;  %3493 = vst.msk [vmem:[#allocation7 + $0x28] sm:$0x3f] %vm3490_vm13, %v6955_v59 }
 0x33b   : > { %v2783_v36 = vmax.f32 %v2751_v37, 0.0  ;;  %v2529_v60 = vpop.permute.xlu1 %2528  ;;  %v2743_v52 = vadd.f32 %v5422_v1, %v2707_v33  ;;  %v1378_v37 = vmul.f32 %v5293_v63, %v7009_v38  ;;  %v1668_v33 = vadd.f32 %v1636_v58, %v1407_v3  ;;  %v7014_v58 = vld [vmem:[#allocation64_spill] sm:$0xff]  ;;  %3500 = vst.msk [vmem:[#allocation7 + $0xd] sm:$0x1] %vm3495_vm15, %v6955_v59 }
 0x33c   : > { %2803 = vst.msk [vmem:[#allocation3 + $0x8] sm:$0xff] %vm2801_vm3, %v2770_v43  ;;  %v2673_v13 = vmul.f32 %v5398_v48, %v2529_v60  ;;  %v5634_v20 = vpop.permute.xlu2 %2332  ;;  %v1634_v42 = vmul.f32 %v5330_v16, %v7011_v5  ;;  %v2186_v45 = vadd.f32 %v2154_v10, %v1924_v31  ;;  %v1405_v43 = vadd.f32 %v1373_v7, %v5412_v0  ;;  %v3362_v0 = vld [vmem:[%s6601_s3 + $0x88] sm:$0xff]  ;;  %v7016_v7 = vld [vmem:[#allocation173_spill] sm:$0xff] }
 0x33d   : > { %2816 = vst.msk [vmem:[#allocation3 + $0x70] sm:$0xff] %vm2801_vm3, %v2783_v36  ;;  %v2775_v56 = vmax.f32 %v2743_v52, 0.0  ;;  %v1929_v19 = vadd.f32 %v1897_v61, %v1668_v33  ;;  %v2420_v49 = vmul.f32 %v5381_v21, %v7012_v32  ;;  %v1895_v40 = vmul.f32 %v5347_v35, %v7013_v17  ;;  %3446 = vmatpush.msra.mxu1 %v3362_v0 }
 0x33e   : > { %v2705_v47 = vadd.f32 %v2673_v13, %v2444_v22  ;;  %v2554_v8 = vpop.permute.xlu0 %2553  ;;  %v2898_v55 = vld [vmem:[#allocation3 + $0x10] ss:$2 sm:$0xff]  ;;  %v2914_v11 = vld [vmem:[#allocation3 + $0x11] ss:$2 sm:$0xff]  ;;  %v2447_v22 = vadd.f32 %v2415_v14, %v2186_v45  ;;  %v1410_v44 = vadd.f32 %v1378_v37, %v1149_v18  ;;  %v1639_v62 = vmul.f32 %v5330_v16, %v7014_v58  ;;  %3496 = vst.msk [vmem:[#allocation7 + $0x8] sm:$0x1] %vm3495_vm15, %v6955_v59 }
 0x33f   : > { %2808 = vst.msk [vmem:[#allocation3 + $0x30] sm:$0xff] %vm2801_vm3, %v2775_v56  ;;  %v2678_v2 = vmul.f32 %v5398_v48, %v2554_v8  ;;  %v2929_v54 = vmax.f32 %v2898_v55, %v2914_v11  ;;  %v2191_v56 = vadd.f32 %v2159_v24, %v1929_v19  ;;  %v1666_v23 = vadd.f32 %v1634_v42, %v1405_v43  ;;  %v7017_v55 = vld [vmem:[#allocation27_spill] sm:$0xff]  ;;  %v7019_v24 = vld [vmem:[#allocation76_spill] sm:$0xff] }
 0x340   : > { %v2741_v51 = vadd.f32 %v5422_v1, %v2705_v47  ;;  %v2157_v10 = vmul.f32 %v5352_v34, %v7015_v15  ;;  %v1900_v29 = vmul.f32 %v5347_v35, %v7016_v7  ;;  %3447 = vmatpush.msra.mxu1 %v3361_v57  ;;  %v1376_v11 = vmul.f32 %v5293_v63, %v7017_v55  ;;  %v7020_v19 = vld [vmem:[#allocation160_spill] sm:$0xff] }
 0x341   : > { %3034 = vrot.lane.b32.xlu1 %v3018_v6, %s4160_s8  ;;  %v2710_v39 = vadd.f32 %v2678_v2, %v2449_v30  ;;  %v2452_v61 = vadd.f32 %v2420_v49, %v2191_v56  ;;  %v1927_v2 = vadd.f32 %v1895_v40, %v1666_v23  ;;  %v2418_v18 = vmul.f32 %v5381_v21, %v5432_v9  ;;  %v7024_v40 = vld [vmem:[#allocation98_spill] sm:$0xff] }
 0x342   : > { %v2773_v46 = vmax.f32 %v2741_v51, 0.0  ;;  %v1671_v14 = vadd.f32 %v1639_v62, %v1410_v44  ;;  %v7018_v51 = vld [vmem:[#allocation200_spill] sm:$0xff]  ;;  %v1147_v50 = vadd.f32 %v5619_v53, %v5390_v26  ;;  %v2423_v45 = vmul.f32 %v5381_v21, %v5358_v27  ;;  %v7021_v53 = vld [vmem:[#allocation22_spill] sm:$0xff]  ;;  %3497 = vst.msk [vmem:[#allocation7 + $0x10] sm:$0x1] %vm3495_vm15, %v6955_v59 }
 0x343   : > { %v2858_v36 = vld [vmem:[#allocation3] ss:$2 sm:$0xff]  ;;  %v2874_v60 = vld [vmem:[#allocation3 + $0x1] ss:$2 sm:$0xff]  ;;  %v2544_v52 = vpop.permute.xlu1 %2543  ;;  %v2746_v28 = vadd.f32 %v5422_v1, %v2710_v39  ;;  %v2162_v38 = vmul.f32 %v5352_v34, %v7018_v51  ;;  %v1637_v39 = vmul.f32 %v5330_v16, %v7019_v24  ;;  %v2189_v5 = vadd.f32 %v2157_v10, %v1927_v2  ;;  %v7026_v62 = vld [vmem:[#allocation38_spill] sm:$0xff] }
 0x344   : > { %2806 = vst.msk [vmem:[#allocation3 + $0x20] sm:$0xff] %vm2801_vm3, %v2773_v46  ;;  %v2676_v13 = vmul.f32 %v5398_v48, %v2544_v52  ;;  %v2889_v41 = vmax.f32 %v2858_v36, %v2874_v60  ;;  %v5681_v37 = vpop.permute.xlu2 %2588  ;;  %v1932_v9 = vadd.f32 %v1900_v29, %v1671_v14  ;;  %v1408_v43 = vadd.f32 %v1376_v11, %v1147_v50  ;;  %v7022_v36 = vld [vmem:[#allocation218_spill] sm:$0xff]  ;;  %v7023_v52 = vld [vmem:[#allocation92_spill] sm:$0xff]  ;;  %v7030_v50 = vld [vmem:[#allocation133_spill] sm:$0xff] }
 0x345   : > { %v2778_v3 = vmax.f32 %v2746_v28, 0.0  ;;  %v1898_v32 = vmul.f32 %v5347_v35, %v7020_v19  ;;  %v2450_v49 = vadd.f32 %v2418_v18, %v2189_v5  ;;  %v597_v60 = vmul.f32 %v7022_v36, %v7021_v53  ;;  %3498 = vst.msk [vmem:[#allocation7 + $0x18] sm:$0x1] %vm3495_vm15, %v6955_v59 }
 0x346   : > { %v2708_v47 = vadd.f32 %v2676_v13, %v2447_v22  ;;  %v2569_v6 = vpop.permute.xlu0 %2568  ;;  %v2937_v8 = vmax.f32 %v2889_v41, %v2929_v54  ;;  %v857_v28 = vmul.f32 %v5243_v4, %v7023_v52  ;;  %v2194_v17 = vadd.f32 %v2162_v38, %v1932_v9  ;;  %v7025_v41 = vld [vmem:[#allocation201_spill] sm:$0xff]  ;;  %3499 = vst.msk [vmem:[#allocation7 + $0x20] sm:$0x1] %vm3495_vm15, %v6955_v59 }
 0x347   : > { %2811 = vst.msk [vmem:[#allocation3 + $0x48] sm:$0xff] %vm2801_vm3, %v2778_v3  ;;  %v2681_v30 = vmul.f32 %v5398_v48, %v2569_v6  ;;  %v858_v22 = vmul.f32 %v5243_v4, %v7024_v40  ;;  %v1669_v13 = vadd.f32 %v1637_v39, %v1408_v43  ;;  %v2160_v0 = vmul.f32 %v5352_v34, %v7025_v41  ;;  %v7027_v3 = vld [vmem:[#allocation109_spill] sm:$0xff]  ;;  %v7031_v39 = vld [vmem:[#allocation82_spill] sm:$0xff] }
 0x348   : > { %v2744_v31 = vadd.f32 %v5422_v1, %v2708_v47  ;;  %2945 = vst.msk [vmem:[#allocation4 + $0x11] sm:$0xff] %vm2801_vm3, %v2937_v8  ;;  %v596_v56 = vmul.f32 %v7022_v36, %v7026_v62  ;;  %v1118_v23 = vmul.f32 %v5288_v25, %v7027_v3  ;;  %v2455_v15 = vadd.f32 %v2423_v45, %v2194_v17  ;;  %v7033_v52 = vld [vmem:[#allocation93_spill] sm:$0xff]  ;;  %v7034_v40 = vld [vmem:[#allocation162_spill] sm:$0xff] }
 0x349   : > { %v2713_v33 = vadd.f32 %v2681_v30, %v2452_v61  ;;  %v1930_v57 = vadd.f32 %v1898_v32, %v1669_v13  ;;  %v2421_v7 = vmul.f32 %v5381_v21, %v5471_v12  ;;  %v7028_v30 = vld [vmem:[#allocation113_spill] sm:$0xff]  ;;  %v890_v18 = vadd.f32 %v858_v22, %v597_v60  ;;  %v7036_v62 = vld [vmem:[#allocation110_spill] sm:$0xff]  ;;  %3501 = vst.msk [vmem:[#allocation7 + $0x15] sm:$0x1] %vm3495_vm15, %v6955_v59 }
 0x34a   : > { %v2776_v42 = vmax.f32 %v2744_v31, 0.0  ;;  %v889_v61 = vadd.f32 %v857_v28, %v596_v56  ;;  %v1119_v55 = vmul.f32 %v5288_v25, %v7028_v30  ;;  %v7029_v31 = vld [vmem:[#allocation32_spill] sm:$0xff]  ;;  %v1380_v24 = vmul.f32 %v5293_v63, %v7030_v50  ;;  %v7042_v50 = vld [vmem:[#allocation97_spill] sm:$0xff]  ;;  %3502 = vst.msk [vmem:[#allocation7 + $0x1d] sm:$0x1] %vm3495_vm15, %v6955_v59 }
 0x34b   : > { %v2559_v46 = vpop.permute.xlu1 %2558  ;;  %v2749_v54 = vadd.f32 %v5422_v1, %v2713_v33  ;;  %v2860_v11 = vld [vmem:[#allocation3 + $0x20] ss:$2 sm:$0xff]  ;;  %v2876_v2 = vld [vmem:[#allocation3 + $0x21] ss:$2 sm:$0xff]  ;;  %v1379_v14 = vmul.f32 %v5293_v63, %v7029_v31  ;;  %v2192_v51 = vadd.f32 %v2160_v0, %v1930_v57  ;;  %v1640_v5 = vmul.f32 %v5330_v16, %v7031_v39  ;;  %v7041_v31 = vld [vmem:[#allocation78_spill] sm:$0xff] }
 0x34c   : > { %2809 = vst.msk [vmem:[#allocation3 + $0x38] sm:$0xff] %vm2801_vm3, %v2776_v42  ;;  %v2679_v26 = vmul.f32 %v5398_v48, %v2559_v46  ;;  %v1150_v33 = vadd.f32 %v1118_v23, %v889_v61  ;;  %v5726_v45 = vpop.permute.xlu2 %2603  ;;  %v2890_v32 = vmax.f32 %v2860_v11, %v2876_v2  ;;  %v1151_v60 = vadd.f32 %v1119_v55, %v890_v18  ;;  %v7037_v23 = vld [vmem:[#allocation172_spill] sm:$0xff]  ;;  %v7039_v61 = vld [vmem:[#allocation37_spill] sm:$0xff] }
 0x34d   : > { %v2781_v27 = vmax.f32 %v2749_v54, 0.0  ;;  %v2453_v43 = vadd.f32 %v2421_v7, %v2192_v51  ;;  %v1641_v28 = vmul.f32 %v5330_v16, %v7033_v52  ;;  %v1901_v22 = vmul.f32 %v5347_v35, %v7034_v40  ;;  %v7040_v11 = vld [vmem:[#allocation193_spill] sm:$0xff]  ;;  %3503 = vst.msk [vmem:[#allocation7 + $0x25] sm:$0x1] %vm3495_vm15, %v6955_v59 }
 0x34e   : > { %v2711_v44 = vadd.f32 %v2679_v26, %v2450_v49  ;;  %v2584_v58 = vpop.permute.xlu0 %2583  ;;  %v7032_v26 = vld [vmem:[#allocation96_spill] sm:$0xff]  ;;  %v1121_v56 = vmul.f32 %v5288_v25, %v7036_v62  ;;  %v1412_v3 = vadd.f32 %v1380_v24, %v1151_v60  ;;  %v1382_v30 = vmul.f32 %v5293_v63, %v7039_v61  ;;  %v5798_v61 = vld [vmem:[%s6599_s1] ss:$0 sm:$0xff] }
 0x34f   : > { %2814 = vst.msk [vmem:[#allocation3 + $0x60] sm:$0xff] %vm2801_vm3, %v2781_v27  ;;  %v5707_v10 = vld [vmem:[#allocation4 + $0x12] sm:$0xff]  ;;  %v2684_v8 = vmul.f32 %v5398_v48, %v2584_v58  ;;  %v860_v53 = vmul.f32 %v5243_v4, %v7032_v26  ;;  %v1411_v27 = vadd.f32 %v1379_v14, %v1150_v33  ;;  %v2164_v2 = vmul.f32 %v5352_v34, %v7040_v11  ;;  %v2878_v18 = vld [vmem:[#allocation3 + $0x41] ss:$2 sm:$0xff] }
 0x350   : > { %v3116_v47 = vld [vmem:[#allocation4 + $0x11] sm:$0xff]  ;;  %v2747_v29 = vadd.f32 %v5422_v1, %v2711_v44  ;;  %3181 = vrot.lane.b32.xlu1 %v5707_v10, %s4161_s16  ;;  %v1673_v55 = vadd.f32 %v1641_v28, %v1412_v3  ;;  %v859_v14 = vmul.f32 %v5243_v4, %v7041_v31  ;;  %v2425_v39 = vmul.f32 %v5381_v21, %v5634_v20  ;;  %v7045_v20 = vld [vmem:[#allocation165_spill] sm:$0xff] }
 0x351   : > { %v3067_v6 = vld [vmem:[#allocation4 + $0x10] sm:$0xff]  ;;  %3132 = vrot.lane.b32.xlu0 %v3116_v47, %s4162_s17  ;;  %v2716_v12 = vadd.f32 %v2684_v8, %v2455_v15  ;;  %v7035_v44 = vld [vmem:[#allocation43_spill] sm:$0xff]  ;;  %v1902_v15 = vmul.f32 %v5347_v35, %v7037_v23  ;;  %v7038_v8 = vld [vmem:[#allocation204_spill] sm:$0xff]  ;;  %v1904_v28 = vmul.f32 %v5347_v35, %v7045_v20  ;;  %vm3618_vm5 = vcmask 785924  }
 0x352   : > { %2962 = vst.msk [vmem:[#allocation5 + $0x10] sm:$0xff] %vm2801_vm3, %v3067_v6  ;;  %3083 = vrot.lane.b32.xlu2 %v3067_v6, %s4163_s18  ;;  %v2779_v38 = vmax.f32 %v2747_v29, 0.0  ;;  %v599_v58 = vmul.f32 %v7022_v36, %v7035_v44  ;;  %v1672_v6 = vadd.f32 %v1640_v5, %v1411_v27  ;;  %v2163_v57 = vmul.f32 %v5352_v34, %v7038_v8 }
 0x353   : > { %v2900_v42 = vld [vmem:[#allocation3 + $0x30] ss:$2 sm:$0xff]  ;;  %v2916_v9 = vld [vmem:[#allocation3 + $0x31] ss:$2 sm:$0xff]  ;;  %v2574_v46 = vpop.permute.xlu1 %2573  ;;  %v2752_v54 = vadd.f32 %v5422_v1, %v2716_v12  ;;  %v2862_v12 = vld [vmem:[#allocation3 + $0x40] ss:$2 sm:$0xff]  ;;  %v1934_v24 = vadd.f32 %v1902_v15, %v1673_v55 }
 0x354   : > { %2812 = vst.msk [vmem:[#allocation3 + $0x50] sm:$0xff] %vm2801_vm3, %v2779_v38  ;;  %v2682_v19 = vmul.f32 %v5398_v48, %v2574_v46  ;;  %v2930_v49 = vmax.f32 %v2900_v42, %v2916_v9  ;;  %v892_v29 = vadd.f32 %v860_v53, %v599_v58  ;;  %v1933_v51 = vadd.f32 %v1901_v22, %v1672_v6  ;;  %v5767_v52 = vpop.permute.xlu2 %2357 }
 0x355   : > { %v2784_v17 = vmax.f32 %v2752_v54, 0.0  ;;  %v2196_v60 = vadd.f32 %v2164_v2, %v1934_v24 }
 0x356   : > { %v2714_v13 = vadd.f32 %v2682_v19, %v2453_v43  ;;  %v5737_v41 = vpop.permute.xlu0 %2337  ;;  %v2938_v0 = vmax.f32 %v2890_v32, %v2930_v49  ;;  %v1153_v33 = vadd.f32 %v1121_v56, %v892_v29  ;;  %v2195_v46 = vadd.f32 %v2163_v57, %v1933_v51  ;;  %v7043_v19 = vld [vmem:[#allocation35_spill] sm:$0xff]  ;;  %v7044_v49 = vld [vmem:[#allocation117_spill] sm:$0xff] }
 0x357   : > { %2817 = vst.msk [vmem:[#allocation3 + $0x78] sm:$0xff] %vm2801_vm3, %v2784_v17  ;;  %v2891_v43 = vmax.f32 %v2862_v12, %v2878_v18  ;;  %v598_v32 = vmul.f32 %v7022_v36, %v7043_v19  ;;  %v1120_v26 = vmul.f32 %v5288_v25, %v7044_v49  ;;  %v2685_v17 = vmul.f32 %v5398_v48, %v5681_v37  ;;  %v7046_v36 = vld [vmem:[#allocation36_spill] sm:$0xff]  ;;  %v7047_v37 = vld [vmem:[#allocation207_spill] sm:$0xff] }
 0x358   : > { %v2750_v7 = vadd.f32 %v5422_v1, %v2714_v13  ;;  %2987 = vrot.lane.b32.xlu1 %v3116_v47, %s4159_s29  ;;  %2946 = vst.msk [vmem:[#allocation4 + $0x21] sm:$0xff] %vm2801_vm3, %v2938_v0  ;;  %v1643_v47 = vmul.f32 %v5330_v16, %v7042_v50  ;;  %v1414_v53 = vadd.f32 %v1382_v30, %v1153_v33  ;;  %v7048_v57 = vld [vmem:[#allocation75_spill] sm:$0xff]  ;;  %v7049_v30 = vld [vmem:[#allocation25_spill] sm:$0xff] }
 0x359   : > { %v891_v44 = vadd.f32 %v859_v14, %v598_v32  ;;  %v1381_v58 = vmul.f32 %v5293_v63, %v7046_v36  ;;  %v2457_v25 = vadd.f32 %v2425_v39, %v2196_v60  ;;  %v2166_v6 = vmul.f32 %v5352_v34, %v7047_v37  ;;  %v7051_v14 = vld [vmem:[#allocation176_spill] sm:$0xff]  ;;  %v7054_v32 = vld [vmem:[#allocation203_spill] sm:$0xff] }
 0x35a   : > { %v2782_v38 = vmax.f32 %v2750_v7, 0.0  ;;  %v1675_v15 = vadd.f32 %v1643_v47, %v1414_v53  ;;  %v1642_v7 = vmul.f32 %v5330_v16, %v7048_v57  ;;  %v5802_v55 = vmul.f32 %v5798_v61, %v7049_v30  ;;  %v7050_v16 = vld [vmem:[#allocation29_spill] sm:$0xff] }
 0x35b   : > { %v2902_v5 = vld [vmem:[#allocation3 + $0x50] ss:$2 sm:$0xff]  ;;  %v2918_v42 = vld [vmem:[#allocation3 + $0x51] ss:$2 sm:$0xff]  ;;  %v2328_v9 = vpop.permute.xlu1 %2327  ;;  %v1152_v63 = vadd.f32 %v1120_v26, %v891_v44  ;;  %v5809_v18 = vmul.f32 %v5798_v61, %v7050_v16  ;;  %v1903_v51 = vmul.f32 %v5347_v35, %v7051_v14  ;;  %v7053_v35 = vld [vmem:[#allocation84_spill] sm:$0xff]  ;;  %v2165_v49 = vmul.f32 %v5352_v34, %v7054_v32 }
 0x35c   : > { %2815 = vst.msk [vmem:[#allocation3 + $0x68] sm:$0xff] %vm2801_vm3, %v2782_v38  ;;  %v2424_v54 = vmul.f32 %v5381_v21, %v2328_v9  ;;  %v2931_v4 = vmax.f32 %v2902_v5, %v2918_v42  ;;  %v1936_v11 = vadd.f32 %v1904_v28, %v1675_v15  ;;  %v7052_v9 = vld [vmem:[#allocation34_spill] sm:$0xff]  ;;  %v2688_v26 = vmul.f32 %v5398_v48, %v5726_v45  ;;  %v7055_v28 = vld [vmem:[#allocation41_spill] sm:$0xff]  ;;  %v7058_v45 = vld [vmem:[#allocation120_spill] sm:$0xff]  ;;  %v5846_v44 = vpop.permute.xlu2 %2613 }
 0x35d   : > { %v1413_v31 = vadd.f32 %v1381_v58, %v1152_v63  ;;  %v5842_v34 = vld [vmem:[%s6599_s1 + $0x2] ss:$0 sm:$0xff]  ;;  %v7059_v63 = vld [vmem:[#allocation101_spill] sm:$0xff]  ;;  %v7063_v16 = vld [vmem:[#allocation116_spill] sm:$0xff] }
 0x35e   : > { %v2904_v27 = vld [vmem:[#allocation3 + $0x70] ss:$2 sm:$0xff]  ;;  %v2920_v40 = vld [vmem:[#allocation3 + $0x71] ss:$2 sm:$0xff]  ;;  %v2456_v22 = vadd.f32 %v2424_v54, %v2195_v46  ;;  %v2594_v13 = vpop.permute.xlu0 %2593  ;;  %v2939_v0 = vmax.f32 %v2891_v43, %v2931_v4  ;;  %v2198_v24 = vadd.f32 %v2166_v6, %v1936_v11  ;;  %v5817_v46 = vmul.f32 %v5798_v61, %v7052_v9  ;;  %v7062_v30 = vld [vmem:[#allocation141_spill] sm:$0xff] }
 0x35f   : > { %v5775_v62 = vld [vmem:[#allocation4 + $0x21] sm:$0xff]  ;;  %v2686_v3 = vmul.f32 %v5398_v48, %v2594_v13  ;;  %v2932_v2 = vmax.f32 %v2904_v27, %v2920_v40  ;;  %v5822_v54 = vld [vmem:[%s6599_s1 + $0x1] ss:$0 sm:$0xff]  ;;  %v1674_v4 = vadd.f32 %v1642_v7, %v1413_v31  ;;  %v7060_v7 = vld [vmem:[#allocation111_spill] sm:$0xff]  ;;  %v1122_v31 = vmul.f32 %v5842_v34, %v7063_v16 }
 0x360   : > { %v5777_v56 = vld [vmem:[#allocation4 + $0x20] sm:$0xff]  ;;  %v2717_v8 = vadd.f32 %v2685_v17, %v2456_v22  ;;  %3280 = vrot.lane.b32.xlu0 %v5775_v62, %s4164_s19  ;;  %3134 = vrot.lane.b32.xlu1 %v5775_v62, %s4162_s17  ;;  %2947 = vst.msk [vmem:[#allocation4 + $0x31] sm:$0xff] %vm2801_vm3, %v2939_v0  ;;  %v862_v43 = vmul.f32 %v5822_v54, %v7053_v35  ;;  %v7066_v9 = vld [vmem:[#allocation50_spill] sm:$0xff]  ;;  %v7076_v16 = vld [vmem:[#allocation103_spill] sm:$0xff] }
 0x361   : > { %v5780_v23 = vld [vmem:[#allocation4 + $0x22] sm:$0xff]  ;;  %3231 = vrot.lane.b32.xlu2 %v5777_v56, %s4165_s20  ;;  %v2718_v29 = vadd.f32 %v2686_v3, %v2457_v25  ;;  %2963 = vst.msk [vmem:[#allocation5 + $0x20] sm:$0xff] %vm2801_vm3, %v5777_v56  ;;  %v601_v17 = vmul.f32 %v5798_v61, %v7055_v28  ;;  %v1123_v0 = vmul.f32 %v5842_v34, %v7058_v45 }
 0x362   : > { %3321 = vst.msk [vmem:[#allocation5 + $0x8] sm:$0xff] %vm2801_vm3, %v5780_v23  ;;  %v2753_v12 = vadd.f32 %v5422_v1, %v2717_v8  ;;  %v7056_v27 = vld [vmem:[#allocation48_spill] sm:$0xff]  ;;  %v1935_v58 = vadd.f32 %v1903_v51, %v1674_v4  ;;  %v2426_v25 = vmul.f32 %v5381_v21, %v5737_v41  ;;  %v861_v57 = vmul.f32 %v5822_v54, %v7059_v63  ;;  %v5876_v41 = vld [vmem:[%s6599_s1 + $0x3] ss:$0 sm:$0xff] }
 0x363   : > { %v2864_v38 = vld [vmem:[#allocation3 + $0x60] ss:$2 sm:$0xff]  ;;  %v2880_v33 = vld [vmem:[#allocation3 + $0x61] ss:$2 sm:$0xff]  ;;  %v2343_v50 = vpop.permute.xlu1 %2342  ;;  %v2754_v47 = vadd.f32 %v5422_v1, %v2718_v29  ;;  %v602_v40 = vmul.f32 %v5798_v61, %v7056_v27  ;;  %v894_v8 = vadd.f32 %v862_v43, %v601_v17  ;;  %v1124_v29 = vmul.f32 %v5842_v34, %v7060_v7  ;;  %v7064_v51 = vld [vmem:[#allocation42_spill] sm:$0xff] }
 0x364   : > { %v2892_v39 = vmax.f32 %v2864_v38, %v2880_v33  ;;  %v2785_v5 = vmax.f32 %v2753_v12, 0.0  ;;  %v2427_v42 = vmul.f32 %v5381_v21, %v2343_v50  ;;  %v7057_v22 = vld [vmem:[#allocation100_spill] sm:$0xff]  ;;  %v7061_v21 = vld [vmem:[#allocation45_spill] sm:$0xff]  ;;  %v1384_v11 = vmul.f32 %v5876_v41, %v7062_v30  ;;  %v5889_v50 = vld [vmem:[%s6599_s1 + $0x4] ss:$0 sm:$0xff] }
 0x365   : > { %v2786_v19 = vmax.f32 %v2754_v47, 0.0  ;;  %v863_v13 = vmul.f32 %v5822_v54, %v7057_v22  ;;  %v1155_v14 = vadd.f32 %v1123_v0, %v894_v8  ;;  %v1385_v38 = vmul.f32 %v5876_v41, %v7064_v51  ;;  %v7065_v47 = vld [vmem:[#allocation81_spill] sm:$0xff]  ;;  %v7071_v45 = vld [vmem:[#allocation168_spill] sm:$0xff]  ;;  %v7072_v8 = vld [vmem:[#allocation206_spill] sm:$0xff] }
 0x366   : > { %v2940_v53 = vmax.f32 %v2892_v39, %v2932_v2  ;;  %2818 = vst.msk [vmem:[#allocation3 + $0x80] sm:$0xff] %vm2801_vm3, %v2785_v5  ;;  %v2459_v60 = vadd.f32 %v2427_v42, %v2198_v24  ;;  %v5831_v20 = vpop.permute.xlu0 %2347  ;;  %v2197_v2 = vadd.f32 %v2165_v49, %v1935_v58  ;;  %v1645_v24 = vmul.f32 %v5889_v50, %v7065_v47  ;;  %v7068_v49 = vld [vmem:[#allocation53_spill] sm:$0xff]  ;;  %v7077_v47 = vld [vmem:[#allocation175_spill] sm:$0xff] }
 0x367   : > { %2819 = vst.msk [vmem:[#allocation3 + $0x88] sm:$0xff] %vm2801_vm3, %v2786_v19  ;;  %v5855_v15 = vld [vmem:[#allocation4 + $0x31] sm:$0xff]  ;;  %v895_v12 = vadd.f32 %v863_v13, %v602_v40  ;;  %v5896_v35 = vmul.f32 %v5798_v61, %v7066_v9  ;;  %v893_v43 = vadd.f32 %v861_v57, %v5802_v55  ;;  %v7070_v40 = vld [vmem:[#allocation136_spill] sm:$0xff] }
 0x368   : > { %2948 = vst.msk [vmem:[#allocation4 + $0x41] sm:$0xff] %vm2801_vm3, %v2940_v53  ;;  %v2720_v3 = vadd.f32 %v2688_v26, %v2459_v60  ;;  %v5857_v37 = vld [vmem:[#allocation4 + $0x32] sm:$0xff]  ;;  %3085 = vrot.lane.b32.xlu0 %v5777_v56, %s4163_s18  ;;  %3282 = vrot.lane.b32.xlu1 %v5855_v15, %s4164_s19  ;;  %v2458_v39 = vadd.f32 %v2426_v25, %v2197_v2 }
 0x369   : > { %v3330_v36 = vld [vmem:[#allocation5 + $0x8] sm:$0xff]  ;;  %3036 = vrot.lane.b32.xlu2 %v5707_v10, %s4160_s8  ;;  %v3216_v6 = vld [vmem:[#allocation4 + $0x30] sm:$0xff]  ;;  %3322 = vst.msk [vmem:[#allocation5 + $0x18] sm:$0xff] %vm2801_vm3, %v5857_v37  ;;  %v5871_v10 = vmul.f32 %v5798_v61, %v7061_v21  ;;  %v1156_v4 = vadd.f32 %v1124_v29, %v895_v12  ;;  %v7067_v19 = vld [vmem:[#allocation147_spill] sm:$0xff]  ;;  %v5903_v26 = vmul.f32 %v5798_v61, %v7068_v49 }
 0x36a   : > { %4001 = vmatmul.msk.f32.vlgmr.msra.gmra.mxu1 %vm2801_vm3, %v3330_v36  ;;  %v2756_v56 = vadd.f32 %v5422_v1, %v2720_v3  ;;  %2964 = vst.msk [vmem:[#allocation5 + $0x30] sm:$0xff] %vm2801_vm3, %v3216_v6  ;;  %v1646_v32 = vmul.f32 %v5889_v50, %v7067_v19  ;;  %v1416_v53 = vadd.f32 %v1384_v11, %v1155_v14  ;;  %v5908_v60 = vld [vmem:[%s6599_s1 + $0x5] ss:$0 sm:$0xff]  ;;  %v5926_v3 = vld [vmem:[%s6599_s1 + $0x6] ss:$0 sm:$0xff]  ;;  %v7073_v29 = vld [vmem:[#allocation148_spill] sm:$0xff] }
 0x36b   : > { %v2599_v33 = vpop.permute.xlu1 %2598  ;;  %v1154_v27 = vadd.f32 %v1122_v31, %v893_v43  ;;  %v1383_v22 = vmul.f32 %v5876_v41, %v7070_v40  ;;  %v1417_v13 = vadd.f32 %v1385_v38, %v1156_v4  ;;  %v1907_v0 = vmul.f32 %v5908_v60, %v7071_v45  ;;  %v7074_v11 = vld [vmem:[#allocation210_spill] sm:$0xff]  ;;  %v7078_v9 = vld [vmem:[#allocation95_spill] sm:$0xff] }
 0x36c   : > { %v2788_v5 = vmax.f32 %v2756_v56, 0.0  ;;  %v2687_v42 = vmul.f32 %v5398_v48, %v2599_v33  ;;  %v7069_v48 = vld [vmem:[#allocation179_spill] sm:$0xff]  ;;  %v1677_v25 = vadd.f32 %v1645_v24, %v1416_v53  ;;  %v2168_v63 = vmul.f32 %v5926_v3, %v7072_v8  ;;  %v5939_v56 = vpop.permute.xlu2 %2367  ;;  %v7080_v49 = vld [vmem:[#allocation102_spill] sm:$0xff] }
 0x36d   : > { %v1906_v28 = vmul.f32 %v5908_v60, %v7069_v48  ;;  %v1644_v21 = vmul.f32 %v5889_v50, %v7073_v29  ;;  %v1678_v30 = vadd.f32 %v1646_v32, %v1417_v13  ;;  %v2169_v2 = vmul.f32 %v5926_v3, %v7074_v11  ;;  %v7079_v4 = vld [vmem:[#allocation119_spill] sm:$0xff] }
 0x36e   : > { %2821 = vst.msk [vmem:[#allocation3 + $0x98] sm:$0xff] %vm2801_vm3, %v2788_v5  ;;  %v2719_v55 = vadd.f32 %v2687_v42, %v2458_v39  ;;  %v5913_v17 = vpop.permute.xlu0 %2362  ;;  %v864_v31 = vmul.f32 %v5822_v54, %v7076_v16  ;;  %v1415_v38 = vadd.f32 %v1383_v22, %v1154_v27  ;;  %v1905_v24 = vmul.f32 %v5908_v60, %v7077_v47  ;;  %v5955_v39 = vld [vmem:[%s6599_s1 + $0x7] ss:$0 sm:$0xff]  ;;  %v7082_v40 = vld [vmem:[#allocation139_spill] sm:$0xff]  ;;  %v2866_v16 = vld [vmem:[#allocation3 + $0x80] ss:$2 sm:$0xff] }
 0x36f   : > { %v5919_v36 = vld [vmem:[#allocation4 + $0x42] sm:$0xff]  ;;  %v1938_v14 = vadd.f32 %v1906_v28, %v1677_v25  ;;  %v1939_v33 = vadd.f32 %v1907_v0, %v1678_v30  ;;  %v2430_v5 = vmul.f32 %v5955_v39, %v5767_v52  ;;  %v868_v43 = vmul.f32 %v5822_v54, %v7078_v9  ;;  %v5975_v13 = vld [vmem:[%s6599_s1 + $0x8] ss:$0 sm:$0xff] }
 0x370   : > { %v5921_v58 = vld [vmem:[#allocation4 + $0x40] sm:$0xff]  ;;  %v2755_v57 = vadd.f32 %v5422_v1, %v2719_v55  ;;  %v3332_v7 = vld [vmem:[#allocation5 + $0x18] sm:$0xff]  ;;  %3323 = vst.msk [vmem:[#allocation5 + $0x28] sm:$0xff] %vm2801_vm3, %v5919_v36  ;;  %3233 = vrot.lane.b32.xlu0 %v3216_v6, %s4165_s20  ;;  %v7075_v1 = vld [vmem:[#allocation90_spill] sm:$0xff]  ;;  %3087 = vrot.lane.b32.xlu1 %v3216_v6, %s4163_s18  ;;  %v1125_v6 = vmul.f32 %v5842_v34, %v7079_v4 }
 0x371   : > { %3183 = vrot.lane.b32.xlu2 %v5780_v23, %s4161_s16  ;;  %2965 = vst.msk [vmem:[#allocation5 + $0x40] sm:$0xff] %vm2801_vm3, %v5921_v58  ;;  %v865_v12 = vmul.f32 %v5822_v54, %v7075_v1  ;;  %v2200_v19 = vadd.f32 %v2168_v63, %v1938_v14  ;;  %v866_v53 = vmul.f32 %v5822_v54, %v7080_v49  ;;  %v7081_v28 = vld [vmem:[#allocation196_spill] sm:$0xff]  ;;  %v7087_v49 = vld [vmem:[#allocation105_spill] sm:$0xff] }
 0x372   : > { %4002 = vmatmul.msk.f32.gmra.mxu1 %vm2801_vm3, %v3332_v7  ;;  %v2787_v51 = vmax.f32 %v2755_v57, 0.0  ;;  %v1676_v48 = vadd.f32 %v1644_v21, %v1415_v38  ;;  %v2167_v55 = vmul.f32 %v5926_v3, %v7081_v28  ;;  %v2201_v52 = vadd.f32 %v2169_v2, %v1939_v33  ;;  %v7086_v33 = vld [vmem:[#allocation178_spill] sm:$0xff]  ;;  %v7088_v28 = vld [vmem:[#allocation87_spill] sm:$0xff] }
 0x373   : > { %v2353_v42 = vpop.permute.xlu1 %2352  ;;  %v896_v27 = vadd.f32 %v864_v31, %v5809_v18  ;;  %v1386_v22 = vmul.f32 %v5876_v41, %v7082_v40  ;;  %v2690_v45 = vmul.f32 %v5975_v13, %v5846_v44  ;;  %v2428_v57 = vmul.f32 %v5955_v39, %v5831_v20  ;;  %v7083_v44 = vld [vmem:[#allocation122_spill] sm:$0xff]  ;;  %v2882_v31 = vld [vmem:[#allocation3 + $0x81] ss:$2 sm:$0xff]  ;;  %v7089_v40 = vld [vmem:[#allocation199_spill] sm:$0xff] }
 0x374   : > { %2820 = vst.msk [vmem:[#allocation3 + $0x90] sm:$0xff] %vm2801_vm3, %v2787_v51  ;;  %v2429_v32 = vmul.f32 %v5955_v39, %v2353_v42  ;;  %v1937_v8 = vadd.f32 %v1905_v24, %v1676_v48  ;;  %v2462_v63 = vadd.f32 %v2430_v5, %v2201_v52  ;;  %v897_v29 = vadd.f32 %v865_v12, %v5871_v10  ;;  %v7084_v12 = vld [vmem:[#allocation151_spill] sm:$0xff]  ;;  %v6006_v42 = vpop.permute.xlu2 %2382 }
 0x375   : > { %v900_v21 = vadd.f32 %v868_v43, %v5896_v35  ;;  %v1157_v30 = vadd.f32 %v1125_v6, %v896_v27  ;;  %v1126_v2 = vmul.f32 %v5842_v34, %v7083_v44  ;;  %v898_v10 = vadd.f32 %v866_v53, %v5903_v26 }
 0x376   : > { %v2461_v0 = vadd.f32 %v2429_v32, %v2200_v19  ;;  %v2619_v25 = vpop.permute.xlu0 %2618  ;;  %v2199_v1 = vadd.f32 %v2167_v55, %v1937_v8  ;;  %v1647_v14 = vmul.f32 %v5889_v50, %v7084_v12  ;;  %v1908_v26 = vmul.f32 %v5908_v60, %v7086_v33  ;;  %v7090_v8 = vld [vmem:[#allocation121_spill] sm:$0xff] }
 0x377   : > { %v3334_v7 = vld [vmem:[#allocation5 + $0x28] sm:$0xff]  ;;  %v2691_v18 = vmul.f32 %v5975_v13, %v2619_v25  ;;  %v1418_v35 = vadd.f32 %v1386_v22, %v1157_v30  ;;  %v2893_v4 = vmax.f32 %v2866_v16, %v2882_v31  ;;  %v867_v53 = vmul.f32 %v5822_v54, %v7087_v49  ;;  %v7094_v31 = vld [vmem:[#allocation51_spill] sm:$0xff] }
 0x378   : > { %v2722_v11 = vadd.f32 %v2690_v45, %v2461_v0  ;;  %3038 = vrot.lane.b32.xlu0 %v5780_v23, %s4160_s8  ;;  %3235 = vrot.lane.b32.xlu1 %v5921_v58, %s4165_s20  ;;  %v7085_v23 = vld [vmem:[#allocation46_spill] sm:$0xff]  ;;  %v2460_v5 = vadd.f32 %v2428_v57, %v2199_v1  ;;  %v1158_v48 = vadd.f32 %v1126_v2, %v897_v29  ;;  %v7091_v57 = vld [vmem:[#allocation124_spill] sm:$0xff]  ;;  %v7092_v29 = vld [vmem:[#allocation181_spill] sm:$0xff] }
 0x379   : > { %2989 = vrot.lane.b32.xlu2 %v5775_v62, %s4159_s29  ;;  %v2723_v20 = vadd.f32 %v2691_v18, %v2462_v63  ;;  %v5997_v62 = vld [vmem:[%s6600_s2] ss:$0 sm:$0xff]  ;;  %v1387_v38 = vmul.f32 %v5876_v41, %v7085_v23  ;;  %v1648_v55 = vmul.f32 %v5889_v50, %v7088_v28  ;;  %v1679_v27 = vadd.f32 %v1647_v14, %v1418_v35  ;;  %v7093_v1 = vld [vmem:[#allocation112_spill] sm:$0xff]  ;;  %v7095_v12 = vld [vmem:[#allocation209_spill] sm:$0xff] }
 0x37a   : > { %4003 = vmatmul.msk.f32.gmra.mxu1 %vm2801_vm3, %v3334_v7  ;;  %v2758_v51 = vadd.f32 %v5997_v62, %v2722_v11  ;;  %v2170_v22 = vmul.f32 %v5926_v3, %v7089_v40  ;;  %v1128_v63 = vmul.f32 %v5842_v34, %v7090_v8  ;;  %v1129_v7 = vmul.f32 %v5842_v34, %v7091_v57  ;;  %v7099_v28 = vld [vmem:[#allocation47_spill] sm:$0xff] }
 0x37b   : > { %v2906_v47 = vld [vmem:[#allocation3 + $0x90] ss:$2 sm:$0xff]  ;;  %v2922_v24 = vld [vmem:[#allocation3 + $0x91] ss:$2 sm:$0xff]  ;;  %v2609_v9 = vpop.permute.xlu1 %2608  ;;  %v2759_v43 = vadd.f32 %v5997_v62, %v2723_v20  ;;  %v1419_v18 = vadd.f32 %v1387_v38, %v1158_v48  ;;  %v1909_v30 = vmul.f32 %v5908_v60, %v7092_v29  ;;  %v1940_v11 = vadd.f32 %v1908_v26, %v1679_v27 }
 0x37c   : > { %v2933_v6 = vmax.f32 %v2906_v47, %v2922_v24  ;;  %v2790_v19 = vmax.f32 %v2758_v51, 0.0  ;;  %v2689_v32 = vmul.f32 %v5975_v13, %v2609_v9  ;;  %v2431_v44 = vmul.f32 %v5955_v39, %v5913_v17  ;;  %v7096_v51 = vld [vmem:[#allocation40_spill] sm:$0xff]  ;;  %v7097_v47 = vld [vmem:[#allocation143_spill] sm:$0xff]  ;;  %v7102_v29 = vld [vmem:[#allocation202_spill] sm:$0xff] }
 0x37d   : > { %v2791_v52 = vmax.f32 %v2759_v43, 0.0  ;;  %v1127_v16 = vmul.f32 %v5842_v34, %v7093_v1  ;;  %v1390_v20 = vmul.f32 %v5876_v41, %v7094_v31  ;;  %v1680_v35 = vadd.f32 %v1648_v55, %v1419_v18  ;;  %v7104_v1 = vld [vmem:[#allocation212_spill] sm:$0xff] }
 0x37e   : > { %v2941_v45 = vmax.f32 %v2893_v4, %v2933_v6  ;;  %2823 = vst.msk [vmem:[#allocation3 + $0xa8] sm:$0xff] %vm2801_vm3, %v2790_v19  ;;  %v2721_v0 = vadd.f32 %v2689_v32, %v2460_v5  ;;  %v6017_v25 = vpop.permute.xlu0 %2372  ;;  %v2171_v14 = vmul.f32 %v5926_v3, %v7095_v12  ;;  %v899_v17 = vadd.f32 %v867_v53, %v5817_v46  ;;  %v7098_v6 = vld [vmem:[#allocation154_spill] sm:$0xff]  ;;  %v2639_v53 = vpop.permute.xlu2 %2638 }
 0x37f   : > { %2824 = vst.msk [vmem:[#allocation3 + $0xb0] sm:$0xff] %vm2801_vm3, %v2791_v52  ;;  %v1389_v23 = vmul.f32 %v5876_v41, %v7096_v51  ;;  %v2202_v38 = vadd.f32 %v2170_v22, %v1940_v11  ;;  %v1161_v26 = vadd.f32 %v1129_v7, %v900_v21  ;;  %v1651_v24 = vmul.f32 %v5889_v50, %v7097_v47  ;;  %v7100_v52 = vld [vmem:[#allocation180_spill] sm:$0xff] }
 0x380   : > { %2949 = vst.msk [vmem:[#allocation4 + $0x51] sm:$0xff] %vm2801_vm3, %v2941_v45  ;;  %v2757_v2 = vadd.f32 %v5997_v62, %v2721_v0  ;;  %3185 = vrot.lane.b32.xlu0 %v5857_v37, %s4161_s16  ;;  %3040 = vrot.lane.b32.xlu1 %v5857_v37, %s4160_s8  ;;  %v1941_v5 = vadd.f32 %v1909_v30, %v1680_v35  ;;  %v7101_v45 = vld [vmem:[#allocation183_spill] sm:$0xff]  ;;  %v7107_v47 = vld [vmem:[#allocation104_spill] sm:$0xff] }
 0x381   : > { %3136 = vrot.lane.b32.xlu2 %v5855_v15, %s4162_s17  ;;  %v2432_v9 = vmul.f32 %v5955_v39, %v5939_v56  ;;  %v1160_v4 = vadd.f32 %v1128_v63, %v899_v17  ;;  %v1650_v46 = vmul.f32 %v5889_v50, %v7098_v6  ;;  %v2463_v19 = vadd.f32 %v2431_v44, %v2202_v38  ;;  %v3266_v63 = vld [vmem:[#allocation4 + $0x41] sm:$0xff]  ;;  %v7103_v44 = vld [vmem:[#allocation150_spill] sm:$0xff] }
 0x382   : > { %v2789_v33 = vmax.f32 %v2757_v2, 0.0  ;;  %v1159_v49 = vadd.f32 %v1127_v16, %v898_v10  ;;  %v1422_v37 = vadd.f32 %v1390_v20, %v1161_v26  ;;  %v2203_v21 = vadd.f32 %v2171_v14, %v1941_v5  ;;  %v7105_v14 = vld [vmem:[#allocation171_spill] sm:$0xff] }
 0x383   : > { %v2624_v43 = vpop.permute.xlu1 %2623  ;;  %v1421_v48 = vadd.f32 %v1389_v23, %v1160_v4  ;;  %v1388_v55 = vmul.f32 %v5876_v41, %v7099_v28  ;;  %v1911_v56 = vmul.f32 %v5908_v60, %v7100_v52  ;;  %v1912_v0 = vmul.f32 %v5908_v60, %v7101_v45  ;;  %v7108_v4 = vld [vmem:[#allocation213_spill] sm:$0xff]  ;;  %v7111_v45 = vld [vmem:[#allocation39_spill] sm:$0xff] }
 0x384   : > { %2822 = vst.msk [vmem:[#allocation3 + $0xa0] sm:$0xff] %vm2801_vm3, %v2789_v33  ;;  %v2692_v32 = vmul.f32 %v5975_v13, %v2624_v43  ;;  %v1683_v22 = vadd.f32 %v1651_v24, %v1422_v37  ;;  %v2464_v8 = vadd.f32 %v2432_v9, %v2203_v21  ;;  %v2173_v30 = vmul.f32 %v5926_v3, %v7102_v29  ;;  %v7106_v33 = vld [vmem:[#allocation59_spill] sm:$0xff] }
 0x385   : > { %v1682_v18 = vadd.f32 %v1650_v46, %v1421_v48  ;;  %v1649_v2 = vmul.f32 %v5889_v50, %v7103_v44  ;;  %v2174_v16 = vmul.f32 %v5926_v3, %v7104_v1  ;;  %v1420_v20 = vadd.f32 %v1388_v55, %v1159_v49  ;;  %v7110_v49 = vld [vmem:[#allocation115_spill] sm:$0xff]  ;;  %v7113_v1 = vld [vmem:[#allocation52_spill] sm:$0xff] }
 0x386   : > { %v2724_v27 = vadd.f32 %v2692_v32, %v2463_v19  ;;  %v2629_v40 = vpop.permute.xlu0 %2628  ;;  %v1910_v17 = vmul.f32 %v5908_v60, %v7105_v14  ;;  %v1944_v51 = vadd.f32 %v1912_v0, %v1683_v22  ;;  %v2435_v23 = vmul.f32 %v5955_v39, %v6006_v42  ;;  %v7109_v19 = vld [vmem:[#allocation107_spill] sm:$0xff] }
 0x387   : > { %v2693_v10 = vmul.f32 %v5975_v13, %v2629_v40  ;;  %v6060_v57 = vld [vmem:[#allocation4 + $0x52] sm:$0xff]  ;;  %v1943_v35 = vadd.f32 %v1911_v56, %v1682_v18  ;;  %v608_v26 = vmul.f32 %v5798_v61, %v7106_v33  ;;  %v869_v24 = vmul.f32 %v5822_v54, %v7107_v47  ;;  %v6098_v56 = vpop.permute.xlu2 %2392 }
 0x388   : > { %v6062_v7 = vld [vmem:[#allocation4 + $0x50] sm:$0xff]  ;;  %v2760_v11 = vadd.f32 %v5997_v62, %v2724_v27  ;;  %3324 = vst.msk [vmem:[#allocation5 + $0x38] sm:$0xff] %vm2801_vm3, %v6060_v57  ;;  %2991 = vrot.lane.b32.xlu0 %v5855_v15, %s4159_s29  ;;  %3187 = vrot.lane.b32.xlu1 %v5919_v36, %s4161_s16  ;;  %v1681_v43 = vadd.f32 %v1649_v2, %v1420_v20  ;;  %v7114_v20 = vld [vmem:[#allocation140_spill] sm:$0xff] }
 0x389   : > { %3284 = vrot.lane.b32.xlu2 %v3266_v63, %s4164_s19  ;;  %v2725_v31 = vadd.f32 %v2693_v10, %v2464_v8  ;;  %2966 = vst.msk [vmem:[#allocation5 + $0x50] sm:$0xff] %vm2801_vm3, %v6062_v7  ;;  %v2205_v5 = vadd.f32 %v2173_v30, %v1943_v35  ;;  %v2172_v6 = vmul.f32 %v5926_v3, %v7108_v4 }
 0x38a   : > { %v2792_v12 = vmax.f32 %v2760_v11, 0.0  ;;  %v2206_v46 = vadd.f32 %v2174_v16, %v1944_v51  ;;  %v870_v32 = vmul.f32 %v5822_v54, %v7109_v19  ;;  %v1130_v37 = vmul.f32 %v5842_v34, %v7110_v49 }
 0x38b   : > { %v2378_v38 = vpop.permute.xlu1 %2377  ;;  %v2761_v15 = vadd.f32 %v5997_v62, %v2725_v31  ;;  %v2695_v21 = vmul.f32 %v5975_v13, %v2639_v53  ;;  %v1942_v55 = vadd.f32 %v1910_v17, %v1681_v43  ;;  %v2433_v27 = vmul.f32 %v5955_v39, %v6017_v25  ;;  %v7112_v53 = vld [vmem:[#allocation123_spill] sm:$0xff]  ;;  %v2868_v25 = vld [vmem:[#allocation3 + $0xa0] ss:$2 sm:$0xff]  ;;  %v2884_v30 = vld [vmem:[#allocation3 + $0xa1] ss:$2 sm:$0xff] }
 0x38c   : > { %2825 = vst.msk [vmem:[#allocation3 + $0xb8] sm:$0xff] %vm2801_vm3, %v2792_v12  ;;  %v2434_v9 = vmul.f32 %v5955_v39, %v2378_v38  ;;  %v2467_v52 = vadd.f32 %v2435_v23, %v2206_v46  ;;  %v609_v0 = vmul.f32 %v5798_v61, %v7111_v45  ;;  %v901_v8 = vadd.f32 %v869_v24, %v608_v26  ;;  %v7115_v12 = vld [vmem:[#allocation153_spill] sm:$0xff]  ;;  %v7116_v24 = vld [vmem:[#allocation106_spill] sm:$0xff]  ;;  %v7122_v45 = vld [vmem:[#allocation216_spill] sm:$0xff] }
 0x38d   : > { %v2793_v42 = vmax.f32 %v2761_v15, 0.0  ;;  %v1131_v18 = vmul.f32 %v5842_v34, %v7112_v53  ;;  %v2204_v29 = vadd.f32 %v2172_v6, %v1942_v55  ;;  %v1391_v16 = vmul.f32 %v5876_v41, %v7113_v1  ;;  %v7117_v43 = vld [vmem:[#allocation157_spill] sm:$0xff] }
 0x38e   : > { %v2466_v48 = vadd.f32 %v2434_v9, %v2205_v5  ;;  %v2644_v28 = vpop.permute.xlu0 %2643  ;;  %v902_v44 = vadd.f32 %v870_v32, %v609_v0  ;;  %v1162_v2 = vadd.f32 %v1130_v37, %v901_v8  ;;  %v1392_v35 = vmul.f32 %v5876_v41, %v7114_v20 }
 0x38f   : > { %2826 = vst.msk [vmem:[#allocation3 + $0xc0] sm:$0xff] %vm2801_vm3, %v2793_v42  ;;  %v3336_v40 = vld [vmem:[#allocation5 + $0x38] sm:$0xff]  ;;  %v2696_v22 = vmul.f32 %v5975_v13, %v2644_v28  ;;  %v1652_v14 = vmul.f32 %v5889_v50, %v7115_v12  ;;  %v2465_v23 = vadd.f32 %v2433_v27, %v2204_v29  ;;  %v2894_v47 = vmax.f32 %v2868_v25, %v2884_v30  ;;  %v7118_v42 = vld [vmem:[#allocation174_spill] sm:$0xff]  ;;  %v2649_v25 = vpop.permute.xlu2 %2648 }
 0x390   : > { %v2727_v10 = vadd.f32 %v2695_v21, %v2466_v48  ;;  %4004 = vmatmul.msk.f32.gmra.mxu1 %vm2801_vm3, %v3336_v40  ;;  %3138 = vrot.lane.b32.xlu0 %v3266_v63, %s4162_s17  ;;  %v872_v5 = vmul.f32 %v5822_v54, %v7116_v24  ;;  %v1163_v9 = vadd.f32 %v1131_v18, %v902_v44  ;;  %v7119_v21 = vld [vmem:[#allocation65_spill] sm:$0xff]  ;;  %v7120_v28 = vld [vmem:[#allocation118_spill] sm:$0xff] }
 0x391   : > { %3089 = vrot.lane.b32.xlu2 %v5921_v58, %s4163_s18  ;;  %v2728_v11 = vadd.f32 %v2696_v22, %v2467_v52  ;;  %2993 = vrot.lane.b32.xlu1 %v3266_v63, %s4159_s29  ;;  %v2953_v58 = vld [vmem:[#allocation4] sm:$0xff]  ;;  %v1653_v4 = vmul.f32 %v5889_v50, %v7117_v43  ;;  %v1423_v46 = vadd.f32 %v1391_v16, %v1162_v2  ;;  %v7121_v27 = vld [vmem:[#allocation182_spill] sm:$0xff]  ;;  %v7123_v18 = vld [vmem:[#allocation205_spill] sm:$0xff] }
 0x392   : > { %v2763_v31 = vadd.f32 %v5997_v62, %v2727_v10  ;;  %2961 = vst.msk [vmem:[#allocation5] sm:$0xff] %vm2801_vm3, %v2953_v58  ;;  %v1913_v19 = vmul.f32 %v5908_v60, %v7118_v42  ;;  %v611_v48 = vmul.f32 %v5798_v61, %v7119_v21  ;;  %v1133_v55 = vmul.f32 %v5842_v34, %v7120_v28  ;;  %v6142_v10 = vld [vmem:[#allocation4 + $0x51] sm:$0xff]  ;;  %v7131_v28 = vld [vmem:[#allocation12_spill] sm:$0xff] }
 0x393   : > { %v2908_v17 = vld [vmem:[#allocation3 + $0xb0] ss:$2 sm:$0xff]  ;;  %v2924_v51 = vld [vmem:[#allocation3 + $0xb1] ss:$2 sm:$0xff]  ;;  %v2634_v38 = vpop.permute.xlu1 %2633  ;;  %v2764_v15 = vadd.f32 %v5997_v62, %v2728_v11  ;;  %v1424_v52 = vadd.f32 %v1392_v35, %v1163_v9  ;;  %v1914_v40 = vmul.f32 %v5908_v60, %v7121_v27  ;;  %v1684_v22 = vadd.f32 %v1652_v14, %v1423_v46  ;;  %v7126_v14 = vld [vmem:[#allocation156_spill] sm:$0xff] }
 0x394   : > { %v2795_v33 = vmax.f32 %v2763_v31, 0.0  ;;  %v2694_v26 = vmul.f32 %v5975_v13, %v2634_v38  ;;  %v2934_v63 = vmax.f32 %v2908_v17, %v2924_v51  ;;  %v2175_v0 = vmul.f32 %v5926_v3, %v7122_v45  ;;  %v7124_v11 = vld [vmem:[#allocation58_spill] sm:$0xff]  ;;  %v7125_v16 = vld [vmem:[#allocation99_spill] sm:$0xff]  ;;  %v3360_v38 = vld [vmem:[%s6601_s3 + $0x78] sm:$0xff] }
 0x395   : > { %v2796_v6 = vmax.f32 %v2764_v15, 0.0  ;;  %v1685_v53 = vadd.f32 %v1653_v4, %v1424_v52  ;;  %v2176_v29 = vmul.f32 %v5926_v3, %v7123_v18  ;;  %v904_v30 = vadd.f32 %v872_v5, %v611_v48  ;;  %v7127_v15 = vld [vmem:[#allocation56_spill] sm:$0xff]  ;;  %3391 = vmatpush.msra.mxu0 %v3360_v38 }
 0x396   : > { %2828 = vst.msk [vmem:[#allocation3 + $0xd0] sm:$0xff] %vm2801_vm3, %v2795_v33  ;;  %v2726_v32 = vadd.f32 %v2694_v26, %v2465_v23  ;;  %v6130_v49 = vpop.permute.xlu0 %2397  ;;  %v2942_v37 = vmax.f32 %v2894_v47, %v2934_v63  ;;  %v1394_v44 = vmul.f32 %v5876_v41, %v7124_v11  ;;  %v1945_v2 = vadd.f32 %v1913_v19, %v1684_v22  ;;  %v7128_v33 = vld [vmem:[#allocation126_spill] sm:$0xff]  ;;  %v7129_v63 = vld [vmem:[#allocation177_spill] sm:$0xff] }
 0x397   : > { %2829 = vst.msk [vmem:[#allocation3 + $0xd8] sm:$0xff] %vm2801_vm3, %v2796_v6  ;;  %v871_v31 = vmul.f32 %v5822_v54, %v7125_v16  ;;  %v1946_v58 = vadd.f32 %v1914_v40, %v1685_v53  ;;  %v2437_v20 = vmul.f32 %v5955_v39, %v6098_v56  ;;  %v1165_v12 = vadd.f32 %v1133_v55, %v904_v30  ;;  %v3359_v6 = vld [vmem:[%s6601_s3 + $0x70] sm:$0xff]  ;;  %v7132_v40 = vld [vmem:[#allocation145_spill] sm:$0xff]  ;;  %v2664_v30 = vpop.permute.xlu2 %2663 }
 0x398   : > { %v2762_v8 = vadd.f32 %v5997_v62, %v2726_v32  ;;  %2950 = vst.msk [vmem:[#allocation4 + $0x61] sm:$0xff] %vm2801_vm3, %v2942_v37  ;;  %3286 = vrot.lane.b32.xlu0 %v6142_v10, %s4164_s19  ;;  %v1655_v17 = vmul.f32 %v5889_v50, %v7126_v14  ;;  %v2207_v51 = vadd.f32 %v2175_v0, %v1945_v2 }
 0x399   : > { %3237 = vrot.lane.b32.xlu2 %v6062_v7, %s4165_s20  ;;  %3140 = vrot.lane.b32.xlu1 %v6142_v10, %s4162_s17  ;;  %v610_v54 = vmul.f32 %v5798_v61, %v7127_v15  ;;  %v1132_v56 = vmul.f32 %v5842_v34, %v7128_v33  ;;  %v2208_v26 = vadd.f32 %v2176_v29, %v1946_v58  ;;  %v7130_v61 = vld [vmem:[#allocation57_spill] sm:$0xff]  ;;  %v7133_v29 = vld [vmem:[#allocation186_spill] sm:$0xff] }
 0x39a   : > { %v2794_v1 = vmax.f32 %v2762_v8, 0.0  ;;  %v1426_v47 = vadd.f32 %v1394_v44, %v1165_v12  ;;  %v1916_v24 = vmul.f32 %v5908_v60, %v7129_v63  ;;  %v2697_v5 = vmul.f32 %v5975_v13, %v2649_v25  ;;  %3392 = vmatpush.msra.mxu0 %v3359_v6 }
 0x39b   : > { %v2388_v35 = vpop.permute.xlu1 %2387  ;;  %v903_v46 = vadd.f32 %v871_v31, %v610_v54  ;;  %v1393_v42 = vmul.f32 %v5876_v41, %v7130_v61  ;;  %v2469_v34 = vadd.f32 %v2437_v20, %v2208_v26  ;;  %v2178_v55 = vmul.f32 %v5926_v3, %v7131_v28  ;;  %v3358_v41 = vld [vmem:[%s6601_s3 + $0x68] sm:$0xff] }
 0x39c   : > { %2827 = vst.msk [vmem:[#allocation3 + $0xc8] sm:$0xff] %vm2801_vm3, %v2794_v1  ;;  %v2436_v23 = vmul.f32 %v5955_v39, %v2388_v35  ;;  %v1687_v48 = vadd.f32 %v1655_v17, %v1426_v47  ;;  %v1654_v22 = vmul.f32 %v5889_v50, %v7132_v40  ;;  %3393 = vmatpush.msra.mxu0 %v3358_v41  ;;  %v3355_v35 = vld [vmem:[%s6601_s3 + $0x50] sm:$0xff]  ;;  %v3354_v54 = vld [vmem:[%s6601_s3 + $0x48] sm:$0xff]  ;;  %v3353_v47 = vld [vmem:[%s6601_s3 + $0x40] sm:$0xff] }
 0x39d   : > { %v1164_v27 = vadd.f32 %v1132_v56, %v903_v46  ;;  %v1915_v25 = vmul.f32 %v5908_v60, %v7133_v29  ;;  %v7134_v60 = vld [vmem:[#allocation215_spill] sm:$0xff]  ;;  %v2438_v26 = vmul.f32 %v5955_v39, %v6130_v49  ;;  %v3352_v49 = vld [vmem:[%s6601_s3 + $0x38] sm:$0xff] }
 0x39e   : > { %v2910_v9 = vld [vmem:[#allocation3 + $0xd0] ss:$2 sm:$0xff]  ;;  %v2468_v43 = vadd.f32 %v2436_v23, %v2207_v51  ;;  %v2654_v4 = vpop.permute.xlu0 %2653  ;;  %v2926_v19 = vld [vmem:[#allocation3 + $0xd1] ss:$2 sm:$0xff]  ;;  %v1948_v8 = vadd.f32 %v1916_v24, %v1687_v48  ;;  %v2177_v17 = vmul.f32 %v5926_v3, %v7134_v60  ;;  %v2700_v51 = vmul.f32 %v5975_v13, %v2664_v30 }
 0x39f   : > { %v2698_v32 = vmul.f32 %v5975_v13, %v2654_v4  ;;  %v6179_v37 = vld [vmem:[#allocation4 + $0x62] sm:$0xff]  ;;  %v2935_v50 = vmax.f32 %v2910_v9, %v2926_v19  ;;  %v1425_v18 = vadd.f32 %v1393_v42, %v1164_v27  ;;  %v3350_v46 = vld [vmem:[%s6601_s3 + $0x28] sm:$0xff] }
 0x3a0   : > { %v3219_v21 = vld [vmem:[#allocation4 + $0x60] sm:$0xff]  ;;  %v2729_v52 = vadd.f32 %v2697_v5, %v2468_v43  ;;  %3325 = vst.msk [vmem:[#allocation5 + $0x48] sm:$0xff] %vm2801_vm3, %v6179_v37  ;;  %3091 = vrot.lane.b32.xlu0 %v6062_v7, %s4163_s18  ;;  %v3356_v7 = vld [vmem:[%s6601_s3 + $0x58] sm:$0xff]  ;;  %v2210_v16 = vadd.f32 %v2178_v55, %v1948_v8 }
 0x3a1   : > { %3042 = vrot.lane.b32.xlu2 %v5919_v36, %s4160_s8  ;;  %v6194_v45 = vld [vmem:[#allocation4 + $0x61] sm:$0xff]  ;;  %v2730_v0 = vadd.f32 %v2698_v32, %v2469_v34  ;;  %v3357_v36 = vld [vmem:[%s6601_s3 + $0x60] sm:$0xff]  ;;  %2967 = vst.msk [vmem:[#allocation5 + $0x60] sm:$0xff] %vm2801_vm3, %v3219_v21  ;;  %v1686_v12 = vadd.f32 %v1654_v22, %v1425_v18 }
 0x3a2   : > { %v2765_v53 = vadd.f32 %v5997_v62, %v2729_v52  ;;  %3288 = vrot.lane.b32.xlu1 %v6194_v45, %s4164_s19  ;;  %3394 = vmatpush.msra.mxu0 %v3357_v36  ;;  %v3351_v4 = vld [vmem:[%s6601_s3 + $0x30] sm:$0xff]  ;;  %v3349_v34 = vld [vmem:[%s6601_s3 + $0x20] sm:$0xff] }
 0x3a3   : > { %v2870_v11 = vld [vmem:[#allocation3 + $0xc0] ss:$2 sm:$0xff]  ;;  %v2886_v44 = vld [vmem:[#allocation3 + $0xc1] ss:$2 sm:$0xff]  ;;  %v2403_v2 = vpop.permute.xlu1 %2402  ;;  %v2766_v1 = vadd.f32 %v5997_v62, %v2730_v0  ;;  %v1947_v56 = vadd.f32 %v1915_v25, %v1686_v12  ;;  %v3345_v52 = vld [vmem:[%s6601_s3] sm:$0xff] }
 0x3a4   : > { %v2797_v31 = vmax.f32 %v2765_v53, 0.0  ;;  %v2439_v58 = vmul.f32 %v5955_v39, %v2403_v2  ;;  %v2895_v20 = vmax.f32 %v2870_v11, %v2886_v44  ;;  %3395 = vmatpush.msra.mxu0 %v3356_v7 }
 0x3a5   : > { %v2798_v14 = vmax.f32 %v2766_v1, 0.0  ;;  %v2209_v63 = vadd.f32 %v2177_v17, %v1947_v56  ;;  %v3271_v1 = vld [vmem:[#allocation4 + $0x91] sm:$0xff] }
 0x3a6   : > { %2830 = vst.msk [vmem:[#allocation3 + $0xe0] sm:$0xff] %vm2801_vm3, %v2797_v31  ;;  %v2471_v23 = vadd.f32 %v2439_v58, %v2210_v16  ;;  %v2986_v38 = vpop.permute.xlu0 %2985  ;;  %v2943_v15 = vmax.f32 %v2895_v20, %v2935_v50  ;;  %3396 = vmatpush.msra.mxu0 %v3355_v35  ;;  %v3222_v35 = vld [vmem:[#allocation4 + $0x90] sm:$0xff] }
 0x3a7   : > { %2831 = vst.msk [vmem:[#allocation3 + $0xe8] sm:$0xff] %vm2801_vm3, %v2798_v14  ;;  %v3338_v33 = vld [vmem:[#allocation5 + $0x48] sm:$0xff]  ;;  %v2470_v5 = vadd.f32 %v2438_v26, %v2209_v63 }
 0x3a8   : > { %v2732_v3 = vadd.f32 %v2700_v51, %v2471_v23  ;;  %4005 = vmatmul.msk.f32.gmra.mxu1 %vm2801_vm3, %v3338_v33  ;;  %3010 = vst.msk [vmem:[#allocation5] sm:$0xff] %vm3009_vm6, %v2986_v38  ;;  %3239 = vrot.lane.b32.xlu0 %v3219_v21, %s4165_s20 }
 0x3a9   : > { %3189 = vrot.lane.b32.xlu2 %v6060_v57, %s4161_s16  ;;  %2951 = vst.msk [vmem:[#allocation4 + $0x71] sm:$0xff] %vm2801_vm3, %v2943_v15  ;;  %3397 = vmatpush.msra.mxu0 %v3354_v54 }
 0x3aa   : > { %v2768_v39 = vadd.f32 %v5997_v62, %v2732_v3  ;;  %3093 = vrot.lane.b32.xlu1 %v3219_v21, %s4163_s18  ;;  %v3346_v21 = vld [vmem:[%s6601_s3 + $0x8] sm:$0xff] }
 0x3ab   : > { %v2659_v24 = vpop.permute.xlu1 %2658  ;;  %3398 = vmatpush.msra.mxu0 %v3353_v47 }
 0x3ac   : > { %v2800_v9 = vmax.f32 %v2768_v39, 0.0  ;;  %v2699_v43 = vmul.f32 %v5975_v13, %v2659_v24  ;;  %v3084_v32 = vpop.permute.xlu2 %3083 }
 0x3ad   : > { %3399 = vmatpush.msra.mxu0 %v3352_v49 }
 0x3ae   : > { %2833 = vst.msk [vmem:[#allocation3 + $0xf8] sm:$0xff] %vm2801_vm3, %v2800_v9  ;;  %v2731_v6 = vadd.f32 %v2699_v43, %v2470_v5  ;;  %v2872_v28 = vld [vmem:[#allocation3 + $0xe0] ss:$2 sm:$0xff]  ;;  %v2888_v55 = vld [vmem:[#allocation3 + $0xe1] ss:$2 sm:$0xff] }
 0x3af   : > { %3400 = vmatpush.msra.mxu0 %v3351_v4  ;;  %v2896_v22 = vmax.f32 %v2872_v28, %v2888_v55 }
 0x3b0   : > { %v2767_v61 = vadd.f32 %v5997_v62, %v2731_v6  ;;  %v3220_v42 = vld [vmem:[#allocation4 + $0x70] sm:$0xff]  ;;  %3044 = vrot.lane.b32.xlu0 %v6060_v57, %s4160_s8  ;;  %v3348_v57 = vld [vmem:[%s6601_s3 + $0x18] sm:$0xff] }
 0x3b1   : > { %2995 = vrot.lane.b32.xlu2 %v6142_v10, %s4159_s29  ;;  %v6248_v13 = vld [vmem:[#allocation4 + $0x72] sm:$0xff]  ;;  %3401 = vmatpush.msra.mxu0 %v3350_v46  ;;  %2968 = vst.msk [vmem:[#allocation5 + $0x70] sm:$0xff] %vm2801_vm3, %v3220_v42  ;;  %v3347_v10 = vld [vmem:[%s6601_s3 + $0x10] sm:$0xff] }
 0x3b2   : > { %3326 = vst.msk [vmem:[#allocation5 + $0x58] sm:$0xff] %vm2801_vm3, %v6248_v13  ;;  %v2799_v19 = vmax.f32 %v2767_v61, 0.0  ;;  %3241 = vrot.lane.b32.xlu1 %v3220_v42, %s4165_s20  ;;  %v3269_v8 = vld [vmem:[#allocation4 + $0x71] sm:$0xff] }
 0x3b3   : > { %v3035_v62 = vpop.permute.xlu1 %3034  ;;  %3402 = vmatpush.msra.mxu0 %v3349_v34 }
 0x3b4   : > { %2832 = vst.msk [vmem:[#allocation3 + $0xf0] sm:$0xff] %vm2801_vm3, %v2799_v19 }
 0x3b5   : > { %3059 = vst.msk [vmem:[#allocation5] sm:$0xff] %vm3058_vm7, %v3035_v62  ;;  %3403 = vmatpush.msra.mxu0 %v3348_v57 }
 0x3b6   : > { %3108 = vst.msk [vmem:[#allocation5] sm:$0xff] %vm3107_vm8, %v3084_v32 }
 0x3b7   : > { %3404 = vmatpush.msra.mxu0 %v3347_v10 }
 0x3b8   : > { %3191 = vrot.lane.b32.xlu0 %v6179_v37, %s4161_s16 }
 0x3b9   : > { %3142 = vrot.lane.b32.xlu2 %v6194_v45, %s4162_s17  ;;  %v3340_v48 = vld [vmem:[#allocation5 + $0x58] sm:$0xff]  ;;  %3405 = vmatpush.msra.mxu0 %v3346_v21 }
 0x3ba   : > { %4006 = vmatmul.msk.f32.gmra.mxu1 %vm2801_vm3, %v3340_v48  ;;  %3046 = vrot.lane.b32.xlu1 %v6179_v37, %s4160_s8 }
 0x3bb   : > { %v3232_v41 = vpop.permute.xlu2 %3231  ;;  %v2912_v27 = vld [vmem:[#allocation3 + $0xf0] ss:$2 sm:$0xff]  ;;  %v2928_v40 = vld [vmem:[#allocation3 + $0xf1] ss:$2 sm:$0xff]  ;;  %3406 = vmatpush.msra.mxu0 %v3345_v52 }
 0x3bc   : > { %v2936_v0 = vmax.f32 %v2912_v27, %v2928_v40  ;;  %v3320_v52 = vld [vmem:[#allocation4 + $0x92] sm:$0xff] }
 0x3bd   : > { %3328 = vst.msk [vmem:[#allocation5 + $0x78] sm:$0xff] %vm2801_vm3, %v3320_v52 }
 0x3be   : > { %v2944_v36 = vmax.f32 %v2896_v22, %v2936_v0 }
 0x3c0   : > { %2952 = vst.msk [vmem:[#allocation4 + $0x81] sm:$0xff] %vm2801_vm3, %v2944_v36  ;;  %2997 = vrot.lane.b32.xlu0 %v6194_v45, %s4159_s29 }
 0x3c1   : > { %3290 = vrot.lane.b32.xlu2 %v3269_v8, %s4164_s19 }
 0x3c2   : > { %3193 = vrot.lane.b32.xlu1 %v6248_v13, %s4161_s16  ;;  %v3182_v50 = vpop.permute.xlu1 %3181 }
 0x3c3   : > { %v3037_v53 = vpop.permute.xlu2 %3036  ;;  %v3133_v37 = vpop.permute.xlu0 %3132 }
 0x3c4   : > { %3157 = vst.msk [vmem:[#allocation5] sm:$0xff] %vm3156_vm9, %v3133_v37  ;;  %v3344_v22 = vld [vmem:[#allocation5 + $0x78] sm:$0xff] }
 0x3c5   : > { %3206 = vst.msk [vmem:[#allocation5] sm:$0xff] %vm3205_vm10, %v3182_v50 }
 0x3c6   : > { %3256 = vst.msk [vmem:[#allocation5] sm:$0xff] %vm3255_vm11, %v3232_v41 }
 0x3c7   : > { %v3319_v7 = vld [vmem:[#allocation4 + $0x82] sm:$0xff] }
 0x3c8   : > { %3327 = vst.msk [vmem:[#allocation5 + $0x68] sm:$0xff] %vm2801_vm3, %v3319_v7  ;;  %3144 = vrot.lane.b32.xlu0 %v3269_v8, %s4162_s17  ;;  %v3221_v25 = vld [vmem:[#allocation4 + $0x80] sm:$0xff] }
 0x3c9   : > { %3095 = vrot.lane.b32.xlu2 %v3220_v42, %s4163_s18  ;;  %v3270_v30 = vld [vmem:[#allocation4 + $0x81] sm:$0xff] }
 0x3ca   : > { %2999 = vrot.lane.b32.xlu1 %v3269_v8, %s4159_s29  ;;  %v2988_v18 = vpop.permute.xlu1 %2987 }
 0x3cb   : > { %v3184_v45 = vpop.permute.xlu2 %3183  ;;  %3011 = vst.msk [vmem:[#allocation5 + $0x10] sm:$0xff] %vm3009_vm6, %v2988_v18 }
 0x3cc   : > { %3060 = vst.msk [vmem:[#allocation5 + $0x10] sm:$0xff] %vm3058_vm7, %v3037_v53 }
 0x3cf   : > { %v3342_v29 = vld [vmem:[#allocation5 + $0x68] sm:$0xff] }
 0x3d0   : > { %4007 = vmatmul.msk.f32.gmra.mxu1 %vm2801_vm3, %v3342_v29  ;;  %3292 = vrot.lane.b32.xlu0 %v3270_v30, %s4164_s19 }
 0x3d1   : > { %3243 = vrot.lane.b32.xlu2 %v3221_v25, %s4165_s20 }
 0x3d2   : > { %v3281_v11 = vpop.permute.xlu0 %3280  ;;  %3146 = vrot.lane.b32.xlu1 %v3270_v30, %s4162_s17  ;;  %v3135_v2 = vpop.permute.xlu1 %3134 }
 0x3d3   : > { %v2990_v44 = vpop.permute.xlu2 %2989  ;;  %3305 = vst.msk [vmem:[#allocation5] sm:$0xff] %vm3304_vm12, %v3281_v11 }
 0x3d4   : > { %3012 = vst.msk [vmem:[#allocation5 + $0x20] sm:$0xff] %vm3009_vm6, %v2990_v44 }
 0x3d8   : > { %3097 = vrot.lane.b32.xlu0 %v3221_v25, %s4163_s18  ;;  %4008 = vmatmul.msk.f32.gmra.mxu1 %vm2801_vm3, %v3344_v22  ;;  %vm3566_vm3 = vcmask 781824  }
 0x3d9   : > { %3048 = vrot.lane.b32.xlu2 %v6248_v13, %s4160_s8 }
 0x3da   : > { %v3329_v31 = vld [vmem:[#allocation5] sm:$0xff]  ;;  %3294 = vrot.lane.b32.xlu1 %v3271_v1, %s4164_s19  ;;  %v3086_v58 = vpop.permute.xlu0 %3085  ;;  %v3283_v20 = vpop.permute.xlu1 %3282 }
 0x3db   : > { %v3137_v16 = vpop.permute.xlu2 %3136  ;;  %3407 = vmatmul.f32.vlgmr.msra.gmra.mxu0 %v3329_v31  ;;  %3109 = vst.msk [vmem:[#allocation5 + $0x10] sm:$0xff] %vm3107_vm8, %v3086_v58 }
 0x3dc   : > { %3158 = vst.msk [vmem:[#allocation5 + $0x10] sm:$0xff] %vm3156_vm9, %v3135_v2  ;;  %v3554_v2 = vld [vmem:[#allocation7 + $0x1] sm:$0xf] }
 0x3dd   : > { %3207 = vst.msk [vmem:[#allocation5 + $0x10] sm:$0xff] %vm3205_vm10, %v3184_v45  ;;  %v6359_v45 = vld [vmem:[%s6602_s4] ss:$0 sm:$0xff] }
 0x3e0   : > { %3245 = vrot.lane.b32.xlu0 %v3222_v35, %s4165_s20 }
 0x3e1   : > { %3195 = vrot.lane.b32.xlu2 %v3319_v7, %s4161_s16 }
 0x3e2   : > { %v3234_v14 = vpop.permute.xlu0 %3233  ;;  %v3088_v60 = vpop.permute.xlu1 %3087 }
 0x3e3   : > { %v3285_v12 = vpop.permute.xlu2 %3284  ;;  %3257 = vst.msk [vmem:[#allocation5 + $0x10] sm:$0xff] %vm3255_vm11, %v3234_v14 }
 0x3e4   : > { %3306 = vst.msk [vmem:[#allocation5 + $0x10] sm:$0xff] %vm3304_vm12, %v3283_v20 }
 0x3e7   : > { %v3449_v25 = vpop.f32.mrf.mxu1 }
 0x3e9   : > { %3556 = vrot.lane.b32.xlu2 %v3554_v2, %s4160_s8 }
 0x3ea   : > { %v3039_v51 = vpop.permute.xlu0 %3038  ;;  %v3236_v38 = vpop.permute.xlu1 %3235 }
 0x3eb   : > { %v3090_v17 = vpop.permute.xlu2 %3089  ;;  %3061 = vst.msk [vmem:[#allocation5 + $0x20] sm:$0xff] %vm3058_vm7, %v3039_v51  ;;  %v3331_v23 = vld [vmem:[#allocation5 + $0x10] sm:$0xff] }
 0x3ec   : > { %3110 = vst.msk [vmem:[#allocation5 + $0x20] sm:$0xff] %vm3107_vm8, %v3088_v60  ;;  %3410 = vmatmul.f32.gmra.mxu0 %v3331_v23 }
 0x3ed   : > { %3159 = vst.msk [vmem:[#allocation5 + $0x20] sm:$0xff] %vm3156_vm9, %v3137_v16  ;;  %v3561_v16 = vld [vmem:[#allocation7 + $0x2] sm:$0xf] }
 0x3ee   : > { %3563 = vrot.lane.b32.xlu1 %v3561_v16, %s4162_s17 }
 0x3ef   : > { %v3452_v58 = vpop.f32.mrf.mxu1 }
 0x3f2   : > { %v3186_v54 = vpop.permute.xlu0 %3185  ;;  %v3041_v33 = vpop.permute.xlu1 %3040 }
 0x3f3   : > { %v3238_v15 = vpop.permute.xlu2 %3237  ;;  %3208 = vst.msk [vmem:[#allocation5 + $0x20] sm:$0xff] %vm3205_vm10, %v3186_v54 }
 0x3f4   : > { %3258 = vst.msk [vmem:[#allocation5 + $0x20] sm:$0xff] %vm3255_vm11, %v3236_v38 }
 0x3f5   : > { %3307 = vst.msk [vmem:[#allocation5 + $0x20] sm:$0xff] %vm3304_vm12, %v3285_v12 }
 0x3f7   : > { %v3455_v54 = vpop.f32.mrf.mxu1 }
 0x3fa   : > { %v2992_v26 = vpop.permute.xlu0 %2991  ;;  %v3188_v3 = vpop.permute.xlu1 %3187 }
 0x3fb   : > { %v3043_v56 = vpop.permute.xlu2 %3042  ;;  %3013 = vst.msk [vmem:[#allocation5 + $0x30] sm:$0xff] %vm3009_vm6, %v2992_v26 }
 0x3fc   : > { %3062 = vst.msk [vmem:[#allocation5 + $0x30] sm:$0xff] %vm3058_vm7, %v3041_v33  ;;  %v3333_v47 = vld [vmem:[#allocation5 + $0x20] sm:$0xff] }
 0x3fd   : > { %3111 = vst.msk [vmem:[#allocation5 + $0x30] sm:$0xff] %vm3107_vm8, %v3090_v17  ;;  %3413 = vmatmul.f32.gmra.mxu0 %v3333_v47 }
 0x402   : > { %v3139_v39 = vpop.permute.xlu0 %3138 }
 0x403   : > { %v3190_v63 = vpop.permute.xlu2 %3189  ;;  %3160 = vst.msk [vmem:[#allocation5 + $0x30] sm:$0xff] %vm3156_vm9, %v3139_v39  ;;  %v2994_v49 = vpop.permute.xlu1 %2993 }
 0x404   : > { %3209 = vst.msk [vmem:[#allocation5 + $0x30] sm:$0xff] %vm3205_vm10, %v3188_v3 }
 0x405   : > { %3259 = vst.msk [vmem:[#allocation5 + $0x30] sm:$0xff] %vm3255_vm11, %v3238_v15 }
 0x406   : > { %3014 = vst.msk [vmem:[#allocation5 + $0x40] sm:$0xff] %vm3009_vm6, %v2994_v49 }
 0x407   : > { %3063 = vst.msk [vmem:[#allocation5 + $0x40] sm:$0xff] %vm3058_vm7, %v3043_v56 }
 0x40a   : > { %v3287_v5 = vpop.permute.xlu0 %3286 }
 0x40b   : > { %v2996_v24 = vpop.permute.xlu2 %2995  ;;  %3308 = vst.msk [vmem:[#allocation5 + $0x30] sm:$0xff] %vm3304_vm12, %v3287_v5  ;;  %v3141_v9 = vpop.permute.xlu1 %3140 }
 0x40c   : > { %3015 = vst.msk [vmem:[#allocation5 + $0x50] sm:$0xff] %vm3009_vm6, %v2996_v24 }
 0x412   : > { %v3092_v43 = vpop.permute.xlu0 %3091  ;;  %v3335_v4 = vld [vmem:[#allocation5 + $0x30] sm:$0xff] }
 0x413   : > { %3112 = vst.msk [vmem:[#allocation5 + $0x40] sm:$0xff] %vm3107_vm8, %v3092_v43  ;;  %3416 = vmatmul.f32.gmra.mxu0 %v3335_v4  ;;  %v3143_v46 = vpop.permute.xlu2 %3142  ;;  %v3458_v4 = vpop.f32.mrf.mxu1 }
 0x414   : > { %v3289_v6 = vpop.permute.xlu1 %3288  ;;  %3161 = vst.msk [vmem:[#allocation5 + $0x40] sm:$0xff] %vm3156_vm9, %v3141_v9 }
 0x415   : > { %3210 = vst.msk [vmem:[#allocation5 + $0x40] sm:$0xff] %vm3205_vm10, %v3190_v63 }
 0x41a   : > { %v3240_v61 = vpop.permute.xlu0 %3239 }
 0x41b   : > { %3260 = vst.msk [vmem:[#allocation5 + $0x40] sm:$0xff] %vm3255_vm11, %v3240_v61  ;;  %v3291_v13 = vpop.permute.xlu2 %3290 }
 0x41c   : > { %v3094_v42 = vpop.permute.xlu1 %3093  ;;  %3309 = vst.msk [vmem:[#allocation5 + $0x40] sm:$0xff] %vm3304_vm12, %v3289_v6 }
 0x422   : > { %v3045_v34 = vpop.permute.xlu0 %3044 }
 0x423   : > { %3064 = vst.msk [vmem:[#allocation5 + $0x50] sm:$0xff] %vm3058_vm7, %v3045_v34  ;;  %v3337_v19 = vld [vmem:[#allocation5 + $0x40] sm:$0xff]  ;;  %v3096_v62 = vpop.permute.xlu2 %3095 }
 0x424   : > { %v3242_v32 = vpop.permute.xlu1 %3241  ;;  %3113 = vst.msk [vmem:[#allocation5 + $0x50] sm:$0xff] %vm3107_vm8, %v3094_v42  ;;  %3419 = vmatmul.f32.gmra.mxu0 %v3337_v19 }
 0x425   : > { %3162 = vst.msk [vmem:[#allocation5 + $0x50] sm:$0xff] %vm3156_vm9, %v3143_v46 }
 0x42a   : > { %v3192_v57 = vpop.permute.xlu0 %3191 }
 0x42b   : > { %3211 = vst.msk [vmem:[#allocation5 + $0x50] sm:$0xff] %vm3205_vm10, %v3192_v57  ;;  %v3244_v28 = vpop.permute.xlu2 %3243 }
 0x42c   : > { %v3047_v10 = vpop.permute.xlu1 %3046  ;;  %3261 = vst.msk [vmem:[#allocation5 + $0x50] sm:$0xff] %vm3255_vm11, %v3242_v32 }
 0x42d   : > { %3310 = vst.msk [vmem:[#allocation5 + $0x50] sm:$0xff] %vm3304_vm12, %v3291_v13 }
 0x432   : > { %v2998_v21 = vpop.permute.xlu0 %2997 }
 0x433   : > { %3016 = vst.msk [vmem:[#allocation5 + $0x60] sm:$0xff] %vm3009_vm6, %v2998_v21  ;;  %v3049_v40 = vpop.permute.xlu2 %3048  ;;  %v3461_v21 = vpop.f32.mrf.mxu1 }
 0x434   : > { %v3194_v48 = vpop.permute.xlu1 %3193  ;;  %3065 = vst.msk [vmem:[#allocation5 + $0x60] sm:$0xff] %vm3058_vm7, %v3047_v10  ;;  %v3339_v55 = vld [vmem:[#allocation5 + $0x50] sm:$0xff] }
 0x435   : > { %3114 = vst.msk [vmem:[#allocation5 + $0x60] sm:$0xff] %vm3107_vm8, %v3096_v62  ;;  %3422 = vmatmul.f32.gmra.mxu0 %v3339_v55 }
 0x43a   : > { %v3145_v41 = vpop.permute.xlu0 %3144 }
 0x43b   : > { %3163 = vst.msk [vmem:[#allocation5 + $0x60] sm:$0xff] %vm3156_vm9, %v3145_v41  ;;  %v3196_v37 = vpop.permute.xlu2 %3195 }
 0x43c   : > { %v3000_v27 = vpop.permute.xlu1 %2999  ;;  %3212 = vst.msk [vmem:[#allocation5 + $0x60] sm:$0xff] %vm3205_vm10, %v3194_v48 }
 0x43d   : > { %3262 = vst.msk [vmem:[#allocation5 + $0x60] sm:$0xff] %vm3255_vm11, %v3244_v28 }
 0x43e   : > { %3017 = vst.msk [vmem:[#allocation5 + $0x70] sm:$0xff] %vm3009_vm6, %v3000_v27  ;;  %vm3573_vm6 = vcmask 1044224  }
 0x43f   : > { %3066 = vst.msk [vmem:[#allocation5 + $0x70] sm:$0xff] %vm3058_vm7, %v3049_v40  ;;  %vm3626_vm7 = vcmask 1048324  }
 0x442   : > { %v3293_v0 = vpop.permute.xlu0 %3292 }
 0x443   : > { %3311 = vst.msk [vmem:[#allocation5 + $0x60] sm:$0xff] %vm3304_vm12, %v3293_v0 }
 0x444   : > { %v3147_v36 = vpop.permute.xlu1 %3146 }
 0x44a   : > { %v3098_v8 = vpop.permute.xlu0 %3097  ;;  %v3341_v53 = vld [vmem:[#allocation5 + $0x60] sm:$0xff] }
 0x44b   : > { %3115 = vst.msk [vmem:[#allocation5 + $0x70] sm:$0xff] %vm3107_vm8, %v3098_v8  ;;  %3425 = vmatmul.f32.gmra.mxu0 %v3341_v53  ;;  %v3464_v53 = vpop.f32.mrf.mxu1  ;;  %vm3883_vm8 = vcmask 523264  }
 0x44c   : > { %3164 = vst.msk [vmem:[#allocation5 + $0x70] sm:$0xff] %vm3156_vm9, %v3147_v36  ;;  %v3295_v50 = vpop.permute.xlu1 %3294 }
 0x44d   : > { %3213 = vst.msk [vmem:[#allocation5 + $0x70] sm:$0xff] %vm3205_vm10, %v3196_v37 }
 0x452   : > { %v3246_v7 = vpop.permute.xlu0 %3245 }
 0x453   : > { %3263 = vst.msk [vmem:[#allocation5 + $0x70] sm:$0xff] %vm3255_vm11, %v3246_v7 }
 0x454   : > { %3312 = vst.msk [vmem:[#allocation5 + $0x70] sm:$0xff] %vm3304_vm12, %v3295_v50 }
 0x458   : > { %v3408_v18 = vpop.f32.mrf.mxu0 }
 0x459   : > { %v3409_v29 = vadd.f32 %v6359_v45, %v3408_v18  ;;  %v3552_v18 = vld [vmem:[#allocation7] sm:$0xf] }
 0x45a   : > { %3553 = vst.msk [vmem:[#allocation8] sm:$0xf] %vm3547_vm0, %v3552_v18 }
 0x45b   : > { %v3450_v30 = vadd.f32 %v3449_v25, %v3409_v29  ;;  %v3343_v11 = vld [vmem:[#allocation5 + $0x70] sm:$0xff]  ;;  %v3557_v29 = vpop.permute.xlu2 %3556 }
 0x45c   : > { %3428 = vmatmul.f32.gmra.mxu0 %v3343_v11  ;;  %3560 = vst.msk [vmem:[#allocation8] sm:$0xf] %vm3559_vm2, %v3557_v29  ;;  %v3771_v29 = vld [vmem:[%s6603_s5 + $0x28] sm:$0xff] }
 0x45d   : > { %v3473_v44 = vmax.f32 %v3450_v30, 0.0 }
 0x45f   : > { %3482 = vst.msk [vmem:[#allocation6] sm:$0xff] %vm3481_vm14, %v3473_v44 }
 0x466   : > { %v3504_v12 = vld [vmem:[#allocation6] ss:$2 sm:$0xf]  ;;  %v3512_v14 = vld [vmem:[#allocation6 + $0x1] ss:$2 sm:$0xf] }
 0x467   : > { %v3519_v51 = vmax.f32 %v3504_v12, %v3512_v14 }
 0x469   : > { %v3411_v1 = vpop.f32.mrf.mxu0 }
 0x46a   : > { %v3412_v31 = vadd.f32 %v6359_v45, %v3411_v1 }
 0x46c   : > { %v3453_v20 = vadd.f32 %v3452_v58, %v3412_v31 }
 0x46e   : > { %v3474_v35 = vmax.f32 %v3453_v20, 0.0  ;;  %v3467_v20 = vpop.f32.mrf.mxu1 }
 0x470   : > { %3483 = vst.msk [vmem:[#allocation6 + $0x8] sm:$0xff] %vm3481_vm14, %v3474_v35 }
 0x477   : > { %v3524_v60 = vld [vmem:[#allocation6 + $0x8] ss:$2 sm:$0xf]  ;;  %v3532_v17 = vld [vmem:[#allocation6 + $0x9] ss:$2 sm:$0xf] }
 0x478   : > { %v3539_v23 = vmax.f32 %v3524_v60, %v3532_v17 }
 0x47a   : > { %v3543_v38 = vmax.f32 %v3519_v51, %v3539_v23  ;;  %v3414_v59 = vpop.f32.mrf.mxu0 }
 0x47b   : > { %v3415_v15 = vadd.f32 %v6359_v45, %v3414_v59 }
 0x47c   : > { %3548 = vst.msk [vmem:[#allocation7 + $0x9] sm:$0xf] %vm3547_vm0, %v3543_v38 }
 0x47d   : > { %v3456_v33 = vadd.f32 %v3455_v54, %v3415_v15 }
 0x47f   : > { %v3475_v56 = vmax.f32 %v3456_v33, 0.0  ;;  %v3755_v33 = vld [vmem:[#allocation7 + $0x2a] sm:$0xf] }
 0x481   : > { %3484 = vst.msk [vmem:[#allocation6 + $0x10] sm:$0xff] %vm3481_vm14, %v3475_v56  ;;  %v3757_v56 = vrot.slane %v3755_v33, 4 }
 0x483   : > { %v3612_v26 = vld [vmem:[#allocation7 + $0xa] sm:$0xf]  ;;  %3759 = vst.msk [vmem:[#allocation8 + $0x28] sm:$0xf0] %vm3602_vm1, %v3757_v56 }
 0x484   : > { %v3604_v3 = vld [vmem:[#allocation7 + $0x9] sm:$0xf]  ;;  %v3614_v47 = vrot.slane %v3612_v26, 4 }
 0x485   : > { %v3606_v63 = vrot.slane %v3604_v3, 4  ;;  %v3598_v39 = vld [vmem:[#allocation7 + $0x8] sm:$0xf] }
 0x486   : > { %v3600_v49 = vrot.slane %v3598_v39, 4  ;;  %v3575_v24 = vld [vmem:[#allocation7 + $0x9] sm:$0xf]  ;;  %3615 = vrot.lane.b32.xlu2 %v3614_v47, %s4162_s17 }
 0x487   : > { %3607 = vrot.lane.b32.xlu0 %v3606_v63, %s4160_s8  ;;  %3576 = vst.msk [vmem:[#allocation8 + $0x8] sm:$0xf] %vm3547_vm0, %v3575_v24  ;;  %v3568_v5 = vld [vmem:[#allocation7 + $0x8] sm:$0xf]  ;;  %v3470_v63 = vpop.f32.mrf.mxu1 }
 0x488   : > { %3603 = vst.msk [vmem:[#allocation8] sm:$0xf0] %vm3602_vm1, %v3600_v49  ;;  %v3506_v61 = vld [vmem:[#allocation6 + $0x10] ss:$2 sm:$0xf]  ;;  %v3797_v56 = vld [vmem:[%s6603_s5 + $0xf8] sm:$0xff] }
 0x489   : > { %v3514_v42 = vld [vmem:[#allocation6 + $0x11] ss:$2 sm:$0xf]  ;;  %v3577_v26 = vld [vmem:[#allocation7 + $0xa] sm:$0xf]  ;;  %3835 = vmatpush.msra.mxu3 %v3797_v56 }
 0x48a   : > { %v3520_v19 = vmax.f32 %v3506_v61, %v3514_v42 }
 0x48f   : > { %3570 = vrot.lane.b32.xlu0 %v3568_v5, %s4165_s20 }
 0x490   : > { %v3417_v9 = vpop.f32.mrf.mxu0 }
 0x491   : > { %v3418_v43 = vadd.f32 %v6359_v45, %v3417_v9 }
 0x493   : > { %v3459_v6 = vadd.f32 %v3458_v4, %v3418_v43 }
 0x495   : > { %v3476_v46 = vmax.f32 %v3459_v6, 0.0  ;;  %v3564_v6 = vpop.permute.xlu1 %3563 }
 0x496   : > { %3567 = vst.msk [vmem:[#allocation8] sm:$0xf] %vm3566_vm3, %v3564_v6  ;;  %v3789_v6 = vld [vmem:[%s6603_s5 + $0xb8] sm:$0xff] }
 0x497   : > { %3485 = vst.msk [vmem:[#allocation6 + $0x18] sm:$0xff] %vm3481_vm14, %v3476_v46 }
 0x49e   : > { %v3526_v13 = vld [vmem:[#allocation6 + $0x18] ss:$2 sm:$0xf]  ;;  %v3534_v34 = vld [vmem:[#allocation6 + $0x19] ss:$2 sm:$0xf] }
 0x49f   : > { %v3540_v32 = vmax.f32 %v3526_v13, %v3534_v34  ;;  %v3781_v13 = vld [vmem:[%s6603_s5 + $0x78] sm:$0xff]  ;;  %v3780_v34 = vld [vmem:[%s6603_s5 + $0x70] sm:$0xff] }
 0x4a0   : > { %3812 = vmatpush.msra.mxu2 %v3781_v13  ;;  %v3799_v13 = vld [vmem:[%s6603_s5 + $0x108] sm:$0xff] }
 0x4a1   : > { %v3420_v62 = vpop.f32.mrf.mxu0  ;;  %v3544_v57 = vmax.f32 %v3520_v19, %v3540_v32 }
 0x4a2   : > { %v3421_v10 = vadd.f32 %v6359_v45, %v3420_v62  ;;  %3813 = vmatpush.msra.mxu2 %v3780_v34  ;;  %v3786_v34 = vld [vmem:[%s6603_s5 + $0xa0] sm:$0xff] }
 0x4a3   : > { %3549 = vst.msk [vmem:[#allocation7 + $0x11] sm:$0xf] %vm3547_vm0, %v3544_v57 }
 0x4a4   : > { %v3462_v48 = vadd.f32 %v3461_v21, %v3421_v10  ;;  %v3779_v10 = vld [vmem:[%s6603_s5 + $0x68] sm:$0xff] }
 0x4a5   : > { %3814 = vmatpush.msra.mxu2 %v3779_v10  ;;  %v3782_v10 = vld [vmem:[%s6603_s5 + $0x80] sm:$0xff] }
 0x4a6   : > { %v3477_v28 = vmax.f32 %v3462_v48, 0.0  ;;  %v3778_v48 = vld [vmem:[%s6603_s5 + $0x60] sm:$0xff] }
 0x4a7   : > { %3815 = vmatpush.msra.mxu2 %v3778_v48 }
 0x4a8   : > { %3486 = vst.msk [vmem:[#allocation6 + $0x20] sm:$0xff] %vm3481_vm14, %v3477_v28  ;;  %v3777_v28 = vld [vmem:[%s6603_s5 + $0x58] sm:$0xff] }
 0x4a9   : > { %3816 = vmatpush.msra.mxu2 %v3777_v28 }
 0x4aa   : > { %v3662_v55 = vld [vmem:[#allocation7 + $0x11] sm:$0xf] }
 0x4ab   : > { %v3620_v52 = vld [vmem:[#allocation7 + $0x10] sm:$0xf]  ;;  %3664 = vrot.lane.b32.xlu2 %v3662_v55, %s4160_s8  ;;  %v3776_v55 = vld [vmem:[%s6603_s5 + $0x50] sm:$0xff] }
 0x4ac   : > { %v3622_v41 = vrot.slane %v3620_v52, 4  ;;  %v3660_v27 = vld [vmem:[#allocation7 + $0x10] sm:$0xf]  ;;  %v3775_v52 = vld [vmem:[%s6603_s5 + $0x48] sm:$0xff]  ;;  %3817 = vmatpush.msra.mxu2 %v3776_v55 }
 0x4ad   : > { %3661 = vst.msk [vmem:[#allocation8 + $0x18] sm:$0xf] %vm3547_vm0, %v3660_v27  ;;  %v3628_v40 = vld [vmem:[#allocation7 + $0x11] sm:$0xf] }
 0x4ae   : > { %3623 = vrot.lane.b32.xlu1 %v3622_v41, %s4165_s20  ;;  %v3596_v22 = vld [vmem:[#allocation7 + $0x12] sm:$0xf]  ;;  %v3630_v0 = vrot.slane %v3628_v40, 4  ;;  %3818 = vmatpush.msra.mxu2 %v3775_v52 }
 0x4af   : > { %3597 = vst.msk [vmem:[#allocation8 + $0x10] sm:$0xf] %vm3547_vm0, %v3596_v22  ;;  %v3668_v37 = vld [vmem:[#allocation7 + $0x12] sm:$0xf] }
 0x4b0   : > { %3632 = vst.msk [vmem:[#allocation8 + $0x8] sm:$0xf0] %vm3602_vm1, %v3630_v0  ;;  %v3508_v25 = vld [vmem:[#allocation6 + $0x20] ss:$2 sm:$0xf] }
 0x4b1   : > { %v3516_v30 = vld [vmem:[#allocation6 + $0x21] ss:$2 sm:$0xf]  ;;  %v3633_v49 = vld [vmem:[#allocation7 + $0x12] sm:$0xf] }
 0x4b2   : > { %v3423_v36 = vpop.f32.mrf.mxu0  ;;  %v3521_v2 = vmax.f32 %v3508_v25, %v3516_v30  ;;  %v3635_v9 = vrot.slane %v3633_v49, 4  ;;  %v3590_v46 = vld [vmem:[#allocation7 + $0x11] sm:$0xf] }
 0x4b3   : > { %v3424_v8 = vadd.f32 %v6359_v45, %v3423_v36  ;;  %v3770_v25 = vld [vmem:[%s6603_s5 + $0x20] sm:$0xff] }
 0x4b4   : > { %v3584_v30 = vld [vmem:[#allocation7 + $0x10] sm:$0xf] }
 0x4b5   : > { %v3465_v50 = vadd.f32 %v3464_v53, %v3424_v8  ;;  %v3774_v53 = vld [vmem:[%s6603_s5 + $0x40] sm:$0xff] }
 0x4b6   : > { %3670 = vrot.lane.b32.xlu1 %v3668_v37, %s4162_s17  ;;  %v3773_v37 = vld [vmem:[%s6603_s5 + $0x38] sm:$0xff]  ;;  %3819 = vmatpush.msra.mxu2 %v3774_v53 }
 0x4b7   : > { %v3478_v7 = vmax.f32 %v3465_v50, 0.0 }
 0x4b8   : > { %3820 = vmatpush.msra.mxu2 %v3773_v37 }
 0x4b9   : > { %3487 = vst.msk [vmem:[#allocation6 + $0x28] sm:$0xff] %vm3481_vm14, %v3478_v7  ;;  %v3772_v7 = vld [vmem:[%s6603_s5 + $0x30] sm:$0xff] }
 0x4ba   : > { %3821 = vmatpush.msra.mxu2 %v3772_v7 }
 0x4bc   : > { %3822 = vmatpush.msra.mxu2 %v3771_v29 }
 0x4be   : > { %3823 = vmatpush.msra.mxu2 %v3770_v25 }
 0x4c0   : > { %v3528_v11 = vld [vmem:[#allocation6 + $0x28] ss:$2 sm:$0xf]  ;;  %v3536_v44 = vld [vmem:[#allocation6 + $0x29] ss:$2 sm:$0xf] }
 0x4c1   : > { %v3541_v1 = vmax.f32 %v3528_v11, %v3536_v44 }
 0x4c3   : > { %v3545_v16 = vmax.f32 %v3521_v2, %v3541_v1  ;;  %v3769_v2 = vld [vmem:[%s6603_s5 + $0x18] sm:$0xff]  ;;  %v3768_v1 = vld [vmem:[%s6603_s5 + $0x10] sm:$0xff] }
 0x4c4   : > { %3824 = vmatpush.msra.mxu2 %v3769_v2 }
 0x4c5   : > { %3550 = vst.msk [vmem:[#allocation7 + $0x19] sm:$0xf] %vm3547_vm0, %v3545_v16 }
 0x4c6   : > { %3825 = vmatpush.msra.mxu2 %v3768_v1 }
 0x4c8   : > { %v3426_v31 = vpop.f32.mrf.mxu0 }
 0x4c9   : > { %v3427_v58 = vadd.f32 %v6359_v45, %v3426_v31  ;;  %v3767_v31 = vld [vmem:[%s6603_s5 + $0x8] sm:$0xff] }
 0x4ca   : > { %3826 = vmatpush.msra.mxu2 %v3767_v31 }
 0x4cb   : > { %v3468_v35 = vadd.f32 %v3467_v20, %v3427_v58  ;;  %v3766_v20 = vld [vmem:[%s6603_s5] sm:$0xff] }
 0x4cc   : > { %v3715_v12 = vld [vmem:[#allocation7 + $0x1a] sm:$0xf]  ;;  %3827 = vmatpush.msra.mxu2 %v3766_v20 }
 0x4cd   : > { %v3708_v14 = vld [vmem:[#allocation7 + $0x19] sm:$0xf]  ;;  %v3479_v60 = vmax.f32 %v3468_v35, 0.0  ;;  %v3717_v17 = vrot.slane %v3715_v12, 4  ;;  %v3741_v12 = vld [vmem:[#allocation7 + $0x28] sm:$0xf] }
 0x4ce   : > { %v3710_v51 = vrot.slane %v3708_v14, 4  ;;  %v3655_v23 = vld [vmem:[#allocation7 + $0x1a] sm:$0xf]  ;;  %v3743_v14 = vrot.slane %v3741_v12, 4 }
 0x4cf   : > { %3488 = vst.msk [vmem:[#allocation6 + $0x30] sm:$0xff] %vm3481_vm14, %v3479_v60  ;;  %3718 = vrot.lane.b32.xlu2 %v3717_v17, %s4162_s17  ;;  %v3657_v38 = vrot.slane %v3655_v23, 4  ;;  %v3703_v59 = vld [vmem:[#allocation7 + $0x18] sm:$0xf]  ;;  %v3748_v17 = vld [vmem:[#allocation7 + $0x29] sm:$0xf] }
 0x4d0   : > { %3711 = vrot.lane.b32.xlu0 %v3710_v51, %s4160_s8  ;;  %v3705_v15 = vrot.slane %v3703_v59, 4  ;;  %v3680_v54 = vld [vmem:[#allocation7 + $0x19] sm:$0xf]  ;;  %v3750_v51 = vrot.slane %v3748_v17, 4 }
 0x4d1   : > { %3659 = vst.msk [vmem:[#allocation8 + $0x10] sm:$0xf0] %vm3602_vm1, %v3657_v38  ;;  %v3674_v3 = vld [vmem:[#allocation7 + $0x18] sm:$0xf] }
 0x4d2   : > { %3707 = vst.msk [vmem:[#allocation8 + $0x18] sm:$0xf0] %vm3602_vm1, %v3705_v15  ;;  %v3641_v24 = vld [vmem:[#allocation7 + $0x18] sm:$0xf] }
 0x4d3   : > { %3681 = vst.msk [vmem:[#allocation8 + $0x20] sm:$0xf] %vm3547_vm0, %v3680_v54  ;;  %v3643_v43 = vrot.slane %v3641_v24, 4  ;;  %v3648_v16 = vld [vmem:[#allocation7 + $0x19] sm:$0xf]  ;;  %v3793_v24 = vld [vmem:[%s6603_s5 + $0xd8] sm:$0xff] }
 0x4d4   : > { %v3650_v58 = vrot.slane %v3648_v16, 4 }
 0x4d6   : > { %v3510_v61 = vld [vmem:[#allocation6 + $0x30] ss:$2 sm:$0xf]  ;;  %v3518_v42 = vld [vmem:[#allocation6 + $0x31] ss:$2 sm:$0xf] }
 0x4d7   : > { %3579 = vrot.lane.b32.xlu2 %v3577_v26, %s4160_s8  ;;  %v3522_v62 = vmax.f32 %v3510_v61, %v3518_v42  ;;  %v3796_v26 = vld [vmem:[%s6603_s5 + $0xf0] sm:$0xff] }
 0x4d8   : > { %3676 = vrot.lane.b32.xlu0 %v3674_v3, %s4165_s20  ;;  %v3795_v3 = vld [vmem:[%s6603_s5 + $0xe8] sm:$0xff]  ;;  %3836 = vmatpush.msra.mxu3 %v3796_v26  ;;  %v3788_v61 = vld [vmem:[%s6603_s5 + $0xb0] sm:$0xff] }
 0x4d9   : > { %v3429_v47 = vpop.f32.mrf.mxu0  ;;  %v3800_v42 = vld [vmem:[%s6603_s5 + $0x110] sm:$0xff] }
 0x4da   : > { %v3430_v39 = vadd.f32 %v6359_v45, %v3429_v47  ;;  %v3682_v45 = vld [vmem:[#allocation7 + $0x1a] sm:$0xf]  ;;  %v3794_v47 = vld [vmem:[%s6603_s5 + $0xe0] sm:$0xff]  ;;  %3837 = vmatpush.msra.mxu3 %v3795_v3 }
 0x4dc   : > { %v3471_v5 = vadd.f32 %v3470_v63, %v3430_v39  ;;  %3838 = vmatpush.msra.mxu3 %v3794_v47 }
 0x4de   : > { %v3480_v4 = vmax.f32 %v3471_v5, 0.0  ;;  %v3792_v5 = vld [vmem:[%s6603_s5 + $0xd0] sm:$0xff]  ;;  %3839 = vmatpush.msra.mxu3 %v3793_v24 }
 0x4df   : > { %3644 = vrot.lane.b32.xlu2 %v3643_v43, %s4162_s17  ;;  %v3790_v43 = vld [vmem:[%s6603_s5 + $0xc0] sm:$0xff] }
 0x4e0   : > { %3636 = vrot.lane.b32.xlu0 %v3635_v9, %s4160_s8  ;;  %3489 = vst.msk [vmem:[#allocation6 + $0x38] sm:$0xff] %vm3481_vm14, %v3480_v4  ;;  %v3616_v18 = vpop.permute.xlu2 %3615  ;;  %v3791_v9 = vld [vmem:[%s6603_s5 + $0xc8] sm:$0xff]  ;;  %3840 = vmatpush.msra.mxu3 %v3792_v5 }
 0x4e2   : > { %3841 = vmatpush.msra.mxu3 %v3791_v9 }
 0x4e4   : > { %3842 = vmatpush.msra.mxu3 %v3790_v43 }
 0x4e6   : > { %3843 = vmatpush.msra.mxu3 %v3789_v6 }
 0x4e7   : > { %v3530_v19 = vld [vmem:[#allocation6 + $0x38] ss:$2 sm:$0xf]  ;;  %v3538_v32 = vld [vmem:[#allocation6 + $0x39] ss:$2 sm:$0xf]  ;;  %3684 = vrot.lane.b32.xlu2 %v3682_v45, %s4160_s8 }
 0x4e8   : > { %3592 = vrot.lane.b32.xlu0 %v3590_v46, %s4165_s20  ;;  %v3542_v57 = vmax.f32 %v3530_v19, %v3538_v32  ;;  %v3801_v46 = vld [vmem:[%s6603_s5 + $0x118] sm:$0xff]  ;;  %v3787_v45 = vld [vmem:[%s6603_s5 + $0xa8] sm:$0xff]  ;;  %3844 = vmatpush.msra.mxu3 %v3788_v61  ;;  %v3798_v19 = vld [vmem:[%s6603_s5 + $0x100] sm:$0xff] }
 0x4e9   : > { %3870 = vmatpush.msrb.mxu2 %v3801_v46  ;;  %v3785_v32 = vld [vmem:[%s6603_s5 + $0x98] sm:$0xff] }
 0x4ea   : > { %v3546_v21 = vmax.f32 %v3522_v62, %v3542_v57  ;;  %3845 = vmatpush.msra.mxu3 %v3787_v45  ;;  %v3784_v62 = vld [vmem:[%s6603_s5 + $0x90] sm:$0xff]  ;;  %v3783_v57 = vld [vmem:[%s6603_s5 + $0x88] sm:$0xff] }
 0x4eb   : > { %3871 = vmatpush.msrb.mxu2 %v3800_v42 }
 0x4ec   : > { %3551 = vst.msk [vmem:[#allocation7 + $0x21] sm:$0xf] %vm3547_vm0, %v3546_v21  ;;  %3846 = vmatpush.msra.mxu3 %v3786_v34 }
 0x4ed   : > { %3872 = vmatpush.msrb.mxu2 %v3799_v13 }
 0x4ee   : > { %3847 = vmatpush.msra.mxu3 %v3785_v32 }
 0x4ef   : > { %3744 = vrot.lane.b32.xlu2 %v3743_v14, %s4162_s17  ;;  %3873 = vmatpush.msrb.mxu2 %v3798_v19 }
 0x4f0   : > { %3848 = vmatpush.msra.mxu3 %v3784_v62 }
 0x4f2   : > { %3849 = vmatpush.msra.mxu3 %v3783_v57 }
 0x4f3   : > { %v3734_v41 = vld [vmem:[#allocation7 + $0x22] sm:$0xf] }
 0x4f4   : > { %v3722_v27 = vld [vmem:[#allocation7 + $0x20] sm:$0xf]  ;;  %v3736_v40 = vrot.slane %v3734_v41, 4  ;;  %3850 = vmatpush.msra.mxu3 %v3782_v10 }
 0x4f5   : > { %v3724_v22 = vrot.slane %v3722_v27, 4  ;;  %v3729_v0 = vld [vmem:[#allocation7 + $0x21] sm:$0xf] }
 0x4f6   : > { %v3731_v36 = vrot.slane %v3729_v0, 4  ;;  %v3701_v8 = vld [vmem:[#allocation7 + $0x22] sm:$0xf]  ;;  %3737 = vrot.lane.b32.xlu0 %v3736_v40, %s4160_s8  ;;  %s4113_s8 = scalar_lea.hbm %s6605_s7, 32 }
 0x4f7   : > { %3725 = vrot.lane.b32.xlu1 %v3724_v22, %s4165_s20  ;;  %3702 = vst.msk [vmem:[#allocation8 + $0x28] sm:$0xf] %vm3547_vm0, %v3701_v8  ;;  %v3695_v11 = vld [vmem:[#allocation7 + $0x21] sm:$0xf] }
 0x4f8   : > { %3733 = vst.msk [vmem:[#allocation8 + $0x20] sm:$0xf0] %vm3602_vm1, %v3731_v36  ;;  %v3689_v60 = vld [vmem:[#allocation7 + $0x20] sm:$0xf] }
 0x4f9   : > { %v3608_v50 = vpop.permute.xlu0 %3607  ;;  %v3762_v40 = vld [vmem:[#allocation8 + $0x10] sm:$0xff] }
 0x4fa   : > { %3611 = vst.msk [vmem:[#allocation8] sm:$0xf0] %vm3610_vm4, %v3608_v50 }
 0x4fb   : > { %3619 = vst.msk [vmem:[#allocation8] sm:$0xf0] %vm3618_vm5, %v3616_v18  ;;  %v4082_v18 = vld [vmem:[%s6604_s6] ss:$0 sm:$0xff] }
 0x4fe   : > { %3697 = vrot.lane.b32.xlu0 %v3695_v11, %s4165_s20  ;;  %v3765_v8 = vld [vmem:[#allocation8 + $0x28] sm:$0xff] }
 0x4ff   : > { %3586 = vrot.lane.b32.xlu1 %v3584_v30, %s4162_s17 }
 0x501   : > { %v3571_v44 = vpop.permute.xlu0 %3570 }
 0x502   : > { %3574 = vst.msk [vmem:[#allocation8] sm:$0xf] %vm3573_vm6, %v3571_v44 }
 0x505   : > { %v3665_v35 = vpop.permute.xlu2 %3664 }
 0x506   : > { %3667 = vst.msk [vmem:[#allocation8 + $0x18] sm:$0xf] %vm3559_vm2, %v3665_v35 }
 0x507   : > { %3651 = vrot.lane.b32.xlu1 %v3650_v58, %s4165_s20 }
 0x50f   : > { %3691 = vrot.lane.b32.xlu1 %v3689_v60, %s4162_s17  ;;  %s3990_s17 = sshll.u32 %s269_s23, 4 }
 0x510   : > { %s271_s29 = scalar_lea.vmem [#allocation9], %s3990_s17 }
 0x511   : > { %s3899_s9 = sshll.u32 %s271_s29, 4  ;;  %s3900_s9 = int_to_ptr.vmem [resolvable:$true] %s3899_s9 }
 0x517   : > { %3751 = vrot.lane.b32.xlu1 %v3750_v51, %s4165_s20  ;;  %s4017_s20 = sshll.u32 %s4229_s28, 4 }
 0x518   : > { %s3898_s19 = scalar_lea.hbm %s6605_s7, %s4017_s20 }
 0x519   : > { %s3901_s13 = sshll.u32 %s3898_s19, 4  ;;  %s3902_s13 = int_to_ptr.hbm [resolvable:$true] %s3901_s13 }
 0x51a   : > { %s4107_s15 = sshra.s32 %s3902_s13, 4  ;;  %s4108_s15 = int_to_ptr.hbm [resolvable:$true] %s4107_s15 }
 0x51b   : > { %s4109_s28 = scalar_lea.hbm %s4108_s15, 16  ;;  %p4114_p0 = scmp.lt.s32.totalorder %s4108_s15, %s6605_s7 }
 0x51c   : > { %p4110_p11 = scmp.ne.s32.totalorder %s4108_s15, %s4109_s28  ;;  %p4115_p1 = scmp.lt.s32.totalorder %s4113_s8, %s4109_s28 }
 0x51e   : > { %p4111_p12 = pnand %p4110_p11, %p4246_p5  ;;  %p4116_p2 = por %p4115_p1, %p4114_p0 }
 0x520   : > { %v3624_v23 = vpop.permute.xlu1 %3623  ;;  %p4112_p13 = pneg %p4111_p12 }
 0x521   : > { %3627 = vst.msk [vmem:[#allocation8] sm:$0xf0] %vm3626_vm7, %v3624_v23 }
 0x522   : > { %p4117_p3 = pnand %p4116_p2, %p4112_p13 }
 0x528   : > { %v3671_v38 = vpop.permute.xlu1 %3670  ;;  %v3760_v59 = vld [vmem:[#allocation8] sm:$0xff] }
 0x529   : > { %3673 = vst.msk [vmem:[#allocation8 + $0x18] sm:$0xf] %vm3566_vm3, %v3671_v38  ;;  %3828 = vmatmul.f32.vlgmr.msra.gmra.mxu2 %v3760_v59  ;;  %v3719_v15 = vpop.permute.xlu2 %3718 }
 0x531   : > { %v3580_v54 = vpop.permute.xlu2 %3579 }
 0x532   : > { %3582 = vst.msk [vmem:[#allocation8 + $0x8] sm:$0xf] %vm3559_vm2, %v3580_v54 }
 0x539   : > { %v3645_v33 = vpop.permute.xlu2 %3644 }
 0x541   : > { %v3685_v39 = vpop.permute.xlu2 %3684 }
 0x542   : > { %v3712_v63 = vpop.permute.xlu0 %3711  ;;  %3687 = vst.msk [vmem:[#allocation8 + $0x20] sm:$0xf] %vm3559_vm2, %v3685_v39 }
 0x543   : > { %3714 = vst.msk [vmem:[#allocation8 + $0x18] sm:$0xf0] %vm3610_vm4, %v3712_v63 }
 0x544   : > { %3721 = vst.msk [vmem:[#allocation8 + $0x18] sm:$0xf0] %vm3618_vm5, %v3719_v15 }
 0x549   : > { %v3745_v48 = vpop.permute.xlu2 %3744 }
 0x54a   : > { %v3677_v49 = vpop.permute.xlu0 %3676 }
 0x54b   : > { %3679 = vst.msk [vmem:[#allocation8 + $0x18] sm:$0xf] %vm3573_vm6, %v3677_v49 }
 0x552   : > { %v3637_v4 = vpop.permute.xlu0 %3636 }
 0x553   : > { %3639 = vst.msk [vmem:[#allocation8 + $0x8] sm:$0xf0] %vm3610_vm4, %v3637_v4 }
 0x554   : > { %3647 = vst.msk [vmem:[#allocation8 + $0x8] sm:$0xf0] %vm3618_vm5, %v3645_v33 }
 0x55a   : > { %v3593_v21 = vpop.permute.xlu0 %3592 }
 0x568   : > { %v3738_v28 = vpop.permute.xlu0 %3737 }
 0x569   : > { %v3726_v55 = vpop.permute.xlu1 %3725  ;;  %3740 = vst.msk [vmem:[#allocation8 + $0x20] sm:$0xf0] %vm3610_vm4, %v3738_v28 }
 0x56a   : > { %3728 = vst.msk [vmem:[#allocation8 + $0x18] sm:$0xf0] %vm3626_vm7, %v3726_v55 }
 0x56b   : > { %3747 = vst.msk [vmem:[#allocation8 + $0x20] sm:$0xf0] %vm3618_vm5, %v3745_v48 }
 0x570   : > { %v3698_v36 = vpop.permute.xlu0 %3697 }
 0x571   : > { %v3587_v52 = vpop.permute.xlu1 %3586  ;;  %v3763_v41 = vld [vmem:[#allocation8 + $0x18] sm:$0xff] }
 0x572   : > { %3589 = vst.msk [vmem:[#allocation8 + $0x8] sm:$0xf] %vm3566_vm3, %v3587_v52  ;;  %3831 = vmatmul.f32.gmra.mxu2 %v3763_v41 }
 0x573   : > { %3595 = vst.msk [vmem:[#allocation8 + $0x8] sm:$0xf] %vm3573_vm6, %v3593_v21 }
 0x579   : > { %v3652_v27 = vpop.permute.xlu1 %3651 }
 0x57a   : > { %3654 = vst.msk [vmem:[#allocation8 + $0x8] sm:$0xf0] %vm3626_vm7, %v3652_v27  ;;  %4009 = vmatmul.msk.f32.vlgmr.msrb.gmra.mxu2 %vm3481_vm14, %v3762_v40 }
 0x581   : > { %v3692_v22 = vpop.permute.xlu1 %3691  ;;  %v3761_v0 = vld [vmem:[#allocation8 + $0x8] sm:$0xff] }
 0x582   : > { %3694 = vst.msk [vmem:[#allocation8 + $0x20] sm:$0xf] %vm3566_vm3, %v3692_v22  ;;  %3851 = vmatmul.f32.vlgmr.msra.gmra.mxu3 %v3761_v0  ;;  %4010 = vmatmul.msk.f32.gmra.mxu2 %vm3481_vm14, %v3765_v8 }
 0x583   : > { %3700 = vst.msk [vmem:[#allocation8 + $0x20] sm:$0xf] %vm3573_vm6, %v3698_v36 }
 0x589   : > { %v3752_v53 = vpop.permute.xlu1 %3751 }
 0x58a   : > { %3754 = vst.msk [vmem:[#allocation8 + $0x20] sm:$0xf0] %vm3626_vm7, %v3752_v53 }
 0x591   : > { %v3764_v37 = vld [vmem:[#allocation8 + $0x20] sm:$0xff] }
 0x592   : > { %3854 = vmatmul.f32.gmra.mxu3 %v3764_v37 }
 0x5ac   : > { %v3829_v50 = vpop.f32.mrf.mxu2 }
 0x5ad   : > { %v3830_v29 = vadd.f32 %v4082_v18, %v3829_v50 }
 0x5f5   : > { %v3832_v7 = vpop.f32.mrf.mxu2 }
 0x5f6   : > { %v3833_v1 = vadd.f32 %v4082_v18, %v3832_v7 }
 0x5fd   : > { %v3875_v11 = vpop.f32.mrf.mxu2 }
 0x605   : > { %v3852_v25 = vpop.f32.mrf.mxu3  ;;  %v3878_v58 = vpop.f32.mrf.mxu2 }
 0x606   : > { %v3853_v30 = vadd.f32 %v3852_v25, %v3830_v29 }
 0x608   : > { %v3876_v44 = vadd.f32 %v3875_v11, %v3853_v30 }
 0x60a   : > { %v3881_v2 = vmax.f32 %v3876_v44, 0.0 }
 0x60c   : > { %3884 = vst.msk [vmem:[%s271_s29] sm:$0xff] %vm3883_vm8, %v3881_v2 }
 0x615   : > { %v3855_v16 = vpop.f32.mrf.mxu3 }
 0x616   : > { %v3856_v31 = vadd.f32 %v3855_v16, %v3833_v1 }
 0x618   : > { %v3879_v20 = vadd.f32 %v3878_v58, %v3856_v31 }
 0x61a   : > { %v3882_v35 = vmax.f32 %v3879_v20, 0.0 }
 0x61c   : > { %3885 = vst.msk [vmem:[%s271_s29 + $0x8] sm:$0xff] %vm3883_vm8, %v3882_v35 }
 0x61d   : > { %4120 = shalt.err (!%p4117_p3)
}
 0x61e   : > { %s4166_s23 = smov 128   ;;  %s4167_s29 = smov 8  }
 0x61f   : > { %4018 = dma.vmem_to_hbm [thread:$0]  (%p4246_p5), %s3900_s9, 256, %s3902_s13, %s3887_s14, %s4166_s23, %s4166_s23, %s4167_s29  }
 0x620 PF: > { %p4024_p4 = scmp.ge.s32.totalorder %s4155_s27, 2  ;;  %s3916_s16 = sand.u32 1, %s4143_s24  }
 0x621   : > { %s3917_s18 = scalar_lea.sflag [#allocation10], %s3916_s16 }
 0x622   : > { %p4021_p7 = pnand %p4024_p4, %p4250_p6 }
 0x624   : > { %p4022_p8 = pneg %p4021_p7 }
 0x626   : > { %4138 = dma.done.wait (%p4022_p8), %s3917_s18, 256  }
 0x627   : > { %4140 = vsyncadd (%p4022_p8), %s3917_s18, 4294967040  ;;  %p17_p9 = scmp.ge.s32.totalorder %s4233_s30, 4   ;;  %s7135_s24 = smov %s4147_s25 }
 0x628   : > { %s7136_s25 = smov %s4151_s26  ;;  %s7137_s26 = smov %s4244_s10 }
 0x629   : > { %s7138_s27 = smov %s4233_s30  ;;  %19 = sbr.rel (!%p17_p9) target bundleno = 3 (0x3), region = 148 }
 0x62e   :  { %3923 = vsyncpa [#allocation10], 1 }
 0x62f   :  { %3925 = vsyncpa [#allocation10 + $0x1], 1 }

</bundles_post_ra>
